<compile_context>
chip_gen: v6e
topology: v6e:2x2x1
jax: 0.10.0
libtpu: 0.0.40
codegen_flags: <defaults>
</compile_context>

<pallas_src>
import math

import jax
import jax.numpy as jnp
from jax.experimental import pallas as pl
from jax.experimental.pallas import tpu as pltpu

LN_EPS = 1e-5  # PyTorch nn.LayerNorm default


def _make_kernel(head_num: int, head_dim: int, ba: int, T: int, D: int):
    scale = 1.0 / math.sqrt(head_dim)

    def kernel(x_ref, pad_ref,
               g1_ref, b1_ref,
               wqkv_ref, bqkv_ref,
               wo_ref, bo_ref,
               w1_ref, bias1_ref,
               g2_ref, b2_ref,
               o_ref,
               heads_ref):
        def mm_t(a, b):  # a @ b.T  (PyTorch Linear convention: W is (out, in))
            return jax.lax.dot_general(a, b, (((1,), (1,)), ((), ())),
                                       preferred_element_type=jnp.float32)

        def layernorm(z, g, b):
            mu = jnp.mean(z, axis=-1, keepdims=True)
            var = jnp.mean((z - mu) ** 2, axis=-1, keepdims=True)
            return (z - mu) * jax.lax.rsqrt(var + LN_EPS) * g + b

        x = x_ref[...]                    # (BA*T, D)
        pad = pad_ref[...]                # (BA, 1, T)  1.0 = padded key
        neg = pad * (-1e30)               # additive bias for padded keys (f32)

        # ---- layer_X_ : LayerNorm over feature dim ----
        xn = layernorm(x, g1_ref[...], b1_ref[...])

        # ---- fused QKV projection (single MXU push, N = 3D) ----
        qkv = mm_t(xn, wqkv_ref[...]) + bqkv_ref[...]        # (BA*T, 3D)

        # ---- per-head attention, batched over agents ----
        for h in range(head_num):
            lo = h * head_dim
            qh = (qkv[:, lo:lo + head_dim] * scale).reshape(ba, T, head_dim)
            kh = qkv[:, D + lo:D + lo + head_dim].reshape(ba, T, head_dim)
            vh = qkv[:, 2 * D + lo:2 * D + lo + head_dim].reshape(ba, T, head_dim)

            s = jnp.einsum('bqd,bkd->bqk', qh, kh,
                           preferred_element_type=jnp.float32) + neg   # (BA,T,T)

            # add_zero_attn: one extra zero key/value with score 0, never
            # masked -> handled analytically (extra exp(-m) in the denominator,
            # zero value contributes nothing to the output).
            m = jnp.maximum(jnp.max(s, axis=-1, keepdims=True), 0.0)
            e = jnp.exp(s - m)
            denom = jnp.sum(e, axis=-1, keepdims=True) + jnp.exp(-m)
            w = e * pl.reciprocal(denom, approx=True)

            oh = jnp.einsum('bqk,bkd->bqd', w, vh,
                            preferred_element_type=jnp.float32)        # (BA,T,hd)
            heads_ref[:, lo:lo + head_dim] = oh.reshape(ba * T, head_dim)

        # ---- single out-projection over the concatenated heads ----
        att = mm_t(heads_ref[...], wo_ref[...]) + bo_ref[...]          # (BA*T, D)

        # ---- residual, layer_F1_ (Linear + ReLU), layer_Z_ (LayerNorm) ----
        s_ = att + x
        f1 = jnp.maximum(mm_t(s_, w1_ref[...]) + bias1_ref[...], 0.0)
        o_ref[...] = layernorm(f1, g2_ref[...], b2_ref[...]).astype(o_ref.dtype)

    return kernel


def self_att_layer_enc(x, padding_mask, params, head_num, block_agents=8):
    """Forward pass of SelfAttLayer_Enc (across_time=True)."""
    A, T, D = x.shape
    head_dim = D // head_num

    # agents per grid step: largest divisor of A not exceeding block_agents
    ba = min(block_agents, A)
    while A % ba:
        ba -= 1

    x_flat = x.reshape(A * T, D).astype(jnp.float32)
    pad_f = padding_mask.astype(jnp.float32).reshape(A, 1, T)

    # nn.MultiheadAttention-style fused in_proj
    wqkv = jnp.concatenate([params["wq"], params["wk"], params["wv"]], axis=0)
    bqkv = jnp.concatenate([params["bq"], params["bk"], params["bv"]], axis=1)

    weights = [params["g1"], params["b1"], wqkv, bqkv,
               params["wo"], params["bo"],
               params["w1"], params["bias1"],
               params["g2"], params["b2"]]

    def full_spec(shape):
        return pl.BlockSpec(shape, lambda a, n=len(shape): (0,) * n)

    grid_spec = pltpu.PrefetchScalarGridSpec(
        num_scalar_prefetch=0,
        grid=(A // ba,),
        in_specs=[pl.BlockSpec((ba * T, D), lambda a: (a, 0)),
                  pl.BlockSpec((ba, 1, T), lambda a: (a, 0, 0))]
                 + [full_spec(w.shape) for w in weights],
        out_specs=pl.BlockSpec((ba * T, D), lambda a: (a, 0)),
        scratch_shapes=[pltpu.VMEM((ba * T, D), jnp.float32)],  # heads concat
    )

    out_flat = pl.pallas_call(
        _make_kernel(head_num, head_dim, ba, T, D),
        out_shape=jax.ShapeDtypeStruct((A * T, D), jnp.float32),
        grid_spec=grid_spec,
        compiler_params=pltpu.CompilerParams(
            dimension_semantics=("parallel",),
            vmem_limit_bytes=32 * 1024 * 1024),
    )(x_flat, pad_f, *weights)

    # NOTE: for the production config D=256 the (BA*T, D) stores are already
    # lane-dense; for demo-sized D<128 they are masked (acceptable at this size).
    return out_flat.reshape(A, T, D)


# ----------------------- pure-JAX reference (for verification) ----------------
def ref_forward(x, padding_mask, p, head_num):
    A, T, D = x.shape
    hd = D // head_num

    def ln(z, g, b):
        mu = z.mean(-1, keepdims=True)
        var = ((z - mu) ** 2).mean(-1, keepdims=True)
        return (z - mu) / jnp.sqrt(var + LN_EPS) * g + b

    xn = ln(x, p["g1"], p["b1"])
    q = xn @ p["wq"].T + p["bq"]
    k = xn @ p["wk"].T + p["bk"]
    v = xn @ p["wv"].T + p["bv"]
    qh = q.reshape(A, T, head_num, hd).transpose(0, 2, 1, 3)
    kh = k.reshape(A, T, head_num, hd).transpose(0, 2, 1, 3)
    vh = v.reshape(A, T, head_num, hd).transpose(0, 2, 1, 3)
    scores = (qh @ kh.transpose(0, 1, 3, 2)) / jnp.sqrt(hd)        # (A,H,T,T)
    scores = jnp.concatenate([scores, jnp.zeros((A, head_num, T, 1))], -1)
    mask = jnp.concatenate([padding_mask, jnp.zeros((A, 1), bool)], -1)
    scores = jnp.where(mask[:, None, None, :], -jnp.inf, scores)
    w = jax.nn.softmax(scores, -1)
    vz = jnp.concatenate([vh, jnp.zeros((A, head_num, 1, hd))], 2)
    out = (w @ vz).transpose(0, 2, 1, 3).reshape(A, T, D)
    att = out @ p["wo"].T + p["bo"]
    s = att + x
    f1 = jnp.maximum(s @ p["w1"].T + p["bias1"], 0.0)
    return ln(f1, p["g2"], p["b2"])


if __name__ == "__main__":
    # small shapes consistent with the module: A agents, T time steps, D features
    A, T, D, H = 16, 8, 32, 4

    key = jax.random.PRNGKey(0)
    ks = jax.random.split(key, 12)

    x = jax.random.normal(ks[0], (A, T, D), jnp.float32)
    padding_mask = jax.random.bernoulli(ks[1], 0.3, (A, T))  # True = pad

    def w(k, shape, s=0.08):
        return jax.random.normal(k, shape, jnp.float32) * s

    params = {
        # layer_X_ LayerNorm
        "g1": jnp.ones((1, D), jnp.float32), "b1": jnp.zeros((1, D), jnp.float32),
        # MultiheadAttention in_proj (split into q/k/v) + out_proj
        "wq": w(ks[2], (D, D)), "wk": w(ks[3], (D, D)), "wv": w(ks[4], (D, D)),
        "bq": w(ks[5], (1, D)), "bk": w(ks[6], (1, D)), "bv": w(ks[7], (1, D)),
        "wo": w(ks[8], (D, D)), "bo": w(ks[9], (1, D)),
        # layer_F1_ Linear
        "w1": w(ks[10], (D, D)), "bias1": w(ks[11], (1, D)),
        # layer_Z_ LayerNorm
        "g2": jnp.ones((1, D), jnp.float32), "b2": jnp.zeros((1, D), jnp.float32),
    }

    out = self_att_layer_enc(x, padding_mask, params, head_num=H, block_agents=8)
    out = jax.block_until_ready(out)

    ref = ref_forward(x, padding_mask, params, head_num=H)
    err = jnp.max(jnp.abs(out - ref))
    assert out.shape == (A, T, D)
    # tolerance covers the EUP approximate-reciprocal in the softmax denominator
    assert jnp.allclose(out, ref, atol=5e-3, rtol=5e-3), f"max err {err}"

    print("KERNEL_OK")
</pallas_src>

<mosaic_0001>
module attributes {stable_mosaic.version = 11 : i64} {
  func.func @kernel(%arg0: i32, %arg1: memref<64x32xf32, #tpu.memory_space<vmem>>, %arg2: memref<8x1x8xf32, #tpu.memory_space<vmem>>, %arg3: memref<1x32xf32, #tpu.memory_space<vmem>>, %arg4: memref<1x32xf32, #tpu.memory_space<vmem>>, %arg5: memref<96x32xf32, #tpu.memory_space<vmem>>, %arg6: memref<1x96xf32, #tpu.memory_space<vmem>>, %arg7: memref<32x32xf32, #tpu.memory_space<vmem>>, %arg8: memref<1x32xf32, #tpu.memory_space<vmem>>, %arg9: memref<32x32xf32, #tpu.memory_space<vmem>>, %arg10: memref<1x32xf32, #tpu.memory_space<vmem>>, %arg11: memref<1x32xf32, #tpu.memory_space<vmem>>, %arg12: memref<1x32xf32, #tpu.memory_space<vmem>>, %arg13: memref<64x32xf32, #tpu.memory_space<vmem>>, %arg14: memref<64x32xf32, #tpu.memory_space<vmem>>) attributes {dimension_semantics = [#tpu.dimension_semantics<parallel>], iteration_bounds = array<i64: 2>, scalar_prefetch = 0 : i64, scratch_operands = 1 : i64, tpu.core_type = #tpu.core_type<tc>, window_params = [{transform_indices = @transform_0, window_bounds = array<i64: 64, 32>}, {transform_indices = @transform_1, window_bounds = array<i64: 8, 1, 8>}, {pipeline_mode = #tpu.pipeline_mode<synchronous>, transform_indices = @transform_2, window_bounds = array<i64: 1, 32>}, {pipeline_mode = #tpu.pipeline_mode<synchronous>, transform_indices = @transform_3, window_bounds = array<i64: 1, 32>}, {pipeline_mode = #tpu.pipeline_mode<synchronous>, transform_indices = @transform_4, window_bounds = array<i64: 96, 32>}, {pipeline_mode = #tpu.pipeline_mode<synchronous>, transform_indices = @transform_5, window_bounds = array<i64: 1, 96>}, {pipeline_mode = #tpu.pipeline_mode<synchronous>, transform_indices = @transform_6, window_bounds = array<i64: 32, 32>}, {pipeline_mode = #tpu.pipeline_mode<synchronous>, transform_indices = @transform_7, window_bounds = array<i64: 1, 32>}, {pipeline_mode = #tpu.pipeline_mode<synchronous>, transform_indices = @transform_8, window_bounds = array<i64: 32, 32>}, {pipeline_mode = #tpu.pipeline_mode<synchronous>, transform_indices = @transform_9, window_bounds = array<i64: 1, 32>}, {pipeline_mode = #tpu.pipeline_mode<synchronous>, transform_indices = @transform_10, window_bounds = array<i64: 1, 32>}, {pipeline_mode = #tpu.pipeline_mode<synchronous>, transform_indices = @transform_11, window_bounds = array<i64: 1, 32>}, {transform_indices = @transform_12, window_bounds = array<i64: 64, 32>}]} {
    %c0 = arith.constant 0 : index
    %c0_0 = arith.constant 0 : index
    %0 = vector.load %arg1[%c0, %c0_0] : memref<64x32xf32, #tpu.memory_space<vmem>>, vector<64x32xf32>
    %c0_1 = arith.constant 0 : index
    %c0_2 = arith.constant 0 : index
    %c0_3 = arith.constant 0 : index
    %1 = vector.load %arg2[%c0_1, %c0_2, %c0_3] : memref<8x1x8xf32, #tpu.memory_space<vmem>>, vector<8x1x8xf32>
    %cst = arith.constant -1.000000e+30 : f32
    %2 = vector.broadcast %cst : f32 to vector<8x1x8xf32>
    %3 = arith.mulf %1, %2 : vector<8x1x8xf32>
    %c0_4 = arith.constant 0 : index
    %c0_5 = arith.constant 0 : index
    %4 = vector.load %arg3[%c0_4, %c0_5] : memref<1x32xf32, #tpu.memory_space<vmem>>, vector<1x32xf32>
    %c0_6 = arith.constant 0 : index
    %c0_7 = arith.constant 0 : index
    %5 = vector.load %arg4[%c0_6, %c0_7] : memref<1x32xf32, #tpu.memory_space<vmem>>, vector<1x32xf32>
    %cst_8 = arith.constant dense<0.000000e+00> : vector<64xf32>
    %6 = vector.multi_reduction <add>, %0, %cst_8 [1] : vector<64x32xf32> to vector<64xf32>
    %7 = vector.shape_cast %6 : vector<64xf32> to vector<64x1xf32>
    %cst_9 = arith.constant 3.200000e+01 : f32
    %8 = vector.broadcast %cst_9 : f32 to vector<64x1xf32>
    %9 = arith.divf %7, %8 : vector<64x1xf32>
    %10 = vector.broadcast %9 : vector<64x1xf32> to vector<64x32xf32>
    %11 = arith.subf %0, %10 : vector<64x32xf32>
    %12 = arith.mulf %11, %11 : vector<64x32xf32>
    %cst_10 = arith.constant dense<0.000000e+00> : vector<64xf32>
    %13 = vector.multi_reduction <add>, %12, %cst_10 [1] : vector<64x32xf32> to vector<64xf32>
    %14 = vector.shape_cast %13 : vector<64xf32> to vector<64x1xf32>
    %cst_11 = arith.constant 3.200000e+01 : f32
    %15 = vector.broadcast %cst_11 : f32 to vector<64x1xf32>
    %16 = arith.divf %14, %15 : vector<64x1xf32>
    %17 = vector.broadcast %9 : vector<64x1xf32> to vector<64x32xf32>
    %18 = arith.subf %0, %17 : vector<64x32xf32>
    %cst_12 = arith.constant 9.99999974E-6 : f32
    %19 = vector.broadcast %cst_12 : f32 to vector<64x1xf32>
    %20 = arith.addf %16, %19 : vector<64x1xf32>
    %21 = math.rsqrt %20 : vector<64x1xf32>
    %22 = vector.broadcast %21 : vector<64x1xf32> to vector<64x32xf32>
    %23 = arith.mulf %18, %22 : vector<64x32xf32>
    %24 = vector.broadcast %4 : vector<1x32xf32> to vector<64x32xf32>
    %25 = arith.mulf %23, %24 : vector<64x32xf32>
    %26 = vector.broadcast %5 : vector<1x32xf32> to vector<64x32xf32>
    %27 = arith.addf %25, %26 : vector<64x32xf32>
    %c0_13 = arith.constant 0 : index
    %c0_14 = arith.constant 0 : index
    %28 = vector.load %arg5[%c0_13, %c0_14] : memref<96x32xf32, #tpu.memory_space<vmem>>, vector<96x32xf32>
    %cst_15 = arith.constant dense<0.000000e+00> : vector<64x96xf32>
    %29 = tpu.matmul %27, %28, %cst_15 {dimension_numbers = #tpu.dot_dimension_numbers<[1], [1], [0], [0], [0, 0, 1, 0], [], []>} : vector<64x32xf32>, vector<96x32xf32>, vector<64x96xf32> -> vector<64x96xf32>
    %c0_16 = arith.constant 0 : index
    %c0_17 = arith.constant 0 : index
    %30 = vector.load %arg6[%c0_16, %c0_17] : memref<1x96xf32, #tpu.memory_space<vmem>>, vector<1x96xf32>
    %31 = vector.broadcast %30 : vector<1x96xf32> to vector<64x96xf32>
    %32 = arith.addf %29, %31 : vector<64x96xf32>
    %33 = vector.extract_strided_slice %32 {offsets = [0, 0], sizes = [64, 8], strides = [1, 1]} : vector<64x96xf32> to vector<64x8xf32>
    %cst_18 = arith.constant 0.353553385 : f32
    %34 = vector.broadcast %cst_18 : f32 to vector<64x8xf32>
    %35 = arith.mulf %33, %34 : vector<64x8xf32>
    %36 = vector.shape_cast %35 : vector<64x8xf32> to vector<8x8x8xf32>
    %37 = vector.extract_strided_slice %32 {offsets = [0, 32], sizes = [64, 8], strides = [1, 1]} : vector<64x96xf32> to vector<64x8xf32>
    %38 = vector.shape_cast %37 : vector<64x8xf32> to vector<8x8x8xf32>
    %39 = vector.extract_strided_slice %32 {offsets = [0, 64], sizes = [64, 8], strides = [1, 1]} : vector<64x96xf32> to vector<64x8xf32>
    %40 = vector.shape_cast %39 : vector<64x8xf32> to vector<8x8x8xf32>
    "tpu.trace_start"() <{level = 10 : i32, message = "bqd,bkd->bqk"}> : () -> ()
    %cst_19 = arith.constant dense<0.000000e+00> : vector<8x8x8xf32>
    %41 = tpu.matmul %36, %38, %cst_19 {dimension_numbers = #tpu.dot_dimension_numbers<[2], [2], [1], [1], [0, 0, 0, 1, 1, 1], [0], [0]>} : vector<8x8x8xf32>, vector<8x8x8xf32>, vector<8x8x8xf32> -> vector<8x8x8xf32>
    "tpu.trace_stop"() : () -> ()
    %42 = vector.broadcast %3 : vector<8x1x8xf32> to vector<8x8x8xf32>
    %43 = arith.addf %41, %42 : vector<8x8x8xf32>
    %cst_20 = arith.constant dense<0xFF800000> : vector<8x8xf32>
    %44 = vector.multi_reduction <maximumf>, %43, %cst_20 [2] : vector<8x8x8xf32> to vector<8x8xf32>
    %45 = vector.shape_cast %44 : vector<8x8xf32> to vector<8x8x1xf32>
    %cst_21 = arith.constant 0.000000e+00 : f32
    %46 = vector.broadcast %cst_21 : f32 to vector<8x8x1xf32>
    %47 = arith.maximumf %45, %46 : vector<8x8x1xf32>
    %48 = vector.broadcast %47 : vector<8x8x1xf32> to vector<8x8x8xf32>
    %49 = arith.subf %43, %48 : vector<8x8x8xf32>
    %50 = math.exp %49 : vector<8x8x8xf32>
    %cst_22 = arith.constant dense<0.000000e+00> : vector<8x8xf32>
    %51 = vector.multi_reduction <add>, %50, %cst_22 [2] : vector<8x8x8xf32> to vector<8x8xf32>
    %52 = vector.shape_cast %51 : vector<8x8xf32> to vector<8x8x1xf32>
    %cst_23 = arith.constant 0.000000e+00 : f32
    %53 = vector.broadcast %cst_23 : f32 to vector<8x8x1xf32>
    %54 = arith.subf %53, %47 : vector<8x8x1xf32>
    %55 = math.exp %54 : vector<8x8x1xf32>
    %56 = arith.addf %52, %55 : vector<8x8x1xf32>
    %57 = tpu.reciprocal %56 {approx = true} : vector<8x8x1xf32> -> vector<8x8x1xf32>
    %58 = vector.broadcast %57 : vector<8x8x1xf32> to vector<8x8x8xf32>
    %59 = arith.mulf %50, %58 : vector<8x8x8xf32>
    "tpu.trace_start"() <{level = 10 : i32, message = "bqk,bkd->bqd"}> : () -> ()
    %cst_24 = arith.constant dense<0.000000e+00> : vector<8x8x8xf32>
    %60 = tpu.matmul %59, %40, %cst_24 {dimension_numbers = #tpu.dot_dimension_numbers<[2], [1], [1], [2], [0, 0, 0, 1, 1, 2], [0], [0]>} : vector<8x8x8xf32>, vector<8x8x8xf32>, vector<8x8x8xf32> -> vector<8x8x8xf32>
    "tpu.trace_stop"() : () -> ()
    %61 = vector.shape_cast %60 : vector<8x8x8xf32> to vector<64x8xf32>
    %c0_25 = arith.constant 0 : index
    %c0_26 = arith.constant 0 : index
    %62 = vector.load %arg14[%c0_25, %c0_26] : memref<64x32xf32, #tpu.memory_space<vmem>>, vector<64x8xf32>
    tpu.vector_store %arg14[%c0_25, %c0_26], %61 {strides = array<i32>} : memref<64x32xf32, #tpu.memory_space<vmem>>, vector<64x8xf32>,
    %63 = vector.extract_strided_slice %32 {offsets = [0, 8], sizes = [64, 8], strides = [1, 1]} : vector<64x96xf32> to vector<64x8xf32>
    %cst_27 = arith.constant 0.353553385 : f32
    %64 = vector.broadcast %cst_27 : f32 to vector<64x8xf32>
    %65 = arith.mulf %63, %64 : vector<64x8xf32>
    %66 = vector.shape_cast %65 : vector<64x8xf32> to vector<8x8x8xf32>
    %67 = vector.extract_strided_slice %32 {offsets = [0, 40], sizes = [64, 8], strides = [1, 1]} : vector<64x96xf32> to vector<64x8xf32>
    %68 = vector.shape_cast %67 : vector<64x8xf32> to vector<8x8x8xf32>
    %69 = vector.extract_strided_slice %32 {offsets = [0, 72], sizes = [64, 8], strides = [1, 1]} : vector<64x96xf32> to vector<64x8xf32>
    %70 = vector.shape_cast %69 : vector<64x8xf32> to vector<8x8x8xf32>
    "tpu.trace_start"() <{level = 10 : i32, message = "bqd,bkd->bqk"}> : () -> ()
    %cst_28 = arith.constant dense<0.000000e+00> : vector<8x8x8xf32>
    %71 = tpu.matmul %66, %68, %cst_28 {dimension_numbers = #tpu.dot_dimension_numbers<[2], [2], [1], [1], [0, 0, 0, 1, 1, 1], [0], [0]>} : vector<8x8x8xf32>, vector<8x8x8xf32>, vector<8x8x8xf32> -> vector<8x8x8xf32>
    "tpu.trace_stop"() : () -> ()
    %72 = vector.broadcast %3 : vector<8x1x8xf32> to vector<8x8x8xf32>
    %73 = arith.addf %71, %72 : vector<8x8x8xf32>
    %cst_29 = arith.constant dense<0xFF800000> : vector<8x8xf32>
    %74 = vector.multi_reduction <maximumf>, %73, %cst_29 [2] : vector<8x8x8xf32> to vector<8x8xf32>
    %75 = vector.shape_cast %74 : vector<8x8xf32> to vector<8x8x1xf32>
    %cst_30 = arith.constant 0.000000e+00 : f32
    %76 = vector.broadcast %cst_30 : f32 to vector<8x8x1xf32>
    %77 = arith.maximumf %75, %76 : vector<8x8x1xf32>
    %78 = vector.broadcast %77 : vector<8x8x1xf32> to vector<8x8x8xf32>
    %79 = arith.subf %73, %78 : vector<8x8x8xf32>
    %80 = math.exp %79 : vector<8x8x8xf32>
    %cst_31 = arith.constant dense<0.000000e+00> : vector<8x8xf32>
    %81 = vector.multi_reduction <add>, %80, %cst_31 [2] : vector<8x8x8xf32> to vector<8x8xf32>
    %82 = vector.shape_cast %81 : vector<8x8xf32> to vector<8x8x1xf32>
    %cst_32 = arith.constant 0.000000e+00 : f32
    %83 = vector.broadcast %cst_32 : f32 to vector<8x8x1xf32>
    %84 = arith.subf %83, %77 : vector<8x8x1xf32>
    %85 = math.exp %84 : vector<8x8x1xf32>
    %86 = arith.addf %82, %85 : vector<8x8x1xf32>
    %87 = tpu.reciprocal %86 {approx = true} : vector<8x8x1xf32> -> vector<8x8x1xf32>
    %88 = vector.broadcast %87 : vector<8x8x1xf32> to vector<8x8x8xf32>
    %89 = arith.mulf %80, %88 : vector<8x8x8xf32>
    "tpu.trace_start"() <{level = 10 : i32, message = "bqk,bkd->bqd"}> : () -> ()
    %cst_33 = arith.constant dense<0.000000e+00> : vector<8x8x8xf32>
    %90 = tpu.matmul %89, %70, %cst_33 {dimension_numbers = #tpu.dot_dimension_numbers<[2], [1], [1], [2], [0, 0, 0, 1, 1, 2], [0], [0]>} : vector<8x8x8xf32>, vector<8x8x8xf32>, vector<8x8x8xf32> -> vector<8x8x8xf32>
    "tpu.trace_stop"() : () -> ()
    %91 = vector.shape_cast %90 : vector<8x8x8xf32> to vector<64x8xf32>
    %c0_34 = arith.constant 0 : index
    %c8 = arith.constant 8 : index
    %92 = vector.load %arg14[%c0_34, %c8] : memref<64x32xf32, #tpu.memory_space<vmem>>, vector<64x8xf32>
    tpu.vector_store %arg14[%c0_34, %c8], %91 {strides = array<i32>} : memref<64x32xf32, #tpu.memory_space<vmem>>, vector<64x8xf32>,
    %93 = vector.extract_strided_slice %32 {offsets = [0, 16], sizes = [64, 8], strides = [1, 1]} : vector<64x96xf32> to vector<64x8xf32>
    %cst_35 = arith.constant 0.353553385 : f32
    %94 = vector.broadcast %cst_35 : f32 to vector<64x8xf32>
    %95 = arith.mulf %93, %94 : vector<64x8xf32>
    %96 = vector.shape_cast %95 : vector<64x8xf32> to vector<8x8x8xf32>
    %97 = vector.extract_strided_slice %32 {offsets = [0, 48], sizes = [64, 8], strides = [1, 1]} : vector<64x96xf32> to vector<64x8xf32>
    %98 = vector.shape_cast %97 : vector<64x8xf32> to vector<8x8x8xf32>
    %99 = vector.extract_strided_slice %32 {offsets = [0, 80], sizes = [64, 8], strides = [1, 1]} : vector<64x96xf32> to vector<64x8xf32>
    %100 = vector.shape_cast %99 : vector<64x8xf32> to vector<8x8x8xf32>
    "tpu.trace_start"() <{level = 10 : i32, message = "bqd,bkd->bqk"}> : () -> ()
    %cst_36 = arith.constant dense<0.000000e+00> : vector<8x8x8xf32>
    %101 = tpu.matmul %96, %98, %cst_36 {dimension_numbers = #tpu.dot_dimension_numbers<[2], [2], [1], [1], [0, 0, 0, 1, 1, 1], [0], [0]>} : vector<8x8x8xf32>, vector<8x8x8xf32>, vector<8x8x8xf32> -> vector<8x8x8xf32>
    "tpu.trace_stop"() : () -> ()
    %102 = vector.broadcast %3 : vector<8x1x8xf32> to vector<8x8x8xf32>
    %103 = arith.addf %101, %102 : vector<8x8x8xf32>
    %cst_37 = arith.constant dense<0xFF800000> : vector<8x8xf32>
    %104 = vector.multi_reduction <maximumf>, %103, %cst_37 [2] : vector<8x8x8xf32> to vector<8x8xf32>
    %105 = vector.shape_cast %104 : vector<8x8xf32> to vector<8x8x1xf32>
    %cst_38 = arith.constant 0.000000e+00 : f32
    %106 = vector.broadcast %cst_38 : f32 to vector<8x8x1xf32>
    %107 = arith.maximumf %105, %106 : vector<8x8x1xf32>
    %108 = vector.broadcast %107 : vector<8x8x1xf32> to vector<8x8x8xf32>
    %109 = arith.subf %103, %108 : vector<8x8x8xf32>
    %110 = math.exp %109 : vector<8x8x8xf32>
    %cst_39 = arith.constant dense<0.000000e+00> : vector<8x8xf32>
    %111 = vector.multi_reduction <add>, %110, %cst_39 [2] : vector<8x8x8xf32> to vector<8x8xf32>
    %112 = vector.shape_cast %111 : vector<8x8xf32> to vector<8x8x1xf32>
    %cst_40 = arith.constant 0.000000e+00 : f32
    %113 = vector.broadcast %cst_40 : f32 to vector<8x8x1xf32>
    %114 = arith.subf %113, %107 : vector<8x8x1xf32>
    %115 = math.exp %114 : vector<8x8x1xf32>
    %116 = arith.addf %112, %115 : vector<8x8x1xf32>
    %117 = tpu.reciprocal %116 {approx = true} : vector<8x8x1xf32> -> vector<8x8x1xf32>
    %118 = vector.broadcast %117 : vector<8x8x1xf32> to vector<8x8x8xf32>
    %119 = arith.mulf %110, %118 : vector<8x8x8xf32>
    "tpu.trace_start"() <{level = 10 : i32, message = "bqk,bkd->bqd"}> : () -> ()
    %cst_41 = arith.constant dense<0.000000e+00> : vector<8x8x8xf32>
    %120 = tpu.matmul %119, %100, %cst_41 {dimension_numbers = #tpu.dot_dimension_numbers<[2], [1], [1], [2], [0, 0, 0, 1, 1, 2], [0], [0]>} : vector<8x8x8xf32>, vector<8x8x8xf32>, vector<8x8x8xf32> -> vector<8x8x8xf32>
    "tpu.trace_stop"() : () -> ()
    %121 = vector.shape_cast %120 : vector<8x8x8xf32> to vector<64x8xf32>
    %c0_42 = arith.constant 0 : index
    %c16 = arith.constant 16 : index
    %122 = vector.load %arg14[%c0_42, %c16] : memref<64x32xf32, #tpu.memory_space<vmem>>, vector<64x8xf32>
    tpu.vector_store %arg14[%c0_42, %c16], %121 {strides = array<i32>} : memref<64x32xf32, #tpu.memory_space<vmem>>, vector<64x8xf32>,
    %123 = vector.extract_strided_slice %32 {offsets = [0, 24], sizes = [64, 8], strides = [1, 1]} : vector<64x96xf32> to vector<64x8xf32>
    %cst_43 = arith.constant 0.353553385 : f32
    %124 = vector.broadcast %cst_43 : f32 to vector<64x8xf32>
    %125 = arith.mulf %123, %124 : vector<64x8xf32>
    %126 = vector.shape_cast %125 : vector<64x8xf32> to vector<8x8x8xf32>
    %127 = vector.extract_strided_slice %32 {offsets = [0, 56], sizes = [64, 8], strides = [1, 1]} : vector<64x96xf32> to vector<64x8xf32>
    %128 = vector.shape_cast %127 : vector<64x8xf32> to vector<8x8x8xf32>
    %129 = vector.extract_strided_slice %32 {offsets = [0, 88], sizes = [64, 8], strides = [1, 1]} : vector<64x96xf32> to vector<64x8xf32>
    %130 = vector.shape_cast %129 : vector<64x8xf32> to vector<8x8x8xf32>
    "tpu.trace_start"() <{level = 10 : i32, message = "bqd,bkd->bqk"}> : () -> ()
    %cst_44 = arith.constant dense<0.000000e+00> : vector<8x8x8xf32>
    %131 = tpu.matmul %126, %128, %cst_44 {dimension_numbers = #tpu.dot_dimension_numbers<[2], [2], [1], [1], [0, 0, 0, 1, 1, 1], [0], [0]>} : vector<8x8x8xf32>, vector<8x8x8xf32>, vector<8x8x8xf32> -> vector<8x8x8xf32>
    "tpu.trace_stop"() : () -> ()
    %132 = vector.broadcast %3 : vector<8x1x8xf32> to vector<8x8x8xf32>
    %133 = arith.addf %131, %132 : vector<8x8x8xf32>
    %cst_45 = arith.constant dense<0xFF800000> : vector<8x8xf32>
    %134 = vector.multi_reduction <maximumf>, %133, %cst_45 [2] : vector<8x8x8xf32> to vector<8x8xf32>
    %135 = vector.shape_cast %134 : vector<8x8xf32> to vector<8x8x1xf32>
    %cst_46 = arith.constant 0.000000e+00 : f32
    %136 = vector.broadcast %cst_46 : f32 to vector<8x8x1xf32>
    %137 = arith.maximumf %135, %136 : vector<8x8x1xf32>
    %138 = vector.broadcast %137 : vector<8x8x1xf32> to vector<8x8x8xf32>
    %139 = arith.subf %133, %138 : vector<8x8x8xf32>
    %140 = math.exp %139 : vector<8x8x8xf32>
    %cst_47 = arith.constant dense<0.000000e+00> : vector<8x8xf32>
    %141 = vector.multi_reduction <add>, %140, %cst_47 [2] : vector<8x8x8xf32> to vector<8x8xf32>
    %142 = vector.shape_cast %141 : vector<8x8xf32> to vector<8x8x1xf32>
    %cst_48 = arith.constant 0.000000e+00 : f32
    %143 = vector.broadcast %cst_48 : f32 to vector<8x8x1xf32>
    %144 = arith.subf %143, %137 : vector<8x8x1xf32>
    %145 = math.exp %144 : vector<8x8x1xf32>
    %146 = arith.addf %142, %145 : vector<8x8x1xf32>
    %147 = tpu.reciprocal %146 {approx = true} : vector<8x8x1xf32> -> vector<8x8x1xf32>
    %148 = vector.broadcast %147 : vector<8x8x1xf32> to vector<8x8x8xf32>
    %149 = arith.mulf %140, %148 : vector<8x8x8xf32>
    "tpu.trace_start"() <{level = 10 : i32, message = "bqk,bkd->bqd"}> : () -> ()
    %cst_49 = arith.constant dense<0.000000e+00> : vector<8x8x8xf32>
    %150 = tpu.matmul %149, %130, %cst_49 {dimension_numbers = #tpu.dot_dimension_numbers<[2], [1], [1], [2], [0, 0, 0, 1, 1, 2], [0], [0]>} : vector<8x8x8xf32>, vector<8x8x8xf32>, vector<8x8x8xf32> -> vector<8x8x8xf32>
    "tpu.trace_stop"() : () -> ()
    %151 = vector.shape_cast %150 : vector<8x8x8xf32> to vector<64x8xf32>
    %c0_50 = arith.constant 0 : index
    %c24 = arith.constant 24 : index
    %152 = vector.load %arg14[%c0_50, %c24] : memref<64x32xf32, #tpu.memory_space<vmem>>, vector<64x8xf32>
    tpu.vector_store %arg14[%c0_50, %c24], %151 {strides = array<i32>} : memref<64x32xf32, #tpu.memory_space<vmem>>, vector<64x8xf32>,
    %c0_51 = arith.constant 0 : index
    %c0_52 = arith.constant 0 : index
    %153 = vector.load %arg14[%c0_51, %c0_52] : memref<64x32xf32, #tpu.memory_space<vmem>>, vector<64x32xf32>
    %c0_53 = arith.constant 0 : index
    %c0_54 = arith.constant 0 : index
    %154 = vector.load %arg7[%c0_53, %c0_54] : memref<32x32xf32, #tpu.memory_space<vmem>>, vector<32x32xf32>
    %cst_55 = arith.constant dense<0.000000e+00> : vector<64x32xf32>
    %155 = tpu.matmul %153, %154, %cst_55 {dimension_numbers = #tpu.dot_dimension_numbers<[1], [1], [0], [0], [0, 0, 1, 0], [], []>} : vector<64x32xf32>, vector<32x32xf32>, vector<64x32xf32> -> vector<64x32xf32>
    %c0_56 = arith.constant 0 : index
    %c0_57 = arith.constant 0 : index
    %156 = vector.load %arg8[%c0_56, %c0_57] : memref<1x32xf32, #tpu.memory_space<vmem>>, vector<1x32xf32>
    %157 = vector.broadcast %156 : vector<1x32xf32> to vector<64x32xf32>
    %158 = arith.addf %155, %157 : vector<64x32xf32>
    %159 = arith.addf %158, %0 : vector<64x32xf32>
    %c0_58 = arith.constant 0 : index
    %c0_59 = arith.constant 0 : index
    %160 = vector.load %arg9[%c0_58, %c0_59] : memref<32x32xf32, #tpu.memory_space<vmem>>, vector<32x32xf32>
    %cst_60 = arith.constant dense<0.000000e+00> : vector<64x32xf32>
    %161 = tpu.matmul %159, %160, %cst_60 {dimension_numbers = #tpu.dot_dimension_numbers<[1], [1], [0], [0], [0, 0, 1, 0], [], []>} : vector<64x32xf32>, vector<32x32xf32>, vector<64x32xf32> -> vector<64x32xf32>
    %c0_61 = arith.constant 0 : index
    %c0_62 = arith.constant 0 : index
    %162 = vector.load %arg10[%c0_61, %c0_62] : memref<1x32xf32, #tpu.memory_space<vmem>>, vector<1x32xf32>
    %163 = vector.broadcast %162 : vector<1x32xf32> to vector<64x32xf32>
    %164 = arith.addf %161, %163 : vector<64x32xf32>
    %cst_63 = arith.constant 0.000000e+00 : f32
    %165 = vector.broadcast %cst_63 : f32 to vector<64x32xf32>
    %166 = arith.maximumf %164, %165 : vector<64x32xf32>
    %c0_64 = arith.constant 0 : index
    %c0_65 = arith.constant 0 : index
    %167 = vector.load %arg11[%c0_64, %c0_65] : memref<1x32xf32, #tpu.memory_space<vmem>>, vector<1x32xf32>
    %c0_66 = arith.constant 0 : index
    %c0_67 = arith.constant 0 : index
    %168 = vector.load %arg12[%c0_66, %c0_67] : memref<1x32xf32, #tpu.memory_space<vmem>>, vector<1x32xf32>
    %cst_68 = arith.constant dense<0.000000e+00> : vector<64xf32>
    %169 = vector.multi_reduction <add>, %166, %cst_68 [1] : vector<64x32xf32> to vector<64xf32>
    %170 = vector.shape_cast %169 : vector<64xf32> to vector<64x1xf32>
    %cst_69 = arith.constant 3.200000e+01 : f32
    %171 = vector.broadcast %cst_69 : f32 to vector<64x1xf32>
    %172 = arith.divf %170, %171 : vector<64x1xf32>
    %173 = vector.broadcast %172 : vector<64x1xf32> to vector<64x32xf32>
    %174 = arith.subf %166, %173 : vector<64x32xf32>
    %175 = arith.mulf %174, %174 : vector<64x32xf32>
    %cst_70 = arith.constant dense<0.000000e+00> : vector<64xf32>
    %176 = vector.multi_reduction <add>, %175, %cst_70 [1] : vector<64x32xf32> to vector<64xf32>
    %177 = vector.shape_cast %176 : vector<64xf32> to vector<64x1xf32>
    %cst_71 = arith.constant 3.200000e+01 : f32
    %178 = vector.broadcast %cst_71 : f32 to vector<64x1xf32>
    %179 = arith.divf %177, %178 : vector<64x1xf32>
    %180 = vector.broadcast %172 : vector<64x1xf32> to vector<64x32xf32>
    %181 = arith.subf %166, %180 : vector<64x32xf32>
    %cst_72 = arith.constant 9.99999974E-6 : f32
    %182 = vector.broadcast %cst_72 : f32 to vector<64x1xf32>
    %183 = arith.addf %179, %182 : vector<64x1xf32>
    %184 = math.rsqrt %183 : vector<64x1xf32>
    %185 = vector.broadcast %184 : vector<64x1xf32> to vector<64x32xf32>
    %186 = arith.mulf %181, %185 : vector<64x32xf32>
    %187 = vector.broadcast %167 : vector<1x32xf32> to vector<64x32xf32>
    %188 = arith.mulf %186, %187 : vector<64x32xf32>
    %189 = vector.broadcast %168 : vector<1x32xf32> to vector<64x32xf32>
    %190 = arith.addf %188, %189 : vector<64x32xf32>
    %c0_73 = arith.constant 0 : index
    %c0_74 = arith.constant 0 : index
    %191 = vector.load %arg13[%c0_73, %c0_74] : memref<64x32xf32, #tpu.memory_space<vmem>>, vector<64x32xf32>
    tpu.vector_store %arg13[%c0_73, %c0_74], %190 {strides = array<i32>} : memref<64x32xf32, #tpu.memory_space<vmem>>, vector<64x32xf32>,
    return
  }
  func.func @transform_0(%arg0: i32) -> (i32, i32) {
    %c0_i32 = arith.constant 0 : i32
    %c0_i32_0 = arith.constant 0 : i32
    return %arg0, %c0_i32 : i32, i32
  }
  func.func @transform_1(%arg0: i32) -> (i32, i32, i32) {
    %c0_i32 = arith.constant 0 : i32
    %c0_i32_0 = arith.constant 0 : i32
    %c0_i32_1 = arith.constant 0 : i32
    return %arg0, %c0_i32, %c0_i32_0 : i32, i32, i32
  }
  func.func @transform_2(%arg0: i32) -> (i32, i32) {
    %c0_i32 = arith.constant 0 : i32
    %c0_i32_0 = arith.constant 0 : i32
    %c0_i32_1 = arith.constant 0 : i32
    return %c0_i32, %c0_i32_0 : i32, i32
  }
  func.func @transform_3(%arg0: i32) -> (i32, i32) {
    %c0_i32 = arith.constant 0 : i32
    %c0_i32_0 = arith.constant 0 : i32
    %c0_i32_1 = arith.constant 0 : i32
    return %c0_i32, %c0_i32_0 : i32, i32
  }
  func.func @transform_4(%arg0: i32) -> (i32, i32) {
    %c0_i32 = arith.constant 0 : i32
    %c0_i32_0 = arith.constant 0 : i32
    %c0_i32_1 = arith.constant 0 : i32
    return %c0_i32, %c0_i32_0 : i32, i32
  }
  func.func @transform_5(%arg0: i32) -> (i32, i32) {
    %c0_i32 = arith.constant 0 : i32
    %c0_i32_0 = arith.constant 0 : i32
    %c0_i32_1 = arith.constant 0 : i32
    return %c0_i32, %c0_i32_0 : i32, i32
  }
  func.func @transform_6(%arg0: i32) -> (i32, i32) {
    %c0_i32 = arith.constant 0 : i32
    %c0_i32_0 = arith.constant 0 : i32
    %c0_i32_1 = arith.constant 0 : i32
    return %c0_i32, %c0_i32_0 : i32, i32
  }
  func.func @transform_7(%arg0: i32) -> (i32, i32) {
    %c0_i32 = arith.constant 0 : i32
    %c0_i32_0 = arith.constant 0 : i32
    %c0_i32_1 = arith.constant 0 : i32
    return %c0_i32, %c0_i32_0 : i32, i32
  }
  func.func @transform_8(%arg0: i32) -> (i32, i32) {
    %c0_i32 = arith.constant 0 : i32
    %c0_i32_0 = arith.constant 0 : i32
    %c0_i32_1 = arith.constant 0 : i32
    return %c0_i32, %c0_i32_0 : i32, i32
  }
  func.func @transform_9(%arg0: i32) -> (i32, i32) {
    %c0_i32 = arith.constant 0 : i32
    %c0_i32_0 = arith.constant 0 : i32
    %c0_i32_1 = arith.constant 0 : i32
    return %c0_i32, %c0_i32_0 : i32, i32
  }
  func.func @transform_10(%arg0: i32) -> (i32, i32) {
    %c0_i32 = arith.constant 0 : i32
    %c0_i32_0 = arith.constant 0 : i32
    %c0_i32_1 = arith.constant 0 : i32
    return %c0_i32, %c0_i32_0 : i32, i32
  }
  func.func @transform_11(%arg0: i32) -> (i32, i32) {
    %c0_i32 = arith.constant 0 : i32
    %c0_i32_0 = arith.constant 0 : i32
    %c0_i32_1 = arith.constant 0 : i32
    return %c0_i32, %c0_i32_0 : i32, i32
  }
  func.func @transform_12(%arg0: i32) -> (i32, i32) {
    %c0_i32 = arith.constant 0 : i32
    %c0_i32_0 = arith.constant 0 : i32
    return %arg0, %c0_i32 : i32, i32
  }
}

</mosaic_0001>

<bundles_post_ra>
// kernel: tpu_custom_call.1
= control target key start
LH: loop header
LB: loop body
LE: loop exit
PB: predicated region body
PF: predicated region fallthrough
CT: control target
= control target key end

     0   :  { %s8015_s21 = smov 0   ;;  %s9508_s0 = inlined_call_operand.vmem [shape: f32[128,32], index: 0, kind: input, shape index: {}]   ;;  %s9509_s1 = inlined_call_operand.vmem [shape: f32[16,1,8], index: 1, kind: input, shape index: {}]   ;;  %s9510_s2 = inlined_call_operand.vmem [shape: f32[1,32], index: 2, kind: input, shape index: {}]   ;;  %s9511_s3 = inlined_call_operand.vmem [shape: f32[1,32], index: 3, kind: input, shape index: {}]   ;;  %s9512_s4 = inlined_call_operand.vmem [shape: f32[96,32], index: 4, kind: input, shape index: {}]   ;;  %s9513_s5 = inlined_call_operand.vmem [shape: f32[1,96], index: 5, kind: input, shape index: {}]   ;;  %s9514_s6 = inlined_call_operand.vmem [shape: f32[32,32], index: 6, kind: input, shape index: {}]   ;;  %s9515_s7 = inlined_call_operand.vmem [shape: f32[1,32], index: 7, kind: input, shape index: {}]   ;;  %s9516_s8 = inlined_call_operand.vmem [shape: f32[32,32], index: 8, kind: input, shape index: {}]   ;;  %s9517_s9 = inlined_call_operand.vmem [shape: f32[1,32], index: 9, kind: input, shape index: {}]   ;;  %s9518_s10 = inlined_call_operand.vmem [shape: f32[1,32], index: 10, kind: input, shape index: {}]   ;;  %s9519_s11 = inlined_call_operand.vmem [shape: f32[1,32], index: 11, kind: input, shape index: {}]   ;;  %s9520_s12 = inlined_call_operand.vmem [shape: f32[128,32], index: 12, kind: output, shape index: {}]  }
   0x1 LB: > { %s6943_s22 = sadd.s32 4294967295, %s7932_s21   ;;  %p6947_p0 = scmp.ge.s32.totalorder %s7932_s21, 1  ;;  %s7932_s21 = sphi %s8015_s21, %s22_s21  }
   0x2   : > { %p373_p1 = scmp.lt.s32.totalorder %s7932_s21, 3 }
   0x4   : > { %p374_p2 = pnand %p6947_p0, %p373_p1 }
   0x5   : > { %s6948_s23 = sshll.u32 (!%p374_p2), %s6943_s22, 3  ;;  %s7936_s30 = smov (!%p374_p2), 96  }
   0x6   : > { %377 = sbr.rel (%p374_p2) target bundleno = 4026 (0xfba), region = 68  ;;  %p420_p3 = scmp.lt.s32.totalorder (!%p374_p2), %s6948_s23, 15 }
   0x7   : > { %s7937_s13 = smov (!%p374_p2), 64   ;;  %s7938_s14 = smov (!%p374_p2), 88  }
   0x8   : > { %s7939_s18 = smov (!%p374_p2), 120   ;;  %s7940_s19 = smov (!%p374_p2), 56  }
   0x9   : > { %s7941_s20 = smov (!%p374_p2), 80   ;;  %s7942_s22 = smov (!%p374_p2), 112  }
   0xa   : > { %s7943_s25 = smov (!%p374_p2), 48   ;;  %s7944_s26 = smov (!%p374_p2), 72  }
   0xb   : > { %s9545_s23 = smov (!%p420_p3, %s6948_s23), 15  ;;  %vm462_vm0 = vcmask 261120   ;;  %v607_v16 = vld [vmem:[%s9512_s4 + $0x58] sm:$0xff]  ;;  %v606_v17 = vld [vmem:[%s9512_s4 + $0x50] sm:$0xff]  ;;  %v605_v18 = vld [vmem:[%s9512_s4 + $0x48] sm:$0xff]  ;;  %vm7935_vm1 = vmmov 0  }
   0xc   : > { %s6949_s24 = sshll.u32 %s9545_s23, 3  ;;  %7274 = vmatprep.subr.msk.mxu0 %vm462_vm0, %v607_v16  ;;  %v604_v19 = vld [vmem:[%s9512_s4 + $0x40] sm:$0xff]  ;;  %v603_v20 = vld [vmem:[%s9512_s4 + $0x38] sm:$0xff]  ;;  %v602_v59 = vld [vmem:[%s9512_s4 + $0x30] sm:$0xff]  ;;  %vm839_vm2 = vcmask 64512   ;;  %s8302_s17 = scalar_lea.vmem %s9509_s1, %s9545_s23  ;;  %vm3597_vm3 = vcmask 130112  }
   0xd   : > { %s8031_s27 = scalar_lea.vmem %s9508_s0, %s6949_s24  ;;  %7275 = vmatpush3.xpose.msk.msra.mxu0 %vm462_vm0, %v607_v16  ;;  %v601_v62 = vld [vmem:[%s9512_s4 + $0x28] sm:$0xff]  ;;  %v600_v63 = vld [vmem:[%s9512_s4 + $0x20] sm:$0xff]  ;;  %s7945_s28 = smov 104   ;;  %vm4998_vm4 = vcmask 195712   ;;  %vm6399_vm5 = vcmask 261312  }
   0xe   : > { %v436_v0 = vld [vmem:[%s8031_s27] sm:$0xff]  ;;  %v438_v1 = vld [vmem:[%s8031_s27 + $0x10] sm:$0xff]  ;;  %v437_v2 = vld [vmem:[%s8031_s27 + $0x8] sm:$0xff]  ;;  %7276 = vmatprep.subr.msk.mxu0 %vm462_vm0, %v606_v17  ;;  %s7946_s29 = smov 40  }
   0xf   : > { %v463_v3 = vsel %vm462_vm0, %v436_v0, 0.0  ;;  %v469_v4 = vsel %vm462_vm0, %v438_v1, 0.0  ;;  %v439_v5 = vld [vmem:[%s8031_s27 + $0x18] sm:$0xff]  ;;  %v466_v6 = vsel %vm462_vm0, %v437_v2, 0.0  ;;  %v440_v8 = vld [vmem:[%s8031_s27 + $0x20] sm:$0xff]  ;;  %v441_v9 = vld [vmem:[%s8031_s27 + $0x28] sm:$0xff] }
  0x10   : > { %464 = vadd.xlane.f32.xlu0 %v463_v3  ;;  %470 = vadd.xlane.f32.xlu1 %v469_v4  ;;  %v472_v7 = vsel %vm462_vm0, %v439_v5, 0.0  ;;  %v475_v10 = vsel %vm462_vm0, %v440_v8, 0.0  ;;  %v478_v11 = vsel %vm462_vm0, %v441_v9, 0.0  ;;  %v442_v12 = vld [vmem:[%s8031_s27 + $0x30] sm:$0xff]  ;;  %v443_v13 = vld [vmem:[%s8031_s27 + $0x38] sm:$0xff]  ;;  %v596_v3 = vld [vmem:[%s9512_s4] sm:$0xff] }
  0x11   : > { %v481_v14 = vsel %vm462_vm0, %v442_v12, 0.0  ;;  %v484_v15 = vsel %vm462_vm0, %v443_v13, 0.0  ;;  %7277 = vmatpush3.xpose.msk.msra.mxu0 %vm462_vm0, %v606_v17 }
  0x12   : > { %7278 = vmatprep.subr.msk.mxu0 %vm462_vm0, %v605_v18 }
  0x14   : > { %467 = vadd.xlane.f32.xlu0 %v466_v6  ;;  %473 = vadd.xlane.f32.xlu1 %v472_v7 }
  0x15   : > { %7279 = vmatpush3.xpose.msk.msra.mxu0 %vm462_vm0, %v605_v18 }
  0x16   : > { %7280 = vmatprep.subr.msk.mxu0 %vm462_vm0, %v604_v19 }
  0x18   : > { %476 = vadd.xlane.f32.xlu0 %v475_v10  ;;  %479 = vadd.xlane.f32.xlu1 %v478_v11 }
  0x19   : > { %7281 = vmatpush3.xpose.msk.msra.mxu0 %vm462_vm0, %v604_v19 }
  0x1a   : > { %7282 = vmatprep.subr.msk.mxu0 %vm462_vm0, %v603_v20 }
  0x1c   : > { %482 = vadd.xlane.f32.xlu0 %v481_v14  ;;  %485 = vadd.xlane.f32.xlu1 %v484_v15 }
  0x1d   : > { %7283 = vmatpush3.xpose.msk.msra.mxu0 %vm462_vm0, %v603_v20 }
  0x1e   : > { %7284 = vmatprep.subr.msk.mxu0 %vm462_vm0, %v602_v59 }
  0x21   : > { %7285 = vmatpush3.xpose.msk.msra.mxu0 %vm462_vm0, %v602_v59 }
  0x22   : > { %7286 = vmatprep.subr.msk.mxu0 %vm462_vm0, %v601_v62 }
  0x25   : > { %7287 = vmatpush3.xpose.msk.msra.mxu0 %vm462_vm0, %v601_v62 }
  0x26   : > { %7288 = vmatprep.subr.msk.mxu0 %vm462_vm0, %v600_v63 }
  0x29   : > { %7289 = vmatpush3.xpose.msk.msra.mxu0 %vm462_vm0, %v600_v63 }
  0x99   : > { %v465_v21 = vpop.xlane.xlu0 %464  ;;  %v471_v22 = vpop.xlane.xlu1 %470 }
  0x9a   : > { %v488_v23 = vmul.f32 0.03125, %v465_v21  ;;  %v490_v24 = vmul.f32 0.03125, %v471_v22 }
  0x9c   : > { %v8074_v25 = vsub.f32 %v436_v0, %v488_v23  ;;  %v8076_v26 = vsub.f32 %v438_v1, %v490_v24  ;;  %v599_v0 = vld [vmem:[%s9512_s4 + $0x18] sm:$0xff]  ;;  %v598_v1 = vld [vmem:[%s9512_s4 + $0x10] sm:$0xff] }
  0x9d   : > { %v468_v27 = vpop.xlane.xlu0 %467  ;;  %v474_v28 = vpop.xlane.xlu1 %473  ;;  %7290 = vmatprep.subr.msk.mxu0 %vm462_vm0, %v599_v0 }
  0x9e   : > { %v489_v29 = vmul.f32 0.03125, %v468_v27  ;;  %v491_v30 = vmul.f32 0.03125, %v474_v28  ;;  %v504_v31 = vmul.f32 %v8074_v25, %v8074_v25  ;;  %v506_v32 = vmul.f32 %v8076_v26, %v8076_v26  ;;  %7291 = vmatpush3.xpose.msk.msra.mxu0 %vm462_vm0, %v599_v0 }
  0x9f   : > { %7292 = vmatprep.subr.msk.mxu0 %vm462_vm0, %v598_v1 }
  0xa0   : > { %v8082_v33 = vsub.f32 %v437_v2, %v489_v29  ;;  %v8084_v34 = vsub.f32 %v439_v5, %v491_v30  ;;  %v512_v35 = vsel %vm462_vm0, %v504_v31, 0.0  ;;  %v518_v38 = vsel %vm462_vm0, %v506_v32, 0.0  ;;  %v597_v2 = vld [vmem:[%s9512_s4 + $0x8] sm:$0xff]  ;;  %v6953_v30 = vld [vmem:[%s9510_s2] ss:$0 sm:$0xff] }
  0xa1   : > { %513 = vadd.xlane.f32.xlu0 %v512_v35  ;;  %v477_v36 = vpop.xlane.xlu0 %476  ;;  %v480_v37 = vpop.xlane.xlu1 %479  ;;  %v6954_v35 = vld [vmem:[%s9511_s3] ss:$0 sm:$0xff] }
  0xa2   : > { %v492_v39 = vmul.f32 0.03125, %v477_v36  ;;  %v493_v40 = vmul.f32 0.03125, %v480_v37  ;;  %v505_v41 = vmul.f32 %v8082_v33, %v8082_v33  ;;  %v507_v42 = vmul.f32 %v8084_v34, %v8084_v34  ;;  %7293 = vmatpush3.xpose.msk.msra.mxu0 %vm462_vm0, %v598_v1 }
  0xa3   : > { %7294 = vmatprep.subr.msk.mxu0 %vm462_vm0, %v597_v2 }
  0xa4   : > { %v8092_v43 = vsub.f32 %v440_v8, %v492_v39  ;;  %v8094_v44 = vsub.f32 %v441_v9, %v493_v40  ;;  %v515_v45 = vsel %vm462_vm0, %v505_v41, 0.0  ;;  %v521_v48 = vsel %vm462_vm0, %v507_v42, 0.0 }
  0xa5   : > { %519 = vadd.xlane.f32.xlu0 %v518_v38  ;;  %516 = vadd.xlane.f32.xlu1 %v515_v45  ;;  %v483_v46 = vpop.xlane.xlu0 %482  ;;  %v486_v47 = vpop.xlane.xlu1 %485 }
  0xa6   : > { %v494_v49 = vmul.f32 0.03125, %v483_v46  ;;  %v495_v50 = vmul.f32 0.03125, %v486_v47  ;;  %v508_v51 = vmul.f32 %v8092_v43, %v8092_v43  ;;  %v509_v52 = vmul.f32 %v8094_v44, %v8094_v44  ;;  %7295 = vmatpush3.xpose.msk.msra.mxu0 %vm462_vm0, %v597_v2 }
  0xa7   : > { %7296 = vmatprep.subr.msk.mxu0 %vm462_vm0, %v596_v3 }
  0xa8   : > { %v8102_v53 = vsub.f32 %v442_v12, %v494_v49  ;;  %v8104_v54 = vsub.f32 %v443_v13, %v495_v50  ;;  %v524_v55 = vsel %vm462_vm0, %v508_v51, 0.0  ;;  %v527_v56 = vsel %vm462_vm0, %v509_v52, 0.0 }
  0xa9   : > { %522 = vadd.xlane.f32.xlu1 %v521_v48  ;;  %525 = vadd.xlane.f32.xlu0 %v524_v55 }
  0xaa   : > { %v510_v57 = vmul.f32 %v8102_v53, %v8102_v53  ;;  %v511_v58 = vmul.f32 %v8104_v54, %v8104_v54  ;;  %7297 = vmatpush3.xpose.msk.msra.mxu0 %vm462_vm0, %v596_v3 }
  0xac   : > { %v530_v60 = vsel %vm462_vm0, %v510_v57, 0.0  ;;  %v533_v61 = vsel %vm462_vm0, %v511_v58, 0.0 }
  0xad   : > { %528 = vadd.xlane.f32.xlu1 %v527_v56  ;;  %531 = vadd.xlane.f32.xlu0 %v530_v60 }
  0xb1   : > { %534 = vadd.xlane.f32.xlu1 %v533_v61 }
 0x12a   : > { %v514_v4 = vpop.xlane.xlu0 %513 }
 0x12b   : > { %v536_v5 = vmul.f32 0.03125, %v514_v4 }
 0x12d   : > { %v544_v6 = vadd.f32 1e-05, %v536_v5 }
 0x12e   : > { %v517_v7 = vpop.xlane.xlu1 %516  ;;  %v520_v8 = vpop.xlane.xlu0 %519 }
 0x12f   : > { %7694 = vrsqrt.f32 %v544_v6  ;;  %v537_v9 = vmul.f32 0.03125, %v517_v7  ;;  %v538_v10 = vmul.f32 0.03125, %v520_v8 }
 0x131   : > { %v545_v11 = vadd.f32 1e-05, %v537_v9  ;;  %v546_v12 = vadd.f32 1e-05, %v538_v10 }
 0x132   : > { %v523_v13 = vpop.xlane.xlu1 %522  ;;  %v526_v14 = vpop.xlane.xlu0 %525 }
 0x133   : > { %7696 = vrsqrt.f32 %v545_v11  ;;  %v539_v15 = vmul.f32 0.03125, %v523_v13  ;;  %v540_v16 = vmul.f32 0.03125, %v526_v14 }
 0x134   : > { %7698 = vrsqrt.f32 %v546_v12 }
 0x135   : > { %v547_v17 = vadd.f32 1e-05, %v539_v15  ;;  %v548_v18 = vadd.f32 1e-05, %v540_v16 }
 0x136   : > { %v529_v19 = vpop.xlane.xlu1 %528  ;;  %v532_v20 = vpop.xlane.xlu0 %531 }
 0x137   : > { %7700 = vrsqrt.f32 %v547_v17  ;;  %v541_v21 = vmul.f32 0.03125, %v529_v19  ;;  %v542_v22 = vmul.f32 0.03125, %v532_v20 }
 0x138   : > { %7702 = vrsqrt.f32 %v548_v18 }
 0x139   : > { %v549_v23 = vadd.f32 1e-05, %v541_v21  ;;  %v550_v24 = vadd.f32 1e-05, %v542_v22 }
 0x13a   : > { %v535_v27 = vpop.xlane.xlu1 %534 }
 0x13b   : > { %7704 = vrsqrt.f32 %v549_v23  ;;  %v543_v28 = vmul.f32 0.03125, %v535_v27 }
 0x13c   : > { %v7695_v29 = vpop.eup %7694  ;;  %7706 = vrsqrt.f32 %v550_v24 }
 0x13d   : > { %v551_v31 = vadd.f32 1e-05, %v543_v28  ;;  %v560_v32 = vmul.f32 %v7695_v29, %v8074_v25 }
 0x13f   : > { %7708 = vrsqrt.f32 %v551_v31  ;;  %v574_v36 = vmul.f32 %v6953_v30, %v560_v32 }
 0x140   : > { %v7697_v37 = vpop.eup %7696 }
 0x141   : > { %v7699_v38 = vpop.eup %7698  ;;  %v588_v39 = vadd.f32 %v6954_v35, %v574_v36  ;;  %v561_v40 = vmul.f32 %v7697_v37, %v8082_v33 }
 0x142   : > { %v562_v41 = vmul.f32 %v7699_v38, %v8076_v26 }
 0x143   : > { %7298 = vmatprep.mubr.msk.f32.mxu0 %vm462_vm0, %v588_v39  ;;  %v575_v42 = vmul.f32 %v6953_v30, %v561_v40 }
 0x144   : > { %v7701_v45 = vpop.eup %7700  ;;  %v576_v46 = vmul.f32 %v6953_v30, %v562_v41 }
 0x145   : > { %v7703_v47 = vpop.eup %7702  ;;  %v589_v25 = vadd.f32 %v6954_v35, %v575_v42  ;;  %v563_v48 = vmul.f32 %v7701_v45, %v8084_v34  ;;  %v796_v42 = vlaneseq }
 0x146   : > { %v590_v49 = vadd.f32 %v6954_v35, %v576_v46  ;;  %v564_v50 = vmul.f32 %v7703_v47, %v8092_v43  ;;  %v444_v46 = vld [vmem:[%s8302_s17] sm:$0x1] }
 0x147   : > { %7299 = vmatmul.mubr.msk.f32.vlgmr.msra.gmra.mxu0 %vm462_vm0, %v589_v25  ;;  %v577_v51 = vmul.f32 %v6953_v30, %v563_v48  ;;  %v797_v45 = vshrl.u32 %v796_v42, 7  ;;  %v452_v47 = vmul.f32 -1e+30, %v444_v46  ;;  %v445_v48 = vld [vmem:[%s8302_s17 + $0x1] sm:$0x1] }
 0x148   : > { %v7705_v52 = vpop.eup %7704  ;;  %7301 = vmatprep.mubr.msk.f32.mxu0 %vm462_vm0, %v590_v49  ;;  %v578_v33 = vmul.f32 %v6953_v30, %v564_v50  ;;  %v453_v50 = vmul.f32 -1e+30, %v445_v48 }
 0x149   : > { %v7707_v26 = vpop.eup %7706  ;;  %v591_v55 = vadd.f32 %v6954_v35, %v577_v51  ;;  %v565_v56 = vmul.f32 %v7705_v52, %v8094_v44  ;;  %v798_v25 = vsub.s32 0, %v797_v45  ;;  %v446_v51 = vld [vmem:[%s8302_s17 + $0x2] sm:$0x1] }
 0x14a   : > { %v592_v57 = vadd.f32 %v6954_v35, %v578_v33  ;;  %v566_v58 = vmul.f32 %v7707_v26, %v8102_v53  ;;  %v9531_v53 = vmov 0.0  }
 0x14b   : > { %7302 = vmatmul.mubr.msk.f32.gmra.mxu0 %vm462_vm0, %v591_v55  ;;  %v579_v34 = vmul.f32 %v6953_v30, %v565_v56  ;;  %7310 = vmatprep.subr.mxu1 %v9531_v53  ;;  %v8306_v49 = vrot.slane %v452_v47, %v798_v25  ;;  %v8312_v26 = vrot.slane %v453_v50, %v798_v25  ;;  %v454_v55 = vmul.f32 -1e+30, %v446_v51 }
 0x14c   : > { %v7709_v59 = vpop.eup %7708  ;;  %7304 = vmatprep.mubr.msk.f32.mxu0 %vm462_vm0, %v592_v57  ;;  %v580_v43 = vmul.f32 %v6953_v30, %v566_v58  ;;  %7385 = vmatprep.subr.mxu0 %v9531_v53  ;;  %v447_v57 = vld [vmem:[%s8302_s17 + $0x3] sm:$0x1] }
 0x14d   : > { %v593_v60 = vadd.f32 %v6954_v35, %v579_v34  ;;  %v567_v61 = vmul.f32 %v7709_v59, %v8104_v54  ;;  %7312 = vmatprep.mubr.msk.f32.mxu1 %vm7935_vm1, %v9531_v53  ;;  %v6955_v54 = vld [vmem:[%s9513_s5] ss:$0 sm:$0xff] }
 0x14e   : > { %v594_v62 = vadd.f32 %v6954_v35, %v580_v43  ;;  %v8320_v43 = vrot.slane %v454_v55, %v798_v25 }
 0x14f   : > { %7305 = vmatmul.mubr.msk.f32.gmra.mxu0 %vm462_vm0, %v593_v60  ;;  %v581_v63 = vmul.f32 %v6953_v30, %v567_v61  ;;  %v455_v60 = vmul.f32 -1e+30, %v447_v57 }
 0x150   : > { %7307 = vmatprep.mubr.msk.f32.mxu0 %vm462_vm0, %v594_v62  ;;  %v448_v62 = vld [vmem:[%s8302_s17 + $0x4] sm:$0x1] }
 0x151   : > { %v595_v44 = vadd.f32 %v6954_v35, %v581_v63 }
 0x153   : > { %7308 = vmatmul.mubr.msk.f32.gmra.mxu0 %vm462_vm0, %v595_v44 }
 0x154   : > { %7387 = vmatprep.mubr.msk.f32.mxu0 %vm7935_vm1, %v9531_v53 }
 0x207   : > { %v7300_v0 = vpop.f32.mrf.mxu0 }
 0x208   : > { %v8180_v1 = vadd.f32 %v7300_v0, %v6955_v54  ;;  %v8326_v0 = vrot.slane %v455_v60, %v798_v25 }
 0x209   : > { %v741_v2 = vpop.f32.mrf.mxu0 }
 0x20a   : > { %v8182_v3 = vadd.f32 %v6955_v54, %v741_v2  ;;  %916 = vrot.lane.b32.xlu1 %v8180_v1, %s7936_s30  ;;  %v8227_v20 = vmul.f32 0.35355338, %v8180_v1  ;;  %v456_v2 = vmul.f32 -1e+30, %v448_v62 }
 0x20b   : > { %v7303_v4 = vpop.f32.mrf.mxu0 }
 0x20c   : > { %837 = vrot.lane.b32.xlu0 %v8182_v3, %s7936_s30  ;;  %v8189_v9 = vadd.f32 %v7303_v4, %v6955_v54  ;;  %v8218_v18 = vmul.f32 0.35355338, %v8182_v3 }
 0x20d   : > { %v751_v5 = vpop.f32.mrf.mxu0 }
 0x20e   : > { %v8186_v6 = vadd.f32 %v6955_v54, %v751_v5  ;;  %v8245_v24 = vmul.f32 0.35355338, %v8189_v9  ;;  %v449_v5 = vld [vmem:[%s8302_s17 + $0x5] sm:$0x1] }
 0x20f   : > { %v7306_v7 = vpop.f32.mrf.mxu0 }
 0x210   : > { %994 = vrot.lane.b32.xlu1 %v8186_v6, %s7936_s30  ;;  %v8195_v13 = vadd.f32 %v7306_v7, %v6955_v54  ;;  %v8236_v22 = vmul.f32 0.35355338, %v8186_v6 }
 0x211   : > { %v761_v8 = vpop.f32.mrf.mxu0 }
 0x212   : > { %v8191_v10 = vadd.f32 %v6955_v54, %v761_v8  ;;  %v8265_v31 = vmul.f32 0.35355338, %v8195_v13 }
 0x213   : > { %v7309_v11 = vpop.f32.mrf.mxu0 }
 0x214   : > { %1072 = vrot.lane.b32.xlu1 %v8189_v9, %s7936_s30  ;;  %1150 = vrot.lane.b32.xlu0 %v8191_v10, %s7936_s30  ;;  %v8201_v15 = vadd.f32 %v7309_v11, %v6955_v54  ;;  %v8254_v29 = vmul.f32 0.35355338, %v8191_v10 }
 0x215   : > { %v771_v12 = vpop.f32.mrf.mxu0 }
 0x216   : > { %v8197_v14 = vadd.f32 %v6955_v54, %v771_v12  ;;  %v8287_v38 = vmul.f32 0.35355338, %v8201_v15  ;;  %v8331_v12 = vrot.slane %v456_v2, %v798_v25 }
 0x218   : > { %1228 = vrot.lane.b32.xlu1 %v8195_v13, %s7936_s30  ;;  %1306 = vrot.lane.b32.xlu0 %v8197_v14, %s7936_s30  ;;  %v8276_v36 = vmul.f32 0.35355338, %v8197_v14 }
 0x21c   : > { %1384 = vrot.lane.b32.xlu1 %v8201_v15, %s7936_s30  ;;  %1589 = vrot.lane.b32.xlu0 %v8182_v3, %s7937_s13  ;;  %s7947_s30 = smov 8  }
 0x220   : > { %1665 = vrot.lane.b32.xlu1 %v8180_v1, %s7937_s13  ;;  %1893 = vrot.lane.b32.xlu0 %v8191_v10, %s7937_s13 }
 0x224   : > { %1741 = vrot.lane.b32.xlu1 %v8186_v6, %s7937_s13  ;;  %2207 = vrot.lane.b32.xlu0 %v8182_v3, %s7938_s14 }
 0x228   : > { %1817 = vrot.lane.b32.xlu1 %v8189_v9, %s7937_s13  ;;  %2045 = vrot.lane.b32.xlu0 %v8197_v14, %s7937_s13 }
 0x22c   : > { %1969 = vrot.lane.b32.xlu1 %v8195_v13, %s7937_s13 }
 0x230   : > { %2121 = vrot.lane.b32.xlu1 %v8201_v15, %s7937_s13  ;;  %s7948_s13 = smov 16  }
 0x234   : > { %2285 = vrot.lane.b32.xlu1 %v8180_v1, %s7938_s14 }
 0x27c   : > { %v917_v16 = vpop.permute.xlu1 %916 }
 0x27e   : > { %v838_v17 = vpop.permute.xlu0 %837 }
 0x27f   : > { %7311 = vmatpush3.xpose.msk.msra.mxu1 %vm839_vm2, %v838_v17 }
 0x280   : > { %7315 = vmatprep.subr.mxu1 %v9531_v53 }
 0x282   : > { %v995_v19 = vpop.permute.xlu1 %994  ;;  %7313 = vmatmul.mubr.msk.f32.vlgmr.msra.gmra.mxu1 %vm839_vm2, %v8218_v18 }
 0x283   : > { %7316 = vmatpush3.xpose.msk.msra.mxu1 %vm839_vm2, %v917_v16  ;;  %7317 = vmatprep.mubr.msk.f32.mxu1 %vm7935_vm1, %v9531_v53  ;;  %v457_v16 = vmul.f32 -1e+30, %v449_v5 }
 0x284   : > { %7320 = vmatprep.subr.mxu1 %v9531_v53 }
 0x286   : > { %v1073_v21 = vpop.permute.xlu1 %1072  ;;  %7318 = vmatmul.mubr.msk.f32.vlgmr.msra.gmra.mxu1 %vm839_vm2, %v8227_v20  ;;  %v1151_v27 = vpop.permute.xlu0 %1150 }
 0x287   : > { %7321 = vmatpush3.xpose.msk.msra.mxu1 %vm839_vm2, %v995_v19  ;;  %7322 = vmatprep.mubr.msk.f32.mxu1 %vm7935_vm1, %v9531_v53  ;;  %v450_v19 = vld [vmem:[%s8302_s17 + $0x6] sm:$0x1] }
 0x288   : > { %7325 = vmatprep.subr.mxu1 %v9531_v53 }
 0x28a   : > { %v1229_v23 = vpop.permute.xlu1 %1228  ;;  %7323 = vmatmul.mubr.msk.f32.vlgmr.msra.gmra.mxu1 %vm839_vm2, %v8236_v22  ;;  %v1307_v32 = vpop.permute.xlu0 %1306 }
 0x28b   : > { %7326 = vmatpush3.xpose.msk.msra.mxu1 %vm839_vm2, %v1073_v21  ;;  %7327 = vmatprep.mubr.msk.f32.mxu1 %vm7935_vm1, %v9531_v53 }
 0x28c   : > { %7330 = vmatprep.subr.mxu1 %v9531_v53 }
 0x28e   : > { %v1385_v28 = vpop.permute.xlu1 %1384  ;;  %7328 = vmatmul.mubr.msk.f32.vlgmr.msra.gmra.mxu1 %vm839_vm2, %v8245_v24  ;;  %v1590_v39 = vpop.permute.xlu0 %1589 }
 0x28f   : > { %7331 = vmatpush3.xpose.msk.msra.mxu1 %vm839_vm2, %v1151_v27  ;;  %7332 = vmatprep.mubr.msk.f32.mxu1 %vm7935_vm1, %v9531_v53 }
 0x290   : > { %7335 = vmatprep.subr.mxu1 %v9531_v53 }
 0x292   : > { %v8257_v30 = vpop.permute.xlu1 %1665  ;;  %7333 = vmatmul.mubr.msk.f32.vlgmr.msra.gmra.mxu1 %vm839_vm2, %v8254_v29 }
 0x293   : > { %7336 = vmatpush3.xpose.msk.msra.mxu1 %vm839_vm2, %v1229_v23  ;;  %7337 = vmatprep.mubr.msk.f32.mxu1 %vm7935_vm1, %v9531_v53 }
 0x294   : > { %7340 = vmatprep.subr.mxu1 %v9531_v53 }
 0x296   : > { %v8268_v35 = vpop.permute.xlu1 %1741  ;;  %7338 = vmatmul.mubr.msk.f32.vlgmr.msra.gmra.mxu1 %vm839_vm2, %v8265_v31 }
 0x297   : > { %7341 = vmatpush3.xpose.msk.msra.mxu1 %vm839_vm2, %v1307_v32  ;;  %7342 = vmatprep.mubr.msk.f32.mxu1 %vm7935_vm1, %v9531_v53  ;;  %v458_v32 = vmul.f32 -1e+30, %v450_v19 }
 0x298   : > { %7345 = vmatprep.subr.mxu1 %v9531_v53 }
 0x299   : > { %v8342_v46 = vrot.slane %v458_v32, %v798_v25 }
 0x29a   : > { %v8279_v37 = vpop.permute.xlu1 %1817  ;;  %7343 = vmatmul.mubr.msk.f32.vlgmr.msra.gmra.mxu1 %vm839_vm2, %v8276_v36 }
 0x29b   : > { %7346 = vmatpush3.xpose.msk.msra.mxu1 %vm839_vm2, %v1385_v28  ;;  %7347 = vmatprep.mubr.msk.f32.mxu1 %vm7935_vm1, %v9531_v53  ;;  %v8336_v28 = vrot.slane %v457_v16, %v798_v25 }
 0x29c   : > { %7350 = vmatprep.subr.mxu1 %v9531_v53 }
 0x29e   : > { %v8290_v40 = vpop.permute.xlu1 %1969  ;;  %7348 = vmatmul.mubr.msk.f32.vlgmr.msra.gmra.mxu1 %vm839_vm2, %v8287_v38 }
 0x29f   : > { %7351 = vmatpush3.msra.mxu1 %v1590_v39  ;;  %7352 = vmatprep.mubr.msk.f32.mxu1 %vm7935_vm1, %v9531_v53 }
 0x2a0   : > { %7355 = vmatprep.subr.mxu1 %v9531_v53 }
 0x2a2   : > { %v2122_v41 = vpop.permute.xlu1 %2121 }
 0x2a3   : > { %7386 = vmatpush3.msra.mxu0 %v2122_v41 }
 0x2a4   : > { %7395 = vmatprep.subr.mxu0 %v9531_v53 }
 0x342   : > { %v911_v52 = vpop.f32.mrf.mxu1 }
 0x343   : > { %v8310_v33 = vadd.f32 %v911_v52, %v8306_v49 }
 0x344   : > { %v7314_v56 = vpop.f32.mrf.mxu1 }
 0x345   : > { %v1461_v58 = vsel %vm839_vm2, %v8310_v33, -inf }
 0x346   : > { %1462 = vmax.xlane.f32.xlu0 %v1461_v58  ;;  %v989_v34 = vpop.f32.mrf.mxu1  ;;  %v451_v58 = vld [vmem:[%s8302_s17 + $0x7] sm:$0x1] }
 0x347   : > { %v8318_v59 = vadd.f32 %v989_v34, %v8312_v26  ;;  %v459_v34 = vmul.f32 -1e+30, %v451_v58 }
 0x348   : > { %v7319_v61 = vpop.f32.mrf.mxu1 }
 0x349   : > { %v1464_v63 = vsel %vm839_vm2, %v8318_v59, -inf  ;;  %v8356_v60 = vrot.slane %v459_v34, %v798_v25 }
 0x34a   : > { %1465 = vmax.xlane.f32.xlu1 %v1464_v63  ;;  %v1067_v44 = vpop.f32.mrf.mxu1  ;;  %v8363_v63 = vpop.permute.xlu0 %1893 }
 0x34b   : > { %v1068_v54 = vadd.f32 %v1067_v44, %v8320_v43 }
 0x34c   : > { %v7324_v4 = vpop.f32.mrf.mxu1 }
 0x34d   : > { %v1467_v7 = vsel %vm839_vm2, %v1068_v54, -inf  ;;  %v8369_v4 = vpop.permute.xlu1 %2285 }
 0x34e   : > { %1468 = vmax.xlane.f32.xlu0 %v1467_v7  ;;  %v1145_v8 = vpop.f32.mrf.mxu1  ;;  %v8365_v44 = vpop.permute.xlu0 %2207 }
 0x34f   : > { %v1146_v11 = vadd.f32 %v1145_v8, %v8326_v0 }
 0x350   : > { %v7329_v17 = vpop.f32.mrf.mxu1 }
 0x351   : > { %v1470_v21 = vsel %vm839_vm2, %v1146_v11, -inf }
 0x352   : > { %1471 = vmax.xlane.f32.xlu0 %v1470_v21  ;;  %v1223_v23 = vpop.f32.mrf.mxu1  ;;  %v8367_v2 = vpop.permute.xlu0 %2045 }
 0x353   : > { %v1224_v27 = vadd.f32 %v1223_v23, %v8331_v12 }
 0x354   : > { %v7334_v39 = vpop.f32.mrf.mxu1 }
 0x355   : > { %v1473_v41 = vsel %vm839_vm2, %v1224_v27, -inf }
 0x356   : > { %1474 = vmax.xlane.f32.xlu0 %v1473_v41  ;;  %v1301_v42 = vpop.f32.mrf.mxu1 }
 0x357   : > { %v8340_v45 = vadd.f32 %v1301_v42, %v8336_v28 }
 0x358   : > { %v7339_v47 = vpop.f32.mrf.mxu1 }
 0x359   : > { %v1476_v48 = vsel %vm839_vm2, %v8340_v45, -inf }
 0x35a   : > { %1477 = vmax.xlane.f32.xlu1 %v1476_v48  ;;  %v1379_v50 = vpop.f32.mrf.mxu1 }
 0x35b   : > { %v8347_v51 = vadd.f32 %v1379_v50, %v8342_v46 }
 0x35c   : > { %v7344_v52 = vpop.f32.mrf.mxu1 }
 0x35d   : > { %v1479_v55 = vsel %vm839_vm2, %v8347_v51, -inf }
 0x35e   : > { %1480 = vmax.xlane.f32.xlu0 %v1479_v55  ;;  %v1457_v56 = vpop.f32.mrf.mxu1 }
 0x35f   : > { %v8359_v61 = vadd.f32 %v1457_v56, %v8356_v60 }
 0x360   : > { %v7349_v57 = vpop.f32.mrf.mxu1 }
 0x361   : > { %v1482_v62 = vsel %vm839_vm2, %v8359_v61, -inf }
 0x36b   : > { %2283 = vrot.lane.b32.xlu1 %v8227_v20, %s7939_s18 }
 0x374   : > { %2205 = vrot.lane.b32.xlu0 %v8218_v18, %s7939_s18 }
 0x38f   : > { %1483 = vmax.xlane.f32.xlu1 %v1482_v62 }
 0x3cf   : > { %v8371_v5 = vpop.xlane.xlu0 %1462 }
 0x3d0   : > { %v1485_v25 = vmax.f32 %v8371_v5, 0.0 }
 0x3d2   : > { %v1493_v7 = vsub.f32 %v8310_v33, %v1485_v25 }
 0x3d3   : > { %v8377_v8 = vpop.xlane.xlu1 %1465 }
 0x3d4   : > { %v1501_v16 = vmul.f32 1.442695, %v1493_v7  ;;  %v1486_v17 = vmax.f32 %v8377_v8, 0.0 }
 0x3d6   : > { %7710 = vpow2.f32 %v1501_v16  ;;  %v1494_v19 = vsub.f32 %v8318_v59, %v1486_v17 }
 0x3d7   : > { %v8383_v21 = vpop.xlane.xlu0 %1468 }
 0x3d8   : > { %v1503_v23 = vmul.f32 1.442695, %v1494_v19  ;;  %v1487_v32 = vmax.f32 %v8383_v21, 0.0 }
 0x3da   : > { %7712 = vpow2.f32 %v1503_v23  ;;  %v1495_v39 = vsub.f32 %v1068_v54, %v1487_v32 }
 0x3db   : > { %v8388_v33 = vpop.xlane.xlu0 %1471 }
 0x3dc   : > { %v1505_v41 = vmul.f32 1.442695, %v1495_v39  ;;  %v1488_v42 = vmax.f32 %v8388_v33, 0.0 }
 0x3de   : > { %7714 = vpow2.f32 %v1505_v41  ;;  %v1496_v47 = vsub.f32 %v1146_v11, %v1488_v42 }
 0x3df   : > { %v8393_v48 = vpop.xlane.xlu0 %1474 }
 0x3e0   : > { %v1507_v59 = vmul.f32 1.442695, %v1496_v47  ;;  %v1489_v50 = vmax.f32 %v8393_v48, 0.0 }
 0x3e2   : > { %7716 = vpow2.f32 %v1507_v59  ;;  %v1497_v52 = vsub.f32 %v1224_v27, %v1489_v50  ;;  %v1545_v5 = vsub.f32 0.0, %v1489_v50 }
 0x3e3   : > { %v8396_v55 = vpop.eup %7710  ;;  %v8418_v19 = vpop.xlane.xlu1 %1477 }
 0x3e4   : > { %v1509_v56 = vmul.f32 1.442695, %v1497_v52  ;;  %v1517_v54 = vsel %vm839_vm2, %v8396_v55, 0.0  ;;  %v1490_v23 = vmax.f32 %v8418_v19, 0.0 }
 0x3e5   : > { %1518 = vadd.xlane.f32.xlu0 %v1517_v54 }
 0x3e6   : > { %7718 = vpow2.f32 %v1509_v56  ;;  %v1498_v41 = vsub.f32 %v8340_v45, %v1490_v23 }
 0x3e7   : > { %v8400_v57 = vpop.eup %7712  ;;  %v8421_v39 = vpop.xlane.xlu0 %1480 }
 0x3e8   : > { %v1520_v11 = vsel %vm839_vm2, %v8400_v57, 0.0  ;;  %v9522_v47 = vmax.f32 %v8421_v39, 0.0  ;;  %v1511_v48 = vmul.f32 1.442695, %v1498_v41 }
 0x3e9   : > { %1521 = vadd.xlane.f32.xlu1 %v1520_v11 }
 0x3ea   : > { %v1499_v59 = vsub.f32 %v8347_v51, %v9522_v47  ;;  %7720 = vpow2.f32 %v1511_v48 }
 0x3eb   : > { %v8404_v58 = vpop.eup %7714  ;;  %v8472_v47 = vpop.permute.xlu0 %2205 }
 0x3ec   : > { %v1523_v34 = vsel %vm839_vm2, %v8404_v58, 0.0  ;;  %v1513_v52 = vmul.f32 1.442695, %v1499_v59  ;;  %v1541_v59 = vsub.f32 0.0, %v1485_v25 }
 0x3ed   : > { %1524 = vadd.xlane.f32.xlu0 %v1523_v34  ;;  %v8440_v34 = vpop.permute.xlu1 %2283 }
 0x3ee   : > { %7722 = vpow2.f32 %v1513_v52  ;;  %v1549_v52 = vmul.f32 1.442695, %v1541_v59 }
 0x3ef   : > { %v8408_v27 = vpop.eup %7716 }
 0x3f0   : > { %v1526_v62 = vsel %vm839_vm2, %v8408_v27, 0.0 }
 0x3f1   : > { %1527 = vadd.xlane.f32.xlu1 %v1526_v62 }
 0x3f3   : > { %v8412_v7 = vpop.eup %7718 }
 0x3f4   : > { %v1529_v16 = vsel %vm839_vm2, %v8412_v7, 0.0 }
 0x3f5   : > { %1530 = vadd.xlane.f32.xlu0 %v1529_v16 }
 0x3f7   : > { %v8432_v56 = vpop.eup %7720 }
 0x3f8   : > { %v1532_v54 = vsel %vm839_vm2, %v8432_v56, 0.0 }
 0x3fb   : > { %v8436_v11 = vpop.eup %7722 }
 0x3fc   : > { %v1535_v45 = vsel %vm839_vm2, %v8436_v11, 0.0 }
 0x402   : > { %2441 = vrot.lane.b32.xlu1 %v8189_v9, %s7938_s14 }
 0x40b   : > { %2363 = vrot.lane.b32.xlu0 %v8186_v6, %s7938_s14 }
 0x418   : > { %v8444_v51 = vpop.xlane.xlu1 %1483 }
 0x419   : > { %v9521_v62 = vmax.f32 %v8444_v51, 0.0 }
 0x41b   : > { %v1500_v16 = vsub.f32 %v8359_v61, %v9521_v62  ;;  %v1544_v62 = vsub.f32 0.0, %v1488_v42 }
 0x41d   : > { %v1515_v41 = vmul.f32 1.442695, %v1500_v16  ;;  %v1543_v16 = vsub.f32 0.0, %v1487_v32  ;;  %v1555_v25 = vmul.f32 1.442695, %v1544_v62 }
 0x41f   : > { %7724 = vpow2.f32 %v1515_v41  ;;  %v1553_v41 = vmul.f32 1.442695, %v1543_v16 }
 0x420   : > { %7726 = vpow2.f32 %v1549_v52 }
 0x426   : > { %1533 = vadd.xlane.f32.xlu1 %v1532_v54  ;;  %v1542_v54 = vsub.f32 0.0, %v1486_v17 }
 0x42a   : > { %1536 = vadd.xlane.f32.xlu0 %v1535_v45  ;;  %v1551_v45 = vmul.f32 1.442695, %v1542_v54 }
 0x42c   : > { %v8460_v48 = vpop.eup %7724  ;;  %7728 = vpow2.f32 %v1551_v45 }
 0x42d   : > { %v1538_v61 = vsel %vm839_vm2, %v8460_v48, 0.0  ;;  %7730 = vpow2.f32 %v1553_v41  ;;  %v7727_v8 = vpop.eup %7726 }
 0x42e   : > { %7732 = vpow2.f32 %v1555_v25 }
 0x437   : > { %2439 = vrot.lane.b32.xlu1 %v8245_v24, %s7939_s18 }
 0x439   : > { %v7729_v21 = vpop.eup %7728 }
 0x43a   : > { %v7731_v42 = vpop.eup %7730 }
 0x43b   : > { %v7733_v52 = vpop.eup %7732 }
 0x440   : > { %2361 = vrot.lane.b32.xlu0 %v8236_v22, %s7939_s18 }
 0x444   : > { %2519 = vrot.lane.b32.xlu0 %v8191_v10, %s7938_s14 }
 0x448   : > { %2517 = vrot.lane.b32.xlu0 %v8254_v29, %s7939_s18 }
 0x44c   : > { %2675 = vrot.lane.b32.xlu0 %v8197_v14, %s7938_s14 }
 0x450   : > { %2673 = vrot.lane.b32.xlu0 %v8276_v36, %s7939_s18 }
 0x45b   : > { %1539 = vadd.xlane.f32.xlu1 %v1538_v61  ;;  %v1557_v61 = vmul.f32 1.442695, %v1545_v5 }
 0x45d   : > { %7734 = vpow2.f32 %v1557_v61 }
 0x46a   : > { %v7735_v16 = vpop.eup %7734 }
 0x46c   : > { %2597 = vrot.lane.b32.xlu1 %v8195_v13, %s7938_s14 }
 0x46e   : > { %v1519_v17 = vpop.xlane.xlu0 %1518 }
 0x46f   : > { %v1565_v59 = vadd.f32 %v7727_v8, %v1519_v17 }
 0x470   : > { %2595 = vrot.lane.b32.xlu1 %v8265_v31, %s7939_s18 }
 0x471   : > { %7736 = vrcp.f32 %v1565_v59 }
 0x472   : > { %v1522_v32 = vpop.xlane.xlu1 %1521 }
 0x473   : > { %v1566_v33 = vadd.f32 %v7729_v21, %v1522_v32 }
 0x474   : > { %2753 = vrot.lane.b32.xlu1 %v8201_v15, %s7938_s14 }
 0x475   : > { %7738 = vrcp.f32 %v1566_v33 }
 0x476   : > { %v1525_v50 = vpop.xlane.xlu0 %1524 }
 0x477   : > { %v1567_v62 = vadd.f32 %v7731_v42, %v1525_v50 }
 0x478   : > { %2751 = vrot.lane.b32.xlu1 %v8287_v38, %s7939_s18  ;;  %s7949_s18 = smov 24  }
 0x479   : > { %7740 = vrcp.f32 %v1567_v62 }
 0x47a   : > { %v1528_v54 = vpop.xlane.xlu1 %1527 }
 0x47b   : > { %v1568_v45 = vadd.f32 %v7733_v52, %v1528_v54 }
 0x47d   : > { %7742 = vrcp.f32 %v1568_v45 }
 0x47e   : > { %v7737_v41 = vpop.eup %7736  ;;  %v1531_v5 = vpop.xlane.xlu0 %1530 }
 0x47f   : > { %v1569_v25 = vadd.f32 %v7735_v16, %v1531_v5  ;;  %v1581_v61 = vmul.f32 %v7737_v41, %v8396_v55 }
 0x481   : > { %7744 = vrcp.f32 %v1569_v25  ;;  %7353 = vmatmul.mubr.msk.f32.vlgmr.msra.gmra.mxu1 %vm839_vm2, %v1581_v61 }
 0x482   : > { %v7739_v8 = vpop.eup %7738  ;;  %7356 = vmatpush3.msra.mxu1 %v8257_v30  ;;  %7357 = vmatprep.mubr.msk.f32.mxu1 %vm7935_vm1, %v9531_v53  ;;  %v2364_v42 = vpop.permute.xlu0 %2363 }
 0x483   : > { %7360 = vmatprep.subr.mxu1 %v9531_v53  ;;  %v1582_v17 = vmul.f32 %v7739_v8, %v8400_v57 }
 0x485   : > { %7358 = vmatmul.mubr.msk.f32.vlgmr.msra.gmra.mxu1 %vm839_vm2, %v1582_v17 }
 0x486   : > { %v7741_v59 = vpop.eup %7740  ;;  %7361 = vmatpush3.msra.mxu1 %v8268_v35  ;;  %7362 = vmatprep.mubr.msk.f32.mxu1 %vm7935_vm1, %v9531_v53 }
 0x487   : > { %7365 = vmatprep.subr.mxu1 %v9531_v53  ;;  %v1583_v55 = vmul.f32 %v7741_v59, %v8404_v58 }
 0x489   : > { %7363 = vmatmul.mubr.msk.f32.vlgmr.msra.gmra.mxu1 %vm839_vm2, %v1583_v55 }
 0x48a   : > { %v7743_v30 = vpop.eup %7742  ;;  %7366 = vmatpush3.msra.mxu1 %v8279_v37  ;;  %7367 = vmatprep.mubr.msk.f32.mxu1 %vm7935_vm1, %v9531_v53  ;;  %v1546_v37 = vsub.f32 0.0, %v1490_v23 }
 0x48b   : > { %7370 = vmatprep.subr.mxu1 %v9531_v53  ;;  %v1584_v57 = vmul.f32 %v7743_v30, %v8408_v27  ;;  %v9533_v27 = vmax.f32 %v8421_v39, 0.0 }
 0x48d   : > { %7368 = vmatmul.mubr.msk.f32.vlgmr.msra.gmra.mxu1 %vm839_vm2, %v1584_v57  ;;  %v1547_v21 = vsub.f32 0.0, %v9533_v27 }
 0x48e   : > { %v7745_v35 = vpop.eup %7744  ;;  %7371 = vmatpush3.msra.mxu1 %v8363_v63  ;;  %7372 = vmatprep.mubr.msk.f32.mxu1 %vm7935_vm1, %v9531_v53  ;;  %v1559_v63 = vmul.f32 1.442695, %v1546_v37 }
 0x48f   : > { %7375 = vmatprep.subr.mxu1 %v9531_v53  ;;  %v1585_v58 = vmul.f32 %v7745_v35, %v8412_v7  ;;  %v1561_v32 = vmul.f32 1.442695, %v1547_v21  ;;  %v2442_v7 = vpop.permute.xlu1 %2441 }
 0x490   : > { %7746 = vpow2.f32 %v1559_v63 }
 0x491   : > { %7373 = vmatmul.mubr.msk.f32.vlgmr.msra.gmra.mxu1 %vm839_vm2, %v1585_v58  ;;  %7748 = vpow2.f32 %v1561_v32 }
 0x492   : > { %7376 = vmatpush3.msra.mxu1 %v8290_v40  ;;  %7377 = vmatprep.mubr.msk.f32.mxu1 %vm7935_vm1, %v9531_v53 }
 0x493   : > { %7380 = vmatprep.subr.mxu1 %v9531_v53 }
 0x49d   : > { %v7747_v33 = vpop.eup %7746 }
 0x49e   : > { %v7749_v62 = vpop.eup %7748 }
 0x4af   : > { %v1534_v50 = vpop.xlane.xlu1 %1533 }
 0x4b0   : > { %v1570_v40 = vadd.f32 %v7747_v33, %v1534_v50 }
 0x4b2   : > { %7750 = vrcp.f32 %v1570_v40 }
 0x4b3   : > { %v1537_v52 = vpop.xlane.xlu0 %1536  ;;  %v2440_v5 = vpop.permute.xlu1 %2439 }
 0x4b4   : > { %v1571_v54 = vadd.f32 %v7749_v62, %v1537_v52 }
 0x4b6   : > { %7752 = vrcp.f32 %v1571_v54 }
 0x4b7   : > { %v2362_v45 = vpop.permute.xlu0 %2361 }
 0x4bb   : > { %v2520_v16 = vpop.permute.xlu0 %2519 }
 0x4bf   : > { %v7751_v19 = vpop.eup %7750 }
 0x4c0   : > { %v1586_v23 = vmul.f32 %v7751_v19, %v8432_v56  ;;  %v2518_v56 = vpop.permute.xlu0 %2517 }
 0x4c2   : > { %7378 = vmatmul.mubr.msk.f32.vlgmr.msra.gmra.mxu1 %vm839_vm2, %v1586_v23 }
 0x4c3   : > { %v7753_v39 = vpop.eup %7752  ;;  %7381 = vmatpush3.msra.mxu1 %v8367_v2  ;;  %7382 = vmatprep.mubr.msk.f32.mxu1 %vm7935_vm1, %v9531_v53 }
 0x4c4   : > { %7390 = vmatprep.subr.mxu1 %v9531_v53  ;;  %v1587_v41 = vmul.f32 %v7753_v39, %v8436_v11  ;;  %v2676_v11 = vpop.permute.xlu0 %2675 }
 0x4c6   : > { %7383 = vmatmul.mubr.msk.f32.vlgmr.msra.gmra.mxu1 %vm839_vm2, %v1587_v41 }
 0x4c7   : > { %7391 = vmatpush3.xpose.msk.msra.mxu1 %vm839_vm2, %v8365_v44  ;;  %7392 = vmatprep.mubr.msk.f32.mxu1 %vm7935_vm1, %v9531_v53  ;;  %v9534_v44 = vmax.f32 %v8444_v51, 0.0 }
 0x4c8   : > { %7400 = vmatprep.subr.mxu1 %v9531_v53  ;;  %v2674_v51 = vpop.permute.xlu0 %2673 }
 0x4c9   : > { %v1548_v2 = vsub.f32 0.0, %v9534_v44 }
 0x4ca   : > { %7393 = vmatmul.mubr.msk.f32.vlgmr.msra.gmra.mxu1 %vm839_vm2, %v8472_v47 }
 0x4cb   : > { %7401 = vmatpush3.xpose.msk.msra.mxu1 %vm839_vm2, %v2364_v42  ;;  %7402 = vmatprep.mubr.msk.f32.mxu1 %vm7935_vm1, %v9531_v53  ;;  %v1563_v47 = vmul.f32 1.442695, %v1548_v2 }
 0x4cc   : > { %7410 = vmatprep.subr.mxu1 %v9531_v53 }
 0x4cd   : > { %7754 = vpow2.f32 %v1563_v47 }
 0x4ce   : > { %7403 = vmatmul.mubr.msk.f32.vlgmr.msra.gmra.mxu1 %vm839_vm2, %v2362_v45 }
 0x4cf   : > { %7411 = vmatpush3.xpose.msk.msra.mxu1 %vm839_vm2, %v2520_v16  ;;  %7412 = vmatprep.mubr.msk.f32.mxu1 %vm7935_vm1, %v9531_v53 }
 0x4d0   : > { %7420 = vmatprep.subr.mxu1 %v9531_v53 }
 0x4d2   : > { %7413 = vmatmul.mubr.msk.f32.vlgmr.msra.gmra.mxu1 %vm839_vm2, %v2518_v56 }
 0x4d3   : > { %7421 = vmatpush3.xpose.msk.msra.mxu1 %vm839_vm2, %v2676_v11  ;;  %7422 = vmatprep.mubr.msk.f32.mxu1 %vm7935_vm1, %v9531_v53 }
 0x4d4   : > { %7430 = vmatprep.subr.mxu1 %v9531_v53 }
 0x4d6   : > { %7423 = vmatmul.mubr.msk.f32.vlgmr.msra.gmra.mxu1 %vm839_vm2, %v2674_v51 }
 0x4d7   : > { %7432 = vmatprep.mubr.msk.f32.mxu1 %vm7935_vm1, %v9531_v53 }
 0x4da   : > { %v7755_v25 = vpop.eup %7754 }
 0x4e4   : > { %v1540_v61 = vpop.xlane.xlu1 %1539 }
 0x4e5   : > { %v1572_v8 = vadd.f32 %v7755_v25, %v1540_v61 }
 0x4e7   : > { %7756 = vrcp.f32 %v1572_v8 }
 0x4e8   : > { %v2598_v59 = vpop.permute.xlu1 %2597 }
 0x4ec   : > { %v2596_v30 = vpop.permute.xlu1 %2595 }
 0x4f4   : > { %v7757_v17 = vpop.eup %7756 }
 0x4f5   : > { %v1588_v55 = vmul.f32 %v7757_v17, %v8460_v48  ;;  %v2754_v48 = vpop.permute.xlu1 %2753 }
 0x4f7   : > { %7388 = vmatmul.mubr.msk.f32.vlgmr.msra.gmra.mxu0 %vm839_vm2, %v1588_v55 }
 0x4f8   : > { %7396 = vmatpush3.xpose.msk.msra.mxu0 %vm839_vm2, %v8369_v4  ;;  %7397 = vmatprep.mubr.msk.f32.mxu0 %vm7935_vm1, %v9531_v53 }
 0x4f9   : > { %7405 = vmatprep.subr.mxu0 %v9531_v53  ;;  %v2752_v4 = vpop.permute.xlu1 %2751 }
 0x4fb   : > { %7398 = vmatmul.mubr.msk.f32.vlgmr.msra.gmra.mxu0 %vm839_vm2, %v8440_v34 }
 0x4fc   : > { %7406 = vmatpush3.xpose.msk.msra.mxu0 %vm839_vm2, %v2442_v7  ;;  %7407 = vmatprep.mubr.msk.f32.mxu0 %vm7935_vm1, %v9531_v53 }
 0x4fd   : > { %7415 = vmatprep.subr.mxu0 %v9531_v53 }
 0x4ff   : > { %7408 = vmatmul.mubr.msk.f32.vlgmr.msra.gmra.mxu0 %vm839_vm2, %v2440_v5 }
 0x500   : > { %7416 = vmatpush3.xpose.msk.msra.mxu0 %vm839_vm2, %v2598_v59  ;;  %7417 = vmatprep.mubr.msk.f32.mxu0 %vm7935_vm1, %v9531_v53 }
 0x501   : > { %7425 = vmatprep.subr.mxu0 %v9531_v53 }
 0x503   : > { %7418 = vmatmul.mubr.msk.f32.vlgmr.msra.gmra.mxu0 %vm839_vm2, %v2596_v30 }
 0x504   : > { %7426 = vmatpush3.xpose.msk.msra.mxu0 %vm839_vm2, %v2754_v48  ;;  %7427 = vmatprep.mubr.msk.f32.mxu0 %vm7935_vm1, %v9531_v53 }
 0x505   : > { %7435 = vmatprep.subr.mxu0 %v9531_v53 }
 0x507   : > { %7428 = vmatmul.mubr.msk.f32.vlgmr.msra.gmra.mxu0 %vm839_vm2, %v2752_v4 }
 0x508   : > { %7437 = vmatprep.mubr.msk.f32.mxu0 %vm7935_vm1, %v9531_v53 }
 0x541   : > { %v1661_v34 = vpop.f32.mrf.mxu1 }
 0x542   : > { %2197 = vst.msk [vmem:[#allocation2] sm:$0xff] %vm839_vm2, %v1661_v34 }
 0x543   : > { %v7354_v57 = vpop.f32.mrf.mxu1 }
 0x545   : > { %v1737_v35 = vpop.f32.mrf.mxu1 }
 0x546   : > { %2198 = vst.msk [vmem:[#allocation2 + $0x8] sm:$0xff] %vm839_vm2, %v1737_v35 }
 0x547   : > { %v7359_v58 = vpop.f32.mrf.mxu1 }
 0x549   : > { %v1813_v37 = vpop.f32.mrf.mxu1 }
 0x54a   : > { %2199 = vst.msk [vmem:[#allocation2 + $0x10] sm:$0xff] %vm839_vm2, %v1813_v37 }
 0x54b   : > { %v7364_v63 = vpop.f32.mrf.mxu1 }
 0x54d   : > { %v1889_v27 = vpop.f32.mrf.mxu1 }
 0x54e   : > { %2200 = vst.msk [vmem:[#allocation2 + $0x18] sm:$0xff] %vm839_vm2, %v1889_v27 }
 0x54f   : > { %v7369_v21 = vpop.f32.mrf.mxu1 }
 0x551   : > { %v1965_v32 = vpop.f32.mrf.mxu1 }
 0x552   : > { %2201 = vst.msk [vmem:[#allocation2 + $0x20] sm:$0xff] %vm839_vm2, %v1965_v32 }
 0x553   : > { %v7374_v7 = vpop.f32.mrf.mxu1 }
 0x582   : > { %v2041_v33 = vpop.f32.mrf.mxu1 }
 0x583   : > { %2202 = vst.msk [vmem:[#allocation2 + $0x28] sm:$0xff] %vm839_vm2, %v2041_v33 }
 0x584   : > { %v7379_v42 = vpop.f32.mrf.mxu1 }
 0x586   : > { %v2117_v50 = vpop.f32.mrf.mxu1 }
 0x587   : > { %2203 = vst.msk [vmem:[#allocation2 + $0x30] sm:$0xff] %vm839_vm2, %v2117_v50 }
 0x588   : > { %v7384_v40 = vpop.f32.mrf.mxu1 }
 0x58a   : > { %v2279_v62 = vpop.f32.mrf.mxu1 }
 0x58b   : > { %v2280_v52 = vadd.f32 %v2279_v62, %v8306_v49 }
 0x58c   : > { %v7394_v54 = vpop.f32.mrf.mxu1 }
 0x58d   : > { %v2829_v45 = vsel %vm839_vm2, %v2280_v52, -inf }
 0x58e   : > { %2830 = vmax.xlane.f32.xlu0 %v2829_v45  ;;  %v2435_v19 = vpop.f32.mrf.mxu1 }
 0x58f   : > { %v2436_v23 = vadd.f32 %v2435_v19, %v8320_v43 }
 0x590   : > { %v7404_v39 = vpop.f32.mrf.mxu1 }
 0x591   : > { %v2835_v16 = vsel %vm839_vm2, %v2436_v23, -inf }
 0x592   : > { %2836 = vmax.xlane.f32.xlu0 %v2835_v16  ;;  %v2591_v41 = vpop.f32.mrf.mxu1 }
 0x593   : > { %v8592_v55 = vadd.f32 %v2591_v41, %v8331_v12 }
 0x594   : > { %v7414_v56 = vpop.f32.mrf.mxu1 }
 0x595   : > { %v2841_v58 = vsel %vm839_vm2, %v8592_v55, -inf }
 0x596   : > { %v2747_v44 = vpop.f32.mrf.mxu1 }
 0x597   : > { %v8597_v57 = vadd.f32 %v2747_v44, %v8342_v46 }
 0x598   : > { %v7424_v2 = vpop.f32.mrf.mxu1 }
 0x599   : > { %v2847_v27 = vsel %vm839_vm2, %v8597_v57, -inf }
 0x5b7   : > { %v2193_v11 = vpop.f32.mrf.mxu0 }
 0x5b8   : > { %2204 = vst.msk [vmem:[#allocation2 + $0x38] sm:$0xff] %vm839_vm2, %v2193_v11 }
 0x5b9   : > { %v7389_v47 = vpop.f32.mrf.mxu0 }
 0x5bb   : > { %v2357_v51 = vpop.f32.mrf.mxu0 }
 0x5bc   : > { %v2358_v5 = vadd.f32 %v2357_v51, %v8312_v26 }
 0x5bd   : > { %v7399_v25 = vpop.f32.mrf.mxu0 }
 0x5be   : > { %v2832_v61 = vsel %vm839_vm2, %v2358_v5, -inf }
 0x5bf   : > { %2833 = vmax.xlane.f32.xlu1 %v2832_v61  ;;  %v2513_v8 = vpop.f32.mrf.mxu0 }
 0x5c0   : > { %v2514_v17 = vadd.f32 %v2513_v8, %v8326_v0 }
 0x5c1   : > { %v7409_v59 = vpop.f32.mrf.mxu0 }
 0x5c2   : > { %v2838_v30 = vsel %vm839_vm2, %v2514_v17, -inf }
 0x5c3   : > { %v2669_v48 = vpop.f32.mrf.mxu0  ;;  %2839 = vmax.xlane.f32.xlu0 %v2838_v30 }
 0x5c4   : > { %v2670_v4 = vadd.f32 %v2669_v48, %v8336_v28 }
 0x5c5   : > { %v7419_v34 = vpop.f32.mrf.mxu0 }
 0x5c6   : > { %v2844_v35 = vsel %vm839_vm2, %v2670_v4, -inf }
 0x5c7   : > { %2845 = vmax.xlane.f32.xlu1 %v2844_v35  ;;  %v2825_v37 = vpop.f32.mrf.mxu0  ;;  %2842 = vmax.xlane.f32.xlu0 %v2841_v58 }
 0x5c8   : > { %v8623_v21 = vadd.f32 %v2825_v37, %v8356_v60 }
 0x5c9   : > { %v7429_v63 = vpop.f32.mrf.mxu0 }
 0x5ca   : > { %v2850_v32 = vsel %vm839_vm2, %v8623_v21, -inf }
 0x5cb   : > { %2848 = vmax.xlane.f32.xlu0 %v2847_v27 }
 0x5d8   : > { %3033 = vrot.lane.b32.xlu1 %v8180_v1, %s7940_s19 }
 0x5dc   : > { %3109 = vrot.lane.b32.xlu1 %v8186_v6, %s7940_s19 }
 0x5e0   : > { %3185 = vrot.lane.b32.xlu1 %v8189_v9, %s7940_s19 }
 0x5e1   : > { %2957 = vrot.lane.b32.xlu0 %v8182_v3, %s7940_s19 }
 0x5e4   : > { %3337 = vrot.lane.b32.xlu1 %v8195_v13, %s7940_s19 }
 0x5e5   : > { %3261 = vrot.lane.b32.xlu0 %v8191_v10, %s7940_s19 }
 0x5e8   : > { %3489 = vrot.lane.b32.xlu1 %v8201_v15, %s7940_s19 }
 0x5e9   : > { %3413 = vrot.lane.b32.xlu0 %v8197_v14, %s7940_s19 }
 0x5ec   : > { %3686 = vrot.lane.b32.xlu1 %v8180_v1, %s7941_s20 }
 0x5ed   : > { %3608 = vrot.lane.b32.xlu0 %v8182_v3, %s7941_s20 }
 0x5f0   : > { %3684 = vrot.lane.b32.xlu1 %v8227_v20, %s7942_s22 }
 0x5f1   : > { %3606 = vrot.lane.b32.xlu0 %v8218_v18, %s7942_s22 }
 0x5f5   : > { %3764 = vrot.lane.b32.xlu0 %v8186_v6, %s7941_s20 }
 0x614   : > { %2851 = vmax.xlane.f32.xlu1 %v2850_v32 }
 0x617   : > { %v8627_v7 = vpop.xlane.xlu0 %2830 }
 0x618   : > { %v2853_v33 = vmax.f32 %v8627_v7, 0.0 }
 0x61a   : > { %v2861_v42 = vsub.f32 %v2280_v52, %v2853_v33 }
 0x61b   : > { %v8632_v50 = vpop.xlane.xlu0 %2836 }
 0x61c   : > { %v2869_v40 = vmul.f32 1.442695, %v2861_v42  ;;  %v2855_v62 = vmax.f32 %v8632_v50, 0.0 }
 0x61e   : > { %7758 = vpow2.f32 %v2869_v40  ;;  %v2863_v54 = vsub.f32 %v2436_v23, %v2855_v62 }
 0x620   : > { %v2873_v45 = vmul.f32 1.442695, %v2863_v54 }
 0x622   : > { %7760 = vpow2.f32 %v2873_v45 }
 0x625   : > { %3842 = vrot.lane.b32.xlu1 %v8189_v9, %s7941_s20 }
 0x62b   : > { %v8639_v19 = vpop.eup %7758 }
 0x62c   : > { %v2885_v39 = vsel %vm839_vm2, %v8639_v19, 0.0 }
 0x62d   : > { %2886 = vadd.xlane.f32.xlu0 %v2885_v39 }
 0x62f   : > { %v8643_v52 = vpop.eup %7760 }
 0x630   : > { %v2891_v16 = vsel %vm839_vm2, %v8643_v52, 0.0 }
 0x631   : > { %2892 = vadd.xlane.f32.xlu0 %v2891_v16 }
 0x648   : > { %v8647_v41 = vpop.xlane.xlu1 %2833 }
 0x649   : > { %v2854_v23 = vmax.f32 %v8647_v41, 0.0 }
 0x64b   : > { %v2862_v56 = vsub.f32 %v2358_v5, %v2854_v23 }
 0x64c   : > { %v8652_v44 = vpop.xlane.xlu0 %2839 }
 0x64d   : > { %v2871_v2 = vmul.f32 1.442695, %v2862_v56  ;;  %v2856_v11 = vmax.f32 %v8652_v44, 0.0 }
 0x64f   : > { %7762 = vpow2.f32 %v2871_v2  ;;  %v2864_v47 = vsub.f32 %v2514_v17, %v2856_v11 }
 0x650   : > { %v8657_v51 = vpop.xlane.xlu1 %2845  ;;  %v8659_v25 = vpop.xlane.xlu0 %2842 }
 0x651   : > { %v2875_v61 = vmul.f32 1.442695, %v2864_v47  ;;  %v9525_v8 = vmax.f32 %v8657_v51, 0.0  ;;  %v9524_v59 = vmax.f32 %v8659_v25, 0.0 }
 0x653   : > { %7764 = vpow2.f32 %v2875_v61  ;;  %v2866_v5 = vsub.f32 %v2670_v4, %v9525_v8  ;;  %v2865_v30 = vsub.f32 %v8592_v55, %v9524_v59 }
 0x654   : > { %v3034_v48 = vpop.permute.xlu1 %3033  ;;  %v8668_v34 = vpop.xlane.xlu0 %2848 }
 0x655   : > { %v2879_v17 = vmul.f32 1.442695, %v2866_v5  ;;  %v2877_v35 = vmul.f32 1.442695, %v2865_v30  ;;  %7436 = vmatpush3.msra.mxu0 %v3034_v48  ;;  %v9523_v58 = vmax.f32 %v8668_v34, 0.0 }
 0x656   : > { %7445 = vmatprep.subr.mxu0 %v9531_v53 }
 0x657   : > { %7766 = vpow2.f32 %v2879_v17  ;;  %v2867_v37 = vsub.f32 %v8597_v57, %v9523_v58 }
 0x658   : > { %v2958_v4 = vpop.permute.xlu0 %2957  ;;  %7768 = vpow2.f32 %v2877_v35  ;;  %v3110_v56 = vpop.permute.xlu1 %3109 }
 0x659   : > { %7431 = vmatpush3.msra.mxu1 %v2958_v4  ;;  %v2881_v63 = vmul.f32 1.442695, %v2867_v37 }
 0x65a   : > { %7440 = vmatprep.subr.mxu1 %v9531_v53 }
 0x65b   : > { %7770 = vpow2.f32 %v2881_v63  ;;  %v2909_v63 = vsub.f32 0.0, %v2853_v33 }
 0x65c   : > { %v8676_v55 = vpop.eup %7762  ;;  %v8698_v2 = vpop.permute.xlu1 %3185 }
 0x65d   : > { %v2888_v27 = vsel %vm839_vm2, %v8676_v55, 0.0  ;;  %v3262_v48 = vpop.permute.xlu0 %3261 }
 0x65e   : > { %2889 = vadd.xlane.f32.xlu1 %v2888_v27 }
 0x660   : > { %v8680_v32 = vpop.eup %7764  ;;  %v8704_v47 = vpop.permute.xlu1 %3337 }
 0x661   : > { %v2894_v42 = vsel %vm839_vm2, %v8680_v32, 0.0  ;;  %v8721_v37 = vpop.permute.xlu0 %3413 }
 0x662   : > { %2895 = vadd.xlane.f32.xlu1 %v2894_v42  ;;  %v2917_v42 = vmul.f32 1.442695, %v2909_v63 }
 0x664   : > { %v8684_v57 = vpop.eup %7766  ;;  %v8708_v61 = vpop.permute.xlu1 %3489 }
 0x665   : > { %v2900_v40 = vsel %vm839_vm2, %v8684_v57, 0.0  ;;  %v8688_v54 = vpop.eup %7768 }
 0x666   : > { %2901 = vadd.xlane.f32.xlu1 %v2900_v40  ;;  %v2897_v45 = vsel %vm839_vm2, %v8688_v54, 0.0  ;;  %v2911_v40 = vsub.f32 0.0, %v2855_v62 }
 0x667   : > { %2898 = vadd.xlane.f32.xlu0 %v2897_v45  ;;  %v8730_v45 = vpop.permute.xlu0 %3608 }
 0x668   : > { %v8692_v39 = vpop.eup %7770  ;;  %v8714_v5 = vpop.permute.xlu1 %3686 }
 0x669   : > { %v2903_v16 = vsel %vm839_vm2, %v8692_v39, 0.0 }
 0x66b   : > { %2904 = vadd.xlane.f32.xlu0 %v2903_v16  ;;  %v2921_v16 = vmul.f32 1.442695, %v2911_v40  ;;  %v8732_v58 = vpop.permute.xlu0 %3606 }
 0x66c   : > { %v8716_v30 = vpop.permute.xlu1 %3684 }
 0x66f   : > { %v8736_v8 = vpop.permute.xlu0 %3764 }
 0x677   : > { %3840 = vrot.lane.b32.xlu1 %v8245_v24, %s7942_s22 }
 0x681   : > { %3762 = vrot.lane.b32.xlu0 %v8236_v22, %s7942_s22 }
 0x685   : > { %3920 = vrot.lane.b32.xlu0 %v8191_v10, %s7941_s20 }
 0x689   : > { %3918 = vrot.lane.b32.xlu0 %v8254_v29, %s7942_s22 }
 0x68d   : > { %4076 = vrot.lane.b32.xlu0 %v8197_v14, %s7941_s20 }
 0x691   : > { %4074 = vrot.lane.b32.xlu0 %v8276_v36, %s7942_s22 }
 0x69d   : > { %v8718_v17 = vpop.xlane.xlu1 %2851 }
 0x69e   : > { %v2860_v35 = vmax.f32 %v8718_v17, 0.0 }
 0x6a0   : > { %v2868_v4 = vsub.f32 %v8623_v21, %v2860_v35 }
 0x6a1   : > { %v8768_v41 = vpop.permute.xlu1 %3842 }
 0x6a2   : > { %v2883_v27 = vmul.f32 1.442695, %v2868_v4 }
 0x6a4   : > { %7772 = vpow2.f32 %v2883_v27 }
 0x6a5   : > { %7774 = vpow2.f32 %v2917_v42 }
 0x6a6   : > { %7776 = vpow2.f32 %v2921_v16 }
 0x6b1   : > { %v8734_v59 = vpop.eup %7772 }
 0x6b2   : > { %v2906_v21 = vsel %vm839_vm2, %v8734_v59, 0.0  ;;  %v7775_v7 = vpop.eup %7774 }
 0x6b3   : > { %2907 = vadd.xlane.f32.xlu1 %v2906_v21  ;;  %v7777_v50 = vpop.eup %7776 }
 0x6b6   : > { %v2887_v33 = vpop.xlane.xlu0 %2886 }
 0x6b7   : > { %v2933_v4 = vadd.f32 %v7775_v7, %v2887_v33  ;;  %v9535_v7 = vmax.f32 %v8657_v51, 0.0  ;;  %v9536_v33 = vmax.f32 %v8659_v25, 0.0 }
 0x6b9   : > { %7778 = vrcp.f32 %v2933_v4  ;;  %v2913_v4 = vsub.f32 0.0, %v9536_v33 }
 0x6ba   : > { %v2893_v62 = vpop.xlane.xlu0 %2892 }
 0x6bb   : > { %v2935_v63 = vadd.f32 %v7777_v50, %v2893_v62  ;;  %v2925_v62 = vmul.f32 1.442695, %v2913_v4 }
 0x6bd   : > { %7780 = vrcp.f32 %v2935_v63  ;;  %v9537_v63 = vmax.f32 %v8668_v34, 0.0 }
 0x6c4   : > { %3998 = vrot.lane.b32.xlu1 %v8195_v13, %s7941_s20 }
 0x6c6   : > { %v7779_v27 = vpop.eup %7778 }
 0x6c7   : > { %v2949_v42 = vmul.f32 %v7779_v27, %v8639_v19  ;;  %v2910_v19 = vsub.f32 0.0, %v2854_v23  ;;  %v2915_v27 = vsub.f32 0.0, %v9537_v63 }
 0x6c8   : > { %3996 = vrot.lane.b32.xlu1 %v8265_v31, %s7942_s22 }
 0x6c9   : > { %7433 = vmatmul.mubr.msk.f32.vlgmr.msra.gmra.mxu1 %vm839_vm2, %v2949_v42  ;;  %v2929_v23 = vmul.f32 1.442695, %v2915_v27 }
 0x6ca   : > { %v7781_v40 = vpop.eup %7780  ;;  %7441 = vmatpush3.msra.mxu1 %v3110_v56  ;;  %7442 = vmatprep.mubr.msk.f32.mxu1 %vm7935_vm1, %v9531_v53  ;;  %v2919_v56 = vmul.f32 1.442695, %v2910_v19 }
 0x6cb   : > { %7450 = vmatprep.subr.mxu1 %v9531_v53  ;;  %v2951_v16 = vmul.f32 %v7781_v40, %v8643_v52  ;;  %v2912_v52 = vsub.f32 0.0, %v2856_v11 }
 0x6cc   : > { %4154 = vrot.lane.b32.xlu1 %v8201_v15, %s7941_s20  ;;  %7782 = vpow2.f32 %v2919_v56 }
 0x6cd   : > { %7443 = vmatmul.mubr.msk.f32.vlgmr.msra.gmra.mxu1 %vm839_vm2, %v2951_v16  ;;  %v2923_v21 = vmul.f32 1.442695, %v2912_v52 }
 0x6ce   : > { %7451 = vmatpush3.msra.mxu1 %v3262_v48  ;;  %7452 = vmatprep.mubr.msk.f32.mxu1 %vm7935_vm1, %v9531_v53  ;;  %v2914_v48 = vsub.f32 0.0, %v9535_v7 }
 0x6cf   : > { %7460 = vmatprep.subr.mxu1 %v9531_v53  ;;  %7784 = vpow2.f32 %v2923_v21 }
 0x6d0   : > { %4152 = vrot.lane.b32.xlu1 %v8287_v38, %s7942_s22  ;;  %v2927_v50 = vmul.f32 1.442695, %v2914_v48 }
 0x6d2   : > { %7786 = vpow2.f32 %v2927_v50 }
 0x6d3   : > { %7788 = vpow2.f32 %v2925_v62 }
 0x6d4   : > { %7790 = vpow2.f32 %v2929_v23 }
 0x6d9   : > { %v7783_v44 = vpop.eup %7782 }
 0x6dc   : > { %v7785_v51 = vpop.eup %7784 }
 0x6df   : > { %v7787_v16 = vpop.eup %7786 }
 0x6e0   : > { %v7789_v52 = vpop.eup %7788 }
 0x6e1   : > { %v7791_v7 = vpop.eup %7790 }
 0x6e7   : > { %v2890_v11 = vpop.xlane.xlu1 %2889 }
 0x6e8   : > { %v2934_v42 = vadd.f32 %v7783_v44, %v2890_v11 }
 0x6ea   : > { %7792 = vrcp.f32 %v2934_v42 }
 0x6eb   : > { %v2896_v40 = vpop.xlane.xlu1 %2895 }
 0x6ec   : > { %v2936_v25 = vadd.f32 %v7785_v51, %v2896_v40 }
 0x6ee   : > { %7794 = vrcp.f32 %v2936_v25 }
 0x6ef   : > { %v2902_v19 = vpop.xlane.xlu1 %2901 }
 0x6f0   : > { %v2938_v56 = vadd.f32 %v7787_v16, %v2902_v19  ;;  %v2899_v34 = vpop.xlane.xlu0 %2898 }
 0x6f1   : > { %v2937_v21 = vadd.f32 %v7789_v52, %v2899_v34 }
 0x6f2   : > { %7796 = vrcp.f32 %v2938_v56 }
 0x6f3   : > { %7798 = vrcp.f32 %v2937_v21 }
 0x6f4   : > { %v2905_v48 = vpop.xlane.xlu0 %2904 }
 0x6f5   : > { %v2939_v33 = vadd.f32 %v7791_v7, %v2905_v48 }
 0x6f7   : > { %v7793_v4 = vpop.eup %7792  ;;  %7800 = vrcp.f32 %v2939_v33 }
 0x6f8   : > { %v2950_v50 = vmul.f32 %v7793_v4, %v8676_v55  ;;  %v3763_v23 = vpop.permute.xlu0 %3762 }
 0x6fa   : > { %7438 = vmatmul.mubr.msk.f32.vlgmr.msra.gmra.mxu0 %vm839_vm2, %v2950_v50 }
 0x6fb   : > { %v7795_v62 = vpop.eup %7794  ;;  %7446 = vmatpush3.msra.mxu0 %v8698_v2  ;;  %7447 = vmatprep.mubr.msk.f32.mxu0 %vm7935_vm1, %v9531_v53 }
 0x6fc   : > { %7455 = vmatprep.subr.mxu0 %v9531_v53  ;;  %v2952_v63 = vmul.f32 %v7795_v62, %v8680_v32 }
 0x6fe   : > { %7448 = vmatmul.mubr.msk.f32.vlgmr.msra.gmra.mxu0 %vm839_vm2, %v2952_v63 }
 0x6ff   : > { %v7797_v27 = vpop.eup %7796  ;;  %7456 = vmatpush3.msra.mxu0 %v8704_v47  ;;  %7457 = vmatprep.mubr.msk.f32.mxu0 %vm7935_vm1, %v9531_v53  ;;  %v3921_v47 = vpop.permute.xlu0 %3920 }
 0x700   : > { %7465 = vmatprep.subr.mxu0 %v9531_v53  ;;  %v2954_v55 = vmul.f32 %v7797_v27, %v8684_v57  ;;  %v7799_v2 = vpop.eup %7798 }
 0x701   : > { %v2953_v44 = vmul.f32 %v7799_v2, %v8688_v54 }
 0x702   : > { %7458 = vmatmul.mubr.msk.f32.vlgmr.msra.gmra.mxu0 %vm839_vm2, %v2954_v55 }
 0x703   : > { %7466 = vmatpush3.msra.mxu0 %v8708_v61  ;;  %7467 = vmatprep.mubr.msk.f32.mxu0 %vm7935_vm1, %v9531_v53  ;;  %v3919_v54 = vpop.permute.xlu0 %3918 }
 0x704   : > { %7453 = vmatmul.mubr.msk.f32.vlgmr.msra.gmra.mxu1 %vm839_vm2, %v2953_v44  ;;  %7475 = vmatprep.subr.mxu0 %v9531_v53  ;;  %v7801_v32 = vpop.eup %7800 }
 0x705   : > { %7461 = vmatpush3.msra.mxu1 %v8721_v37  ;;  %7462 = vmatprep.mubr.msk.f32.mxu1 %vm7935_vm1, %v9531_v53  ;;  %v2955_v57 = vmul.f32 %v7801_v32, %v8692_v39  ;;  %v3841_v37 = vpop.permute.xlu1 %3840 }
 0x706   : > { %7470 = vmatprep.subr.mxu1 %v9531_v53 }
 0x707   : > { %v4077_v39 = vpop.permute.xlu0 %4076 }
 0x708   : > { %7463 = vmatmul.mubr.msk.f32.vlgmr.msra.gmra.mxu1 %vm839_vm2, %v2955_v57 }
 0x709   : > { %7471 = vmatpush3.xpose.msk.msra.mxu1 %vm839_vm2, %v8730_v45  ;;  %7472 = vmatprep.mubr.msk.f32.mxu1 %vm7935_vm1, %v9531_v53 }
 0x70a   : > { %7480 = vmatprep.subr.mxu1 %v9531_v53 }
 0x70c   : > { %7473 = vmatmul.mubr.msk.f32.vlgmr.msra.gmra.mxu1 %vm839_vm2, %v8732_v58  ;;  %v2916_v58 = vsub.f32 0.0, %v2860_v35 }
 0x70d   : > { %7481 = vmatpush3.xpose.msk.msra.mxu1 %vm839_vm2, %v8736_v8  ;;  %7482 = vmatprep.mubr.msk.f32.mxu1 %vm7935_vm1, %v9531_v53  ;;  %v4075_v8 = vpop.permute.xlu0 %4074 }
 0x70e   : > { %7490 = vmatprep.subr.mxu1 %v9531_v53  ;;  %v2931_v61 = vmul.f32 1.442695, %v2916_v58 }
 0x710   : > { %7483 = vmatmul.mubr.msk.f32.vlgmr.msra.gmra.mxu1 %vm839_vm2, %v3763_v23  ;;  %7802 = vpow2.f32 %v2931_v61 }
 0x711   : > { %7491 = vmatpush3.xpose.msk.msra.mxu1 %vm839_vm2, %v3921_v47  ;;  %7492 = vmatprep.mubr.msk.f32.mxu1 %vm7935_vm1, %v9531_v53 }
 0x712   : > { %7500 = vmatprep.subr.mxu1 %v9531_v53 }
 0x714   : > { %7493 = vmatmul.mubr.msk.f32.vlgmr.msra.gmra.mxu1 %vm839_vm2, %v3919_v54 }
 0x715   : > { %7501 = vmatpush3.xpose.msk.msra.mxu1 %vm839_vm2, %v4077_v39  ;;  %7502 = vmatprep.mubr.msk.f32.mxu1 %vm7935_vm1, %v9531_v53 }
 0x716   : > { %7510 = vmatprep.subr.mxu1 %v9531_v53 }
 0x718   : > { %7503 = vmatmul.mubr.msk.f32.vlgmr.msra.gmra.mxu1 %vm839_vm2, %v4075_v8 }
 0x719   : > { %7512 = vmatprep.mubr.msk.f32.mxu1 %vm7935_vm1, %v9531_v53 }
 0x71d   : > { %v7803_v45 = vpop.eup %7802 }
 0x73c   : > { %v2908_v11 = vpop.xlane.xlu1 %2907 }
 0x73d   : > { %v2940_v42 = vadd.f32 %v7803_v45, %v2908_v11 }
 0x73f   : > { %7804 = vrcp.f32 %v2940_v42 }
 0x740   : > { %v3999_v40 = vpop.permute.xlu1 %3998 }
 0x744   : > { %v3997_v17 = vpop.permute.xlu1 %3996 }
 0x74c   : > { %v7805_v51 = vpop.eup %7804 }
 0x74d   : > { %v2956_v25 = vmul.f32 %v7805_v51, %v8734_v59  ;;  %v4155_v59 = vpop.permute.xlu1 %4154 }
 0x74f   : > { %7468 = vmatmul.mubr.msk.f32.vlgmr.msra.gmra.mxu0 %vm839_vm2, %v2956_v25 }
 0x750   : > { %7476 = vmatpush3.xpose.msk.msra.mxu0 %vm839_vm2, %v8714_v5  ;;  %7477 = vmatprep.mubr.msk.f32.mxu0 %vm7935_vm1, %v9531_v53 }
 0x751   : > { %7485 = vmatprep.subr.mxu0 %v9531_v53  ;;  %v4153_v5 = vpop.permute.xlu1 %4152 }
 0x753   : > { %7478 = vmatmul.mubr.msk.f32.vlgmr.msra.gmra.mxu0 %vm839_vm2, %v8716_v30 }
 0x754   : > { %7486 = vmatpush3.xpose.msk.msra.mxu0 %vm839_vm2, %v8768_v41  ;;  %7487 = vmatprep.mubr.msk.f32.mxu0 %vm7935_vm1, %v9531_v53 }
 0x755   : > { %7495 = vmatprep.subr.mxu0 %v9531_v53 }
 0x757   : > { %7488 = vmatmul.mubr.msk.f32.vlgmr.msra.gmra.mxu0 %vm839_vm2, %v3841_v37 }
 0x758   : > { %7496 = vmatpush3.xpose.msk.msra.mxu0 %vm839_vm2, %v3999_v40  ;;  %7497 = vmatprep.mubr.msk.f32.mxu0 %vm7935_vm1, %v9531_v53 }
 0x759   : > { %7505 = vmatprep.subr.mxu0 %v9531_v53 }
 0x75b   : > { %7498 = vmatmul.mubr.msk.f32.vlgmr.msra.gmra.mxu0 %vm839_vm2, %v3997_v17 }
 0x75c   : > { %7506 = vmatpush3.xpose.msk.msra.mxu0 %vm839_vm2, %v4155_v59  ;;  %7507 = vmatprep.mubr.msk.f32.mxu0 %vm7935_vm1, %v9531_v53 }
 0x75d   : > { %7515 = vmatprep.subr.mxu0 %v9531_v53 }
 0x75f   : > { %7508 = vmatmul.mubr.msk.f32.vlgmr.msra.gmra.mxu0 %vm839_vm2, %v4153_v5 }
 0x760   : > { %7517 = vmatprep.mubr.msk.f32.mxu0 %vm7935_vm1, %v9531_v53 }
 0x789   : > { %v8850_v30 = vpop.f32.mrf.mxu1 }
 0x78b   : > { %v7434_v35 = vpop.f32.mrf.mxu1 }
 0x78d   : > { %v8852_v41 = vpop.f32.mrf.mxu1 }
 0x78f   : > { %v7444_v16 = vpop.f32.mrf.mxu1 }
 0x7ba   : > { %v8854_v19 = vpop.f32.mrf.mxu0 }
 0x7bc   : > { %v7439_v56 = vpop.f32.mrf.mxu0 }
 0x7be   : > { %v8856_v52 = vpop.f32.mrf.mxu0 }
 0x7c0   : > { %v7449_v34 = vpop.f32.mrf.mxu0 }
 0x7c2   : > { %v8858_v21 = vpop.f32.mrf.mxu0 }
 0x7c4   : > { %v8860_v7 = vpop.f32.mrf.mxu1  ;;  %v7459_v48 = vpop.f32.mrf.mxu0 }
 0x7c6   : > { %v7454_v33 = vpop.f32.mrf.mxu1 }
 0x7c8   : > { %v8862_v4 = vpop.f32.mrf.mxu1 }
 0x7ca   : > { %v7464_v50 = vpop.f32.mrf.mxu1 }
 0x7cc   : > { %v3680_v62 = vpop.f32.mrf.mxu1 }
 0x7cd   : > { %v3681_v63 = vadd.f32 %v3680_v62, %v8306_v49 }
 0x7ce   : > { %v7474_v27 = vpop.f32.mrf.mxu1 }
 0x7cf   : > { %v4230_v23 = vsel %vm839_vm2, %v3681_v63, -inf }
 0x7d0   : > { %4231 = vmax.xlane.f32.xlu0 %v4230_v23  ;;  %v3836_v55 = vpop.f32.mrf.mxu1 }
 0x7d1   : > { %v3837_v2 = vadd.f32 %v3836_v55, %v8320_v43 }
 0x7d2   : > { %v7484_v44 = vpop.f32.mrf.mxu1 }
 0x7d3   : > { %v4236_v32 = vsel %vm839_vm2, %v3837_v2, -inf }
 0x7d4   : > { %4237 = vmax.xlane.f32.xlu0 %v4236_v32  ;;  %v3992_v47 = vpop.f32.mrf.mxu1 }
 0x7d5   : > { %v8874_v25 = vadd.f32 %v3992_v47, %v8331_v12 }
 0x7d6   : > { %v7494_v57 = vpop.f32.mrf.mxu1 }
 0x7d7   : > { %v4242_v34 = vsel %vm839_vm2, %v8874_v25, -inf }
 0x7d8   : > { %v4148_v54 = vpop.f32.mrf.mxu1 }
 0x7d9   : > { %v8879_v16 = vadd.f32 %v4148_v54, %v8342_v46 }
 0x7da   : > { %v7504_v39 = vpop.f32.mrf.mxu1 }
 0x7db   : > { %v4248_v50 = vsel %vm839_vm2, %v8879_v16, -inf }
 0x80f   : > { %v8868_v8 = vpop.f32.mrf.mxu0 }
 0x811   : > { %v7469_v58 = vpop.f32.mrf.mxu0 }
 0x813   : > { %v3758_v61 = vpop.f32.mrf.mxu0 }
 0x814   : > { %v3759_v37 = vadd.f32 %v3758_v61, %v8312_v26 }
 0x815   : > { %v7479_v45 = vpop.f32.mrf.mxu0 }
 0x816   : > { %v4233_v11 = vsel %vm839_vm2, %v3759_v37, -inf }
 0x817   : > { %4234 = vmax.xlane.f32.xlu1 %v4233_v11  ;;  %v3914_v42 = vpop.f32.mrf.mxu0 }
 0x818   : > { %v3915_v51 = vadd.f32 %v3914_v42, %v8326_v0 }
 0x819   : > { %v7489_v40 = vpop.f32.mrf.mxu0 }
 0x81a   : > { %v4239_v17 = vsel %vm839_vm2, %v3915_v51, -inf }
 0x81b   : > { %v4070_v59 = vpop.f32.mrf.mxu0  ;;  %4240 = vmax.xlane.f32.xlu0 %v4239_v17 }
 0x81c   : > { %v4071_v5 = vadd.f32 %v4070_v59, %v8336_v28 }
 0x81d   : > { %v7499_v35 = vpop.f32.mrf.mxu0 }
 0x81e   : > { %v4245_v56 = vsel %vm839_vm2, %v4071_v5, -inf }
 0x81f   : > { %4246 = vmax.xlane.f32.xlu1 %v4245_v56  ;;  %v4226_v48 = vpop.f32.mrf.mxu0  ;;  %4243 = vmax.xlane.f32.xlu0 %v4242_v34 }
 0x820   : > { %v8915_v47 = vadd.f32 %v4226_v48, %v8356_v60 }
 0x821   : > { %v7509_v33 = vpop.f32.mrf.mxu0 }
 0x822   : > { %v4251_v57 = vsel %vm839_vm2, %v8915_v47, -inf }
 0x823   : > { %4249 = vmax.xlane.f32.xlu0 %v4248_v50 }
 0x830   : > { %4434 = vrot.lane.b32.xlu1 %v8180_v1, %s7943_s25 }
 0x834   : > { %4510 = vrot.lane.b32.xlu1 %v8186_v6, %s7943_s25 }
 0x838   : > { %4586 = vrot.lane.b32.xlu1 %v8189_v9, %s7943_s25 }
 0x839   : > { %4358 = vrot.lane.b32.xlu0 %v8182_v3, %s7943_s25 }
 0x83c   : > { %4738 = vrot.lane.b32.xlu1 %v8195_v13, %s7943_s25 }
 0x83d   : > { %4662 = vrot.lane.b32.xlu0 %v8191_v10, %s7943_s25 }
 0x840   : > { %4890 = vrot.lane.b32.xlu1 %v8201_v15, %s7943_s25 }
 0x841   : > { %4814 = vrot.lane.b32.xlu0 %v8197_v14, %s7943_s25 }
 0x844   : > { %5087 = vrot.lane.b32.xlu1 %v8180_v1, %s7944_s26 }
 0x845   : > { %5009 = vrot.lane.b32.xlu0 %v8182_v3, %s7944_s26 }
 0x848   : > { %5085 = vrot.lane.b32.xlu1 %v8227_v20, %s7945_s28 }
 0x849   : > { %5007 = vrot.lane.b32.xlu0 %v8218_v18, %s7945_s28 }
 0x84d   : > { %5165 = vrot.lane.b32.xlu0 %v8186_v6, %s7944_s26 }
 0x859   : > { %v8904_v62 = vpop.xlane.xlu0 %4231 }
 0x85a   : > { %v4254_v27 = vmax.f32 %v8904_v62, 0.0 }
 0x85c   : > { %v4262_v23 = vsub.f32 %v3681_v63, %v4254_v27 }
 0x85d   : > { %v8909_v55 = vpop.xlane.xlu0 %4237 }
 0x85e   : > { %v4270_v44 = vmul.f32 1.442695, %v4262_v23  ;;  %v4256_v32 = vmax.f32 %v8909_v55, 0.0 }
 0x860   : > { %7806 = vpow2.f32 %v4270_v44  ;;  %v4264_v20 = vsub.f32 %v3837_v2, %v4256_v32 }
 0x862   : > { %v4274_v18 = vmul.f32 1.442695, %v4264_v20 }
 0x864   : > { %7808 = vpow2.f32 %v4274_v18 }
 0x86c   : > { %4252 = vmax.xlane.f32.xlu1 %v4251_v57 }
 0x86d   : > { %v8919_v54 = vpop.eup %7806 }
 0x86e   : > { %v4286_v63 = vsel %vm839_vm2, %v8919_v54, 0.0 }
 0x86f   : > { %4287 = vadd.xlane.f32.xlu0 %v4286_v63 }
 0x871   : > { %v8923_v39 = vpop.eup %7808 }
 0x872   : > { %v4292_v2 = vsel %vm839_vm2, %v8923_v39, 0.0 }
 0x873   : > { %4293 = vadd.xlane.f32.xlu0 %v4292_v2 }
 0x87d   : > { %5243 = vrot.lane.b32.xlu1 %v8189_v9, %s7944_s26 }
 0x8a0   : > { %v8929_v58 = vpop.xlane.xlu1 %4234 }
 0x8a1   : > { %v9530_v61 = vmax.f32 %v8929_v58, 0.0 }
 0x8a3   : > { %v4263_v45 = vsub.f32 %v3759_v37, %v9530_v61 }
 0x8a4   : > { %v8934_v11 = vpop.xlane.xlu0 %4240 }
 0x8a5   : > { %v4272_v42 = vmul.f32 1.442695, %v4263_v45  ;;  %v9529_v40 = vmax.f32 %v8934_v11, 0.0 }
 0x8a7   : > { %7810 = vpow2.f32 %v4272_v42  ;;  %v4265_v17 = vsub.f32 %v3915_v51, %v9529_v40 }
 0x8a8   : > { %v8939_v59 = vpop.xlane.xlu1 %4246  ;;  %v8941_v35 = vpop.xlane.xlu0 %4243 }
 0x8a9   : > { %v4276_v56 = vmul.f32 1.442695, %v4265_v17  ;;  %v9528_v34 = vmax.f32 %v8939_v59, 0.0  ;;  %v9527_v48 = vmax.f32 %v8941_v35, 0.0 }
 0x8ab   : > { %7812 = vpow2.f32 %v4276_v56  ;;  %v4267_v37 = vsub.f32 %v4071_v5, %v9528_v34  ;;  %v4266_v33 = vsub.f32 %v8874_v25, %v9527_v48 }
 0x8ac   : > { %v4435_v50 = vpop.permute.xlu1 %4434  ;;  %v8950_v23 = vpop.xlane.xlu0 %4249 }
 0x8ad   : > { %v4280_v51 = vmul.f32 1.442695, %v4267_v37  ;;  %v4278_v44 = vmul.f32 1.442695, %v4266_v33  ;;  %7516 = vmatpush3.msra.mxu0 %v4435_v50  ;;  %v9526_v20 = vmax.f32 %v8950_v23, 0.0 }
 0x8ae   : > { %7525 = vmatprep.subr.mxu0 %v9531_v53 }
 0x8af   : > { %7814 = vpow2.f32 %v4280_v51  ;;  %v4268_v18 = vsub.f32 %v8879_v16, %v9526_v20 }
 0x8b0   : > { %v4359_v5 = vpop.permute.xlu0 %4358  ;;  %7816 = vpow2.f32 %v4278_v44  ;;  %v4511_v50 = vpop.permute.xlu1 %4510 }
 0x8b1   : > { %7511 = vmatpush3.msra.mxu1 %v4359_v5  ;;  %v4282_v57 = vmul.f32 1.442695, %v4268_v18 }
 0x8b2   : > { %7520 = vmatprep.subr.mxu1 %v9531_v53 }
 0x8b3   : > { %7818 = vpow2.f32 %v4282_v57 }
 0x8b4   : > { %v8958_v25 = vpop.eup %7810  ;;  %v8980_v51 = vpop.permute.xlu1 %4586 }
 0x8b5   : > { %v4289_v63 = vsel %vm839_vm2, %v8958_v25, 0.0  ;;  %v4663_v44 = vpop.permute.xlu0 %4662 }
 0x8b6   : > { %4290 = vadd.xlane.f32.xlu1 %v4289_v63  ;;  %v4312_v63 = vsub.f32 0.0, %v4256_v32 }
 0x8b8   : > { %v8962_v2 = vpop.eup %7812  ;;  %v8986_v18 = vpop.permute.xlu1 %4738 }
 0x8b9   : > { %v4295_v45 = vsel %vm839_vm2, %v8962_v2, 0.0  ;;  %v8988_v5 = vpop.permute.xlu0 %4814 }
 0x8ba   : > { %4296 = vadd.xlane.f32.xlu1 %v4295_v45 }
 0x8bc   : > { %v8966_v16 = vpop.eup %7814  ;;  %v8994_v57 = vpop.permute.xlu1 %4890 }
 0x8bd   : > { %v4301_v42 = vsel %vm839_vm2, %v8966_v16, 0.0  ;;  %v8970_v17 = vpop.eup %7816  ;;  %v9000_v45 = vpop.permute.xlu0 %5009 }
 0x8be   : > { %4302 = vadd.xlane.f32.xlu1 %v4301_v42  ;;  %v4298_v56 = vsel %vm839_vm2, %v8970_v17, 0.0  ;;  %v4322_v42 = vmul.f32 1.442695, %v4312_v63 }
 0x8bf   : > { %4299 = vadd.xlane.f32.xlu0 %v4298_v56 }
 0x8c0   : > { %v8974_v37 = vpop.eup %7818 }
 0x8c1   : > { %v4304_v33 = vsel %vm839_vm2, %v8974_v37, 0.0  ;;  %v9006_v62 = vpop.permute.xlu0 %5007 }
 0x8c3   : > { %4305 = vadd.xlane.f32.xlu0 %v4304_v33 }
 0x8c5   : > { %v9010_v56 = vpop.permute.xlu0 %5165 }
 0x8cf   : > { %5241 = vrot.lane.b32.xlu1 %v8245_v24, %s7945_s28  ;;  %v4310_v24 = vsub.f32 0.0, %v4254_v27 }
 0x8d9   : > { %5163 = vrot.lane.b32.xlu0 %v8236_v22, %s7945_s28  ;;  %v4318_v22 = vmul.f32 1.442695, %v4310_v24 }
 0x8db   : > { %7820 = vpow2.f32 %v4318_v22 }
 0x8dc   : > { %7822 = vpow2.f32 %v4322_v42 }
 0x8dd   : > { %5321 = vrot.lane.b32.xlu0 %v8191_v10, %s7944_s26 }
 0x8e1   : > { %5319 = vrot.lane.b32.xlu0 %v8254_v29, %s7945_s28  ;;  %v9004_v29 = vpop.permute.xlu1 %5087 }
 0x8e5   : > { %5477 = vrot.lane.b32.xlu0 %v8197_v14, %s7944_s26  ;;  %v9008_v27 = vpop.permute.xlu1 %5085 }
 0x8e8   : > { %v7821_v32 = vpop.eup %7820 }
 0x8e9   : > { %5475 = vrot.lane.b32.xlu0 %v8276_v36, %s7945_s28  ;;  %v7823_v20 = vpop.eup %7822 }
 0x8f5   : > { %v9012_v33 = vpop.xlane.xlu1 %4252 }
 0x8f6   : > { %v4261_v55 = vmax.f32 %v9012_v33, 0.0 }
 0x8f8   : > { %v4269_v36 = vsub.f32 %v8915_v47, %v4261_v55  ;;  %v4288_v24 = vpop.xlane.xlu0 %4287 }
 0x8f9   : > { %v4334_v22 = vadd.f32 %v7821_v32, %v4288_v24  ;;  %v9538_v32 = vmov 0.0  }
 0x8fa   : > { %v4284_v63 = vmul.f32 1.442695, %v4269_v36 }
 0x8fb   : > { %7824 = vrcp.f32 %v4334_v22 }
 0x8fc   : > { %7826 = vpow2.f32 %v4284_v63  ;;  %v4294_v42 = vpop.xlane.xlu0 %4293 }
 0x8fd   : > { %v4336_v48 = vadd.f32 %v7823_v20, %v4294_v42 }
 0x8ff   : > { %7828 = vrcp.f32 %v4336_v48 }
 0x908   : > { %v7825_v34 = vpop.eup %7824 }
 0x909   : > { %v9018_v40 = vpop.eup %7826  ;;  %v4350_v61 = vmul.f32 %v7825_v34, %v8919_v54 }
 0x90a   : > { %v4307_v53 = vsel %vm839_vm2, %v9018_v40, 0.0 }
 0x90b   : > { %7513 = vmatmul.mubr.msk.f32.vlgmr.msra.gmra.mxu1 %vm839_vm2, %v4350_v61  ;;  %4308 = vadd.xlane.f32.xlu1 %v4307_v53  ;;  %v9539_v53 = vmax.f32 %v8929_v58, 0.0  ;;  %v9540_v61 = vmax.f32 %v8934_v11, 0.0  ;;  %v9050_v58 = vpop.permute.xlu1 %5243 }
 0x90c   : > { %v7829_v47 = vpop.eup %7828  ;;  %7521 = vmatpush3.msra.mxu1 %v4511_v50  ;;  %7522 = vmatprep.mubr.msk.f32.mxu1 %vm7935_vm1, %v9538_v32  ;;  %v9541_v50 = vmax.f32 %v8939_v59, 0.0 }
 0x90d   : > { %7530 = vmatprep.subr.mxu1 %v9538_v32  ;;  %v4352_v48 = vmul.f32 %v7829_v47, %v8923_v39  ;;  %v4311_v54 = vsub.f32 0.0, %v9539_v53  ;;  %v4313_v34 = vsub.f32 0.0, %v9540_v61 }
 0x90f   : > { %7523 = vmatmul.mubr.msk.f32.vlgmr.msra.gmra.mxu1 %vm839_vm2, %v4352_v48  ;;  %v4320_v39 = vmul.f32 1.442695, %v4311_v54  ;;  %v4324_v20 = vmul.f32 1.442695, %v4313_v34 }
 0x910   : > { %7531 = vmatpush3.msra.mxu1 %v4663_v44  ;;  %7532 = vmatprep.mubr.msk.f32.mxu1 %vm7935_vm1, %v9538_v32  ;;  %v4315_v44 = vsub.f32 0.0, %v9541_v50 }
 0x911   : > { %7540 = vmatprep.subr.mxu1 %v9538_v32  ;;  %7830 = vpow2.f32 %v4320_v39 }
 0x912   : > { %7832 = vpow2.f32 %v4324_v20  ;;  %v4328_v24 = vmul.f32 1.442695, %v4315_v44 }
 0x914   : > { %7834 = vpow2.f32 %v4328_v24 }
 0x91c   : > { %5399 = vrot.lane.b32.xlu1 %v8195_v13, %s7944_s26 }
 0x91e   : > { %v7831_v42 = vpop.eup %7830 }
 0x91f   : > { %v7833_v59 = vpop.eup %7832 }
 0x920   : > { %5397 = vrot.lane.b32.xlu1 %v8265_v31, %s7945_s28  ;;  %v9542_v31 = vmax.f32 %v8941_v35, 0.0 }
 0x921   : > { %v7835_v54 = vpop.eup %7834 }
 0x922   : > { %v4314_v36 = vsub.f32 0.0, %v9542_v31 }
 0x924   : > { %5555 = vrot.lane.b32.xlu1 %v8201_v15, %s7944_s26  ;;  %v4326_v22 = vmul.f32 1.442695, %v4314_v36 }
 0x926   : > { %7836 = vpow2.f32 %v4326_v22 }
 0x928   : > { %5553 = vrot.lane.b32.xlu1 %v8287_v38, %s7945_s28  ;;  %v9543_v38 = vmax.f32 %v8950_v23, 0.0 }
 0x92a   : > { %v4316_v63 = vsub.f32 0.0, %v9543_v38 }
 0x92c   : > { %v4330_v11 = vmul.f32 1.442695, %v4316_v63 }
 0x92e   : > { %7838 = vpow2.f32 %v4330_v11 }
 0x933   : > { %v7837_v34 = vpop.eup %7836 }
 0x93b   : > { %v7839_v50 = vpop.eup %7838 }
 0x93f   : > { %v4291_v47 = vpop.xlane.xlu1 %4290 }
 0x940   : > { %v4335_v48 = vadd.f32 %v7831_v42, %v4291_v47 }
 0x942   : > { %7840 = vrcp.f32 %v4335_v48 }
 0x943   : > { %v4297_v53 = vpop.xlane.xlu1 %4296 }
 0x944   : > { %v4337_v35 = vadd.f32 %v7833_v59, %v4297_v53 }
 0x946   : > { %7842 = vrcp.f32 %v4337_v35 }
 0x947   : > { %v4303_v39 = vpop.xlane.xlu1 %4302 }
 0x948   : > { %v4339_v61 = vadd.f32 %v7835_v54, %v4303_v39  ;;  %v4300_v23 = vpop.xlane.xlu0 %4299 }
 0x949   : > { %v4338_v20 = vadd.f32 %v7837_v34, %v4300_v23 }
 0x94a   : > { %7844 = vrcp.f32 %v4339_v61 }
 0x94b   : > { %7846 = vrcp.f32 %v4338_v20 }
 0x94c   : > { %v4306_v44 = vpop.xlane.xlu0 %4305 }
 0x94d   : > { %v4340_v31 = vadd.f32 %v7839_v50, %v4306_v44 }
 0x94f   : > { %v7841_v36 = vpop.eup %7840  ;;  %7848 = vrcp.f32 %v4340_v31 }
 0x950   : > { %v4351_v24 = vmul.f32 %v7841_v36, %v8958_v25  ;;  %v5164_v11 = vpop.permute.xlu0 %5163 }
 0x952   : > { %7518 = vmatmul.mubr.msk.f32.vlgmr.msra.gmra.mxu0 %vm839_vm2, %v4351_v24 }
 0x953   : > { %v7843_v22 = vpop.eup %7842  ;;  %7526 = vmatpush3.msra.mxu0 %v8980_v51  ;;  %7527 = vmatprep.mubr.msk.f32.mxu0 %vm7935_vm1, %v9538_v32 }
 0x954   : > { %7535 = vmatprep.subr.mxu0 %v9538_v32  ;;  %v4353_v38 = vmul.f32 %v7843_v22, %v8962_v2 }
 0x956   : > { %7528 = vmatmul.mubr.msk.f32.vlgmr.msra.gmra.mxu0 %vm839_vm2, %v4353_v38 }
 0x957   : > { %v7845_v63 = vpop.eup %7844  ;;  %7536 = vmatpush3.msra.mxu0 %v8986_v18  ;;  %7537 = vmatprep.mubr.msk.f32.mxu0 %vm7935_vm1, %v9538_v32  ;;  %v5322_v18 = vpop.permute.xlu0 %5321 }
 0x958   : > { %7545 = vmatprep.subr.mxu0 %v9538_v32  ;;  %v4355_v25 = vmul.f32 %v7845_v63, %v8966_v16  ;;  %v7847_v51 = vpop.eup %7846 }
 0x959   : > { %v4354_v42 = vmul.f32 %v7847_v51, %v8970_v17 }
 0x95a   : > { %7538 = vmatmul.mubr.msk.f32.vlgmr.msra.gmra.mxu0 %vm839_vm2, %v4355_v25 }
 0x95b   : > { %7546 = vmatpush3.msra.mxu0 %v8994_v57  ;;  %7547 = vmatprep.mubr.msk.f32.mxu0 %vm7935_vm1, %v9538_v32  ;;  %v5320_v17 = vpop.permute.xlu0 %5319  ;;  %v4317_v57 = vsub.f32 0.0, %v4261_v55 }
 0x95c   : > { %7533 = vmatmul.mubr.msk.f32.vlgmr.msra.gmra.mxu1 %vm839_vm2, %v4354_v42  ;;  %7555 = vmatprep.subr.mxu0 %v9538_v32  ;;  %v7849_v2 = vpop.eup %7848 }
 0x95d   : > { %7541 = vmatpush3.msra.mxu1 %v8988_v5  ;;  %7542 = vmatprep.mubr.msk.f32.mxu1 %vm7935_vm1, %v9538_v32  ;;  %v4356_v16 = vmul.f32 %v7849_v2, %v8974_v37 }
 0x95e   : > { %7550 = vmatprep.subr.mxu1 %v9538_v32 }
 0x95f   : > { %v5478_v37 = vpop.permute.xlu0 %5477 }
 0x960   : > { %7543 = vmatmul.mubr.msk.f32.vlgmr.msra.gmra.mxu1 %vm839_vm2, %v4356_v16 }
 0x961   : > { %7551 = vmatpush3.xpose.msk.msra.mxu1 %vm839_vm2, %v9000_v45  ;;  %7552 = vmatprep.mubr.msk.f32.mxu1 %vm7935_vm1, %v9538_v32  ;;  %v4332_v45 = vmul.f32 1.442695, %v4317_v57 }
 0x962   : > { %7560 = vmatprep.subr.mxu1 %v9538_v32 }
 0x963   : > { %v5476_v5 = vpop.permute.xlu0 %5475  ;;  %7850 = vpow2.f32 %v4332_v45 }
 0x964   : > { %7553 = vmatmul.mubr.msk.f32.vlgmr.msra.gmra.mxu1 %vm839_vm2, %v9006_v62  ;;  %v5242_v62 = vpop.permute.xlu1 %5241 }
 0x965   : > { %7561 = vmatpush3.xpose.msk.msra.mxu1 %vm839_vm2, %v9010_v56  ;;  %7562 = vmatprep.mubr.msk.f32.mxu1 %vm7935_vm1, %v9538_v32 }
 0x966   : > { %7570 = vmatprep.subr.mxu1 %v9538_v32 }
 0x968   : > { %7563 = vmatmul.mubr.msk.f32.vlgmr.msra.gmra.mxu1 %vm839_vm2, %v5164_v11 }
 0x969   : > { %7571 = vmatpush3.xpose.msk.msra.mxu1 %vm839_vm2, %v5322_v18  ;;  %7572 = vmatprep.mubr.msk.f32.mxu1 %vm7935_vm1, %v9538_v32 }
 0x96a   : > { %7580 = vmatprep.subr.mxu1 %v9538_v32 }
 0x96c   : > { %7573 = vmatmul.mubr.msk.f32.vlgmr.msra.gmra.mxu1 %vm839_vm2, %v5320_v17 }
 0x96d   : > { %7581 = vmatpush3.xpose.msk.msra.mxu1 %vm839_vm2, %v5478_v37  ;;  %7582 = vmatprep.mubr.msk.f32.mxu1 %vm7935_vm1, %v9538_v32 }
 0x96e   : > { %7590 = vmatprep.subr.mxu1 %v9538_v32 }
 0x970   : > { %7583 = vmatmul.mubr.msk.f32.vlgmr.msra.gmra.mxu1 %vm839_vm2, %v5476_v5  ;;  %v7851_v56 = vpop.eup %7850 }
 0x971   : > { %7592 = vmatprep.mubr.msk.f32.mxu1 %vm7935_vm1, %v9538_v32 }
 0x994   : > { %v4309_v47 = vpop.xlane.xlu1 %4308 }
 0x995   : > { %v4341_v48 = vadd.f32 %v7851_v56, %v4309_v47 }
 0x997   : > { %7852 = vrcp.f32 %v4341_v48 }
 0x998   : > { %v5400_v53 = vpop.permute.xlu1 %5399 }
 0x99c   : > { %v5398_v33 = vpop.permute.xlu1 %5397 }
 0x9a4   : > { %v7853_v59 = vpop.eup %7852 }
 0x9a5   : > { %v4357_v35 = vmul.f32 %v7853_v59, %v9018_v40  ;;  %v5556_v40 = vpop.permute.xlu1 %5555 }
 0x9a7   : > { %7548 = vmatmul.mubr.msk.f32.vlgmr.msra.gmra.mxu0 %vm839_vm2, %v4357_v35 }
 0x9a8   : > { %7556 = vmatpush3.xpose.msk.msra.mxu0 %vm839_vm2, %v9004_v29  ;;  %7557 = vmatprep.mubr.msk.f32.mxu0 %vm7935_vm1, %v9538_v32 }
 0x9a9   : > { %7565 = vmatprep.subr.mxu0 %v9538_v32  ;;  %v5554_v29 = vpop.permute.xlu1 %5553 }
 0x9ab   : > { %7558 = vmatmul.mubr.msk.f32.vlgmr.msra.gmra.mxu0 %vm839_vm2, %v9008_v27 }
 0x9ac   : > { %7566 = vmatpush3.xpose.msk.msra.mxu0 %vm839_vm2, %v9050_v58  ;;  %7567 = vmatprep.mubr.msk.f32.mxu0 %vm7935_vm1, %v9538_v32 }
 0x9ad   : > { %7575 = vmatprep.subr.mxu0 %v9538_v32 }
 0x9af   : > { %7568 = vmatmul.mubr.msk.f32.vlgmr.msra.gmra.mxu0 %vm839_vm2, %v5242_v62 }
 0x9b0   : > { %7576 = vmatpush3.xpose.msk.msra.mxu0 %vm839_vm2, %v5400_v53  ;;  %7577 = vmatprep.mubr.msk.f32.mxu0 %vm7935_vm1, %v9538_v32 }
 0x9b1   : > { %7585 = vmatprep.subr.mxu0 %v9538_v32 }
 0x9b3   : > { %7578 = vmatmul.mubr.msk.f32.vlgmr.msra.gmra.mxu0 %vm839_vm2, %v5398_v33 }
 0x9b4   : > { %7586 = vmatpush3.xpose.msk.msra.mxu0 %vm839_vm2, %v5556_v40  ;;  %7587 = vmatprep.mubr.msk.f32.mxu0 %vm7935_vm1, %v9538_v32 }
 0x9b5   : > { %7595 = vmatprep.subr.mxu0 %v9538_v32 }
 0x9b7   : > { %7588 = vmatmul.mubr.msk.f32.vlgmr.msra.gmra.mxu0 %vm839_vm2, %v5554_v29 }
 0x9b8   : > { %7597 = vmatprep.mubr.msk.f32.mxu0 %vm7935_vm1, %v9538_v32 }
 0x9cb   : > { %v9132_v27 = vpop.f32.mrf.mxu1 }
 0x9cd   : > { %v7514_v55 = vpop.f32.mrf.mxu1 }
 0x9cf   : > { %v9134_v58 = vpop.f32.mrf.mxu1 }
 0x9d1   : > { %v7524_v54 = vpop.f32.mrf.mxu1 }
 0xa12   : > { %v9136_v39 = vpop.f32.mrf.mxu0 }
 0xa14   : > { %v7519_v61 = vpop.f32.mrf.mxu0 }
 0xa16   : > { %v9138_v34 = vpop.f32.mrf.mxu0 }
 0xa18   : > { %v7529_v23 = vpop.f32.mrf.mxu0 }
 0xa1a   : > { %v9140_v20 = vpop.f32.mrf.mxu0 }
 0xa1c   : > { %v9142_v50 = vpop.f32.mrf.mxu1  ;;  %v7539_v44 = vpop.f32.mrf.mxu0 }
 0xa1e   : > { %v7534_v31 = vpop.f32.mrf.mxu1 }
 0xa20   : > { %v9144_v36 = vpop.f32.mrf.mxu1 }
 0xa22   : > { %v7544_v24 = vpop.f32.mrf.mxu1 }
 0xa24   : > { %v5081_v22 = vpop.f32.mrf.mxu1 }
 0xa25   : > { %v5082_v38 = vadd.f32 %v5081_v22, %v8306_v49 }
 0xa26   : > { %v7554_v63 = vpop.f32.mrf.mxu1 }
 0xa27   : > { %v5631_v11 = vsel %vm839_vm2, %v5082_v38, -inf }
 0xa28   : > { %5632 = vmax.xlane.f32.xlu0 %v5631_v11  ;;  %v5237_v25 = vpop.f32.mrf.mxu1 }
 0xa29   : > { %v5238_v51 = vadd.f32 %v5237_v25, %v8320_v43 }
 0xa2a   : > { %v7564_v42 = vpop.f32.mrf.mxu1 }
 0xa2b   : > { %v5637_v2 = vsel %vm839_vm2, %v5238_v51, -inf }
 0xa2c   : > { %5638 = vmax.xlane.f32.xlu0 %v5637_v2  ;;  %v5393_v18 = vpop.f32.mrf.mxu1 }
 0xa2d   : > { %v5394_v59 = vadd.f32 %v5393_v18, %v8331_v12 }
 0xa2e   : > { %v7574_v16 = vpop.f32.mrf.mxu1 }
 0xa2f   : > { %v5643_v55 = vsel %vm839_vm2, %v5394_v59, -inf }
 0xa30   : > { %v5549_v17 = vpop.f32.mrf.mxu1 }
 0xa31   : > { %v5550_v29 = vadd.f32 %v5549_v17, %v8342_v46 }
 0xa32   : > { %v7584_v37 = vpop.f32.mrf.mxu1 }
 0xa33   : > { %v5649_v23 = vsel %vm839_vm2, %v5550_v29, -inf }
 0xa67   : > { %v9150_v5 = vpop.f32.mrf.mxu0 }
 0xa69   : > { %v7549_v57 = vpop.f32.mrf.mxu0 }
 0xa6b   : > { %v5159_v45 = vpop.f32.mrf.mxu0 }
 0xa6c   : > { %v5160_v49 = vadd.f32 %v5159_v45, %v8312_v26 }
 0xa6d   : > { %v7559_v62 = vpop.f32.mrf.mxu0 }
 0xa6e   : > { %v5634_v56 = vsel %vm839_vm2, %v5160_v49, -inf }
 0xa6f   : > { %5635 = vmax.xlane.f32.xlu1 %v5634_v56  ;;  %v5315_v47 = vpop.f32.mrf.mxu0 }
 0xa70   : > { %v5316_v43 = vadd.f32 %v5315_v47, %v8326_v0 }
 0xa71   : > { %v7569_v48 = vpop.f32.mrf.mxu0 }
 0xa72   : > { %v5640_v53 = vsel %vm839_vm2, %v5316_v43, -inf }
 0xa73   : > { %v5471_v35 = vpop.f32.mrf.mxu0  ;;  %5641 = vmax.xlane.f32.xlu0 %v5640_v53 }
 0xa74   : > { %v5472_v33 = vadd.f32 %v5471_v35, %v8336_v28 }
 0xa75   : > { %v7579_v40 = vpop.f32.mrf.mxu0 }
 0xa76   : > { %v5646_v26 = vsel %vm839_vm2, %v5472_v33, -inf }
 0xa77   : > { %5647 = vmax.xlane.f32.xlu1 %v5646_v26  ;;  %v5627_v54 = vpop.f32.mrf.mxu0  ;;  %5644 = vmax.xlane.f32.xlu0 %v5643_v55 }
 0xa78   : > { %v5628_v0 = vadd.f32 %v5627_v54, %v8356_v60 }
 0xa79   : > { %v7589_v61 = vpop.f32.mrf.mxu0 }
 0xa7a   : > { %v5652_v12 = vsel %vm839_vm2, %v5628_v0, -inf }
 0xa7b   : > { %5653 = vmax.xlane.f32.xlu1 %v5652_v12  ;;  %5650 = vmax.xlane.f32.xlu0 %v5649_v23 }
 0xa8c   : > { %5835 = vrot.lane.b32.xlu1 %v8180_v1, %s7946_s29 }
 0xa90   : > { %5911 = vrot.lane.b32.xlu1 %v8186_v6, %s7946_s29 }
 0xa91   : > { %5759 = vrot.lane.b32.xlu0 %v8182_v3, %s7946_s29 }
 0xa94   : > { %5987 = vrot.lane.b32.xlu1 %v8189_v9, %s7946_s29 }
 0xa95   : > { %6063 = vrot.lane.b32.xlu0 %v8191_v10, %s7946_s29 }
 0xa98   : > { %6139 = vrot.lane.b32.xlu1 %v8195_v13, %s7946_s29 }
 0xab1   : > { %v9176_v28 = vpop.xlane.xlu0 %5632 }
 0xab2   : > { %v5655_v46 = vmax.f32 %v9176_v28, 0.0 }
 0xab4   : > { %v5663_v1 = vsub.f32 %v5082_v38, %v5655_v46 }
 0xab5   : > { %v9181_v6 = vpop.xlane.xlu0 %5638 }
 0xab6   : > { %v5671_v60 = vmul.f32 1.442695, %v5663_v1  ;;  %v5657_v3 = vmax.f32 %v9181_v6, 0.0 }
 0xab8   : > { %7854 = vpow2.f32 %v5671_v60  ;;  %v5665_v9 = vsub.f32 %v5238_v51, %v5657_v3 }
 0xaba   : > { %v5675_v10 = vmul.f32 1.442695, %v5665_v9 }
 0xabc   : > { %7856 = vpow2.f32 %v5675_v10 }
 0xac5   : > { %v9186_v44 = vpop.eup %7854 }
 0xac6   : > { %v5687_v13 = vsel %vm839_vm2, %v9186_v44, 0.0 }
 0xac7   : > { %5688 = vadd.xlane.f32.xlu0 %v5687_v13 }
 0xac9   : > { %v9190_v31 = vpop.eup %7856 }
 0xaca   : > { %v5693_v24 = vsel %vm839_vm2, %v9190_v31, 0.0 }
 0xacb   : > { %5694 = vadd.xlane.f32.xlu0 %v5693_v24  ;;  %v5711_v24 = vsub.f32 0.0, %v5655_v46 }
 0xaf8   : > { %v9194_v22 = vpop.xlane.xlu1 %5635 }
 0xaf9   : > { %v5656_v38 = vmax.f32 %v9194_v22, 0.0 }
 0xafb   : > { %v5664_v63 = vsub.f32 %v5160_v49, %v5656_v38 }
 0xafc   : > { %v9199_v11 = vpop.xlane.xlu0 %5641 }
 0xafd   : > { %v5673_v25 = vmul.f32 1.442695, %v5664_v63  ;;  %v5658_v51 = vmax.f32 %v9199_v11, 0.0 }
 0xaff   : > { %7858 = vpow2.f32 %v5673_v25  ;;  %v5666_v42 = vsub.f32 %v5316_v43, %v5658_v51 }
 0xb00   : > { %v9204_v2 = vpop.xlane.xlu1 %5647  ;;  %v9206_v18 = vpop.xlane.xlu0 %5644 }
 0xb01   : > { %v5677_v16 = vmul.f32 1.442695, %v5666_v42  ;;  %v5660_v17 = vmax.f32 %v9204_v2, 0.0  ;;  %v5659_v37 = vmax.f32 %v9206_v18, 0.0 }
 0xb03   : > { %7860 = vpow2.f32 %v5677_v16  ;;  %v5668_v57 = vsub.f32 %v5472_v33, %v5660_v17  ;;  %v5667_v45 = vsub.f32 %v5394_v59, %v5659_v37  ;;  %v5716_v46 = vsub.f32 0.0, %v5660_v17 }
 0xb04   : > { %v9214_v49 = vpop.xlane.xlu1 %5653  ;;  %v9216_v62 = vpop.xlane.xlu0 %5650  ;;  %v5715_v6 = vsub.f32 0.0, %v5659_v37 }
 0xb05   : > { %v5681_v56 = vmul.f32 1.442695, %v5668_v57  ;;  %v5679_v47 = vmul.f32 1.442695, %v5667_v45  ;;  %v5662_v43 = vmax.f32 %v9214_v49, 0.0  ;;  %v5661_v48 = vmax.f32 %v9216_v62, 0.0 }
 0xb06   : > { %v5727_v22 = vmul.f32 1.442695, %v5715_v6  ;;  %v6416_v6 = vld [vmem:[%s9514_s6] sm:$0xff] }
 0xb07   : > { %7862 = vpow2.f32 %v5681_v56  ;;  %v5670_v53 = vsub.f32 %v5628_v0, %v5662_v43  ;;  %v5669_v35 = vsub.f32 %v5550_v29, %v5661_v48 }
 0xb08   : > { %v5836_v33 = vpop.permute.xlu1 %5835  ;;  %v5760_v40 = vpop.permute.xlu0 %5759  ;;  %7864 = vpow2.f32 %v5679_v47 }
 0xb09   : > { %7591 = vmatpush3.msra.mxu1 %v5760_v40  ;;  %7596 = vmatpush3.msra.mxu0 %v5836_v33  ;;  %v5685_v59 = vmul.f32 1.442695, %v5670_v53  ;;  %v5683_v26 = vmul.f32 1.442695, %v5669_v35 }
 0xb0a   : > { %7600 = vmatprep.subr.mxu1 %v9538_v32  ;;  %7605 = vmatprep.subr.mxu0 %v9538_v32 }
 0xb0b   : > { %7866 = vpow2.f32 %v5685_v59 }
 0xb0c   : > { %v9226_v55 = vpop.eup %7858  ;;  %7868 = vpow2.f32 %v5683_v26 }
 0xb0d   : > { %v5690_v54 = vsel %vm839_vm2, %v9226_v55, 0.0 }
 0xb0e   : > { %5691 = vadd.xlane.f32.xlu1 %v5690_v54 }
 0xb10   : > { %v9230_v29 = vpop.eup %7860 }
 0xb11   : > { %v5696_v0 = vsel %vm839_vm2, %v9230_v29, 0.0 }
 0xb12   : > { %5697 = vadd.xlane.f32.xlu1 %v5696_v0 }
 0xb14   : > { %v9234_v61 = vpop.eup %7862 }
 0xb15   : > { %v5702_v12 = vsel %vm839_vm2, %v9234_v61, 0.0  ;;  %v9238_v23 = vpop.eup %7864 }
 0xb16   : > { %5703 = vadd.xlane.f32.xlu1 %v5702_v12  ;;  %v5699_v1 = vsel %vm839_vm2, %v9238_v23, 0.0 }
 0xb17   : > { %5700 = vadd.xlane.f32.xlu0 %v5699_v1 }
 0xb18   : > { %v9242_v60 = vpop.eup %7866 }
 0xb19   : > { %v5708_v9 = vsel %vm839_vm2, %v9242_v60, 0.0  ;;  %v9246_v10 = vpop.eup %7868 }
 0xb1a   : > { %5709 = vadd.xlane.f32.xlu1 %v5708_v9  ;;  %v5705_v13 = vsel %vm839_vm2, %v9246_v10, 0.0 }
 0xb1b   : > { %5706 = vadd.xlane.f32.xlu0 %v5705_v13 }
 0xb2b   : > { %6291 = vrot.lane.b32.xlu1 %v8201_v15, %s7946_s29  ;;  %v5719_v15 = vmul.f32 1.442695, %v5711_v24 }
 0xb2d   : > { %7870 = vpow2.f32 %v5719_v15 }
 0xb2f   : > { %3575 = vrot.lane.b32.xlu1 %v8854_v19, %s7947_s30  ;;  %v5713_v19 = vsub.f32 0.0, %v5657_v3 }
 0xb31   : > { %6215 = vrot.lane.b32.xlu0 %v8197_v14, %s7946_s29  ;;  %v5723_v14 = vmul.f32 1.442695, %v5713_v19 }
 0xb33   : > { %4976 = vrot.lane.b32.xlu1 %v9136_v39, %s7948_s13  ;;  %7872 = vpow2.f32 %v5723_v14 }
 0xb35   : > { %3573 = vrot.lane.b32.xlu0 %v8850_v30, %s7947_s30  ;;  %v6064_v30 = vpop.permute.xlu0 %6063 }
 0xb37   : > { %3579 = vrot.lane.b32.xlu1 %v8856_v52, %s7947_s30 }
 0xb39   : > { %4974 = vrot.lane.b32.xlu0 %v9132_v27, %s7948_s13 }
 0xb3b   : > { %4980 = vrot.lane.b32.xlu1 %v9138_v34, %s7948_s13  ;;  %v5912_v34 = vpop.permute.xlu1 %5911 }
 0xb3d   : > { %3577 = vrot.lane.b32.xlu0 %v8852_v41, %s7947_s30  ;;  %v7871_v41 = vpop.eup %7870 }
 0xb3f   : > { %3583 = vrot.lane.b32.xlu1 %v8858_v21, %s7947_s30  ;;  %v5988_v3 = vpop.permute.xlu1 %5987 }
 0xb40   : > { %v7873_v27 = vpop.eup %7872 }
 0xb41   : > { %4978 = vrot.lane.b32.xlu0 %v9134_v58, %s7948_s13 }
 0xb43   : > { %4984 = vrot.lane.b32.xlu1 %v9140_v20, %s7948_s13  ;;  %v6140_v11 = vpop.permute.xlu1 %6139 }
 0xb45   : > { %3581 = vrot.lane.b32.xlu0 %v8860_v7, %s7947_s30 }
 0xb47   : > { %3587 = vrot.lane.b32.xlu1 %v8868_v8, %s7947_s30 }
 0xb49   : > { %4982 = vrot.lane.b32.xlu0 %v9142_v50, %s7948_s13  ;;  %v5712_v50 = vsub.f32 0.0, %v5656_v38  ;;  %v5717_v38 = vsub.f32 0.0, %v5661_v48 }
 0xb4b   : > { %4988 = vrot.lane.b32.xlu1 %v9150_v5, %s7948_s13  ;;  %v5714_v5 = vsub.f32 0.0, %v5658_v51  ;;  %v5731_v25 = vmul.f32 1.442695, %v5717_v38 }
 0xb4d   : > { %3585 = vrot.lane.b32.xlu0 %v8862_v4, %s7947_s30  ;;  %v5725_v28 = vmul.f32 1.442695, %v5714_v5  ;;  %s9481_s30 = scalar_lea.vmem %s9520_s12, %s6949_s24 }
 0xb50   : > { %v5689_v52 = vpop.xlane.xlu0 %5688 }
 0xb51   : > { %v5735_v21 = vadd.f32 %v7871_v41, %v5689_v52  ;;  %4986 = vrot.lane.b32.xlu0 %v9144_v36, %s7948_s13  ;;  %v5721_v36 = vmul.f32 1.442695, %v5712_v50 }
 0xb53   : > { %7874 = vrcp.f32 %v5735_v21 }
 0xb54   : > { %v5695_v58 = vpop.xlane.xlu0 %5694 }
 0xb55   : > { %v5737_v39 = vadd.f32 %v7873_v27, %v5695_v58 }
 0xb57   : > { %7876 = vrcp.f32 %v5737_v39 }
 0xb58   : > { %7878 = vpow2.f32 %v5721_v36 }
 0xb59   : > { %7880 = vpow2.f32 %v5725_v28 }
 0xb60   : > { %v7875_v7 = vpop.eup %7874 }
 0xb61   : > { %v5751_v8 = vmul.f32 %v7875_v7, %v9186_v44  ;;  %v5729_v44 = vmul.f32 1.442695, %v5716_v46  ;;  %v6417_v46 = vld [vmem:[%s9514_s6 + $0x8] sm:$0xff] }
 0xb63   : > { %7593 = vmatmul.mubr.msk.f32.vlgmr.msra.gmra.mxu1 %vm839_vm2, %v5751_v8  ;;  %7882 = vpow2.f32 %v5729_v44 }
 0xb64   : > { %v7877_v20 = vpop.eup %7876  ;;  %7601 = vmatpush3.msra.mxu1 %v5912_v34  ;;  %7602 = vmatprep.mubr.msk.f32.mxu1 %vm7935_vm1, %v9538_v32  ;;  %7884 = vpow2.f32 %v5727_v22 }
 0xb65   : > { %7610 = vmatprep.subr.mxu1 %v9538_v32  ;;  %v5753_v4 = vmul.f32 %v7877_v20, %v9190_v31  ;;  %v5718_v31 = vsub.f32 0.0, %v5662_v43  ;;  %v7879_v51 = vpop.eup %7878  ;;  %v6419_v20 = vld [vmem:[%s9514_s6 + $0x18] sm:$0xff] }
 0xb66   : > { %v7881_v18 = vpop.eup %7880 }
 0xb67   : > { %7603 = vmatmul.mubr.msk.f32.vlgmr.msra.gmra.mxu1 %vm839_vm2, %v5753_v4  ;;  %v5733_v63 = vmul.f32 1.442695, %v5718_v31  ;;  %v6418_v4 = vld [vmem:[%s9514_s6 + $0x10] sm:$0xff] }
 0xb68   : > { %7611 = vmatpush3.msra.mxu1 %v6064_v30  ;;  %7612 = vmatprep.mubr.msk.f32.mxu1 %vm7935_vm1, %v9538_v32 }
 0xb69   : > { %7620 = vmatprep.subr.mxu1 %v9538_v32  ;;  %7886 = vpow2.f32 %v5733_v63 }
 0xb6a   : > { %7888 = vpow2.f32 %v5731_v25 }
 0xb70   : > { %v7883_v37 = vpop.eup %7882 }
 0xb71   : > { %v7885_v49 = vpop.eup %7884 }
 0xb76   : > { %v7887_v47 = vpop.eup %7886 }
 0xb77   : > { %v7889_v53 = vpop.eup %7888 }
 0xb97   : > { %v5692_v42 = vpop.xlane.xlu1 %5691 }
 0xb98   : > { %v5736_v2 = vadd.f32 %v7879_v51, %v5692_v42  ;;  %v6579_v51 = vld [vmem:[%s9516_s8 + $0x18] sm:$0xff]  ;;  %v6578_v42 = vld [vmem:[%s9516_s8 + $0x10] sm:$0xff] }
 0xb9a   : > { %7890 = vrcp.f32 %v5736_v2 }
 0xb9b   : > { %v5698_v16 = vpop.xlane.xlu1 %5697 }
 0xb9c   : > { %v5738_v17 = vadd.f32 %v7881_v18, %v5698_v16 }
 0xb9e   : > { %7892 = vrcp.f32 %v5738_v17 }
 0xb9f   : > { %v5704_v57 = vpop.xlane.xlu1 %5703 }
 0xba0   : > { %v5740_v45 = vadd.f32 %v7883_v37, %v5704_v57  ;;  %v5701_v62 = vpop.xlane.xlu0 %5700 }
 0xba1   : > { %v5739_v56 = vadd.f32 %v7885_v49, %v5701_v62 }
 0xba2   : > { %7894 = vrcp.f32 %v5740_v45 }
 0xba3   : > { %7896 = vrcp.f32 %v5739_v56  ;;  %v5710_v43 = vpop.xlane.xlu1 %5709 }
 0xba4   : > { %v5742_v48 = vadd.f32 %v7887_v47, %v5710_v43  ;;  %v5707_v35 = vpop.xlane.xlu0 %5706 }
 0xba5   : > { %v5741_v40 = vadd.f32 %v7889_v53, %v5707_v35 }
 0xba6   : > { %7898 = vrcp.f32 %v5742_v48 }
 0xba7   : > { %v7891_v33 = vpop.eup %7890  ;;  %v6292_v59 = vpop.permute.xlu1 %6291  ;;  %7900 = vrcp.f32 %v5741_v40 }
 0xba8   : > { %v5752_v26 = vmul.f32 %v7891_v33, %v9226_v55  ;;  %v6216_v54 = vpop.permute.xlu0 %6215 }
 0xbaa   : > { %7598 = vmatmul.mubr.msk.f32.vlgmr.msra.gmra.mxu0 %vm839_vm2, %v5752_v26 }
 0xbab   : > { %v7893_v0 = vpop.eup %7892  ;;  %7606 = vmatpush3.msra.mxu0 %v5988_v3  ;;  %7607 = vmatprep.mubr.msk.f32.mxu0 %vm7935_vm1, %v9538_v32  ;;  %v3576_v12 = vpop.permute.xlu1 %3575 }
 0xbac   : > { %7615 = vmatprep.subr.mxu0 %v9538_v32  ;;  %v5754_v1 = vmul.f32 %v7893_v0, %v9230_v29  ;;  %3599 = vst.msk [vmem:[#allocation2 + $0x8] sm:$0xff] %vm3597_vm3, %v3576_v12  ;;  %v3574_v9 = vpop.permute.xlu0 %3573  ;;  %v6577_v0 = vld [vmem:[%s9516_s8 + $0x8] sm:$0xff]  ;;  %v6576_v12 = vld [vmem:[%s9516_s8] sm:$0xff] }
 0xbad   : > { %3598 = vst.msk [vmem:[#allocation2] sm:$0xff] %vm3597_vm3, %v3574_v9 }
 0xbae   : > { %7608 = vmatmul.mubr.msk.f32.vlgmr.msra.gmra.mxu0 %vm839_vm2, %v5754_v1  ;;  %v7072_v1 = vld [vmem:[%s9515_s7] ss:$0 sm:$0xff] }
 0xbaf   : > { %v7895_v55 = vpop.eup %7894  ;;  %7616 = vmatpush3.msra.mxu0 %v6140_v11  ;;  %7617 = vmatprep.mubr.msk.f32.mxu0 %vm7935_vm1, %v9538_v32  ;;  %v4977_v13 = vpop.permute.xlu1 %4976 }
 0xbb0   : > { %7625 = vmatprep.subr.mxu0 %v9538_v32  ;;  %v5756_v24 = vmul.f32 %v7895_v55, %v9234_v61  ;;  %v7897_v15 = vpop.eup %7896  ;;  %5000 = vst.msk [vmem:[#allocation2 + $0x8] sm:$0xff] %vm4998_vm4, %v4977_v13  ;;  %v4975_v29 = vpop.permute.xlu0 %4974 }
 0xbb1   : > { %v5755_v19 = vmul.f32 %v7897_v15, %v9238_v23  ;;  %4999 = vst.msk [vmem:[#allocation2] sm:$0xff] %vm4998_vm4, %v4975_v29  ;;  %v7918_v29 = vld [vmem:[%s8031_s27] sm:$0xff] }
 0xbb2   : > { %7618 = vmatmul.mubr.msk.f32.vlgmr.msra.gmra.mxu0 %vm839_vm2, %v5756_v24 }
 0xbb3   : > { %7626 = vmatpush3.msra.mxu0 %v6292_v59  ;;  %7627 = vmatprep.mubr.msk.f32.mxu0 %vm7935_vm1, %v9538_v32  ;;  %v7899_v14 = vpop.eup %7898  ;;  %v3580_v30 = vpop.permute.xlu1 %3579 }
 0xbb4   : > { %7613 = vmatmul.mubr.msk.f32.vlgmr.msra.gmra.mxu1 %vm839_vm2, %v5755_v19  ;;  %3601 = vst.msk [vmem:[#allocation2 + $0x18] sm:$0xff] %vm3597_vm3, %v3580_v30  ;;  %v5758_v61 = vmul.f32 %v7899_v14, %v9242_v60  ;;  %v7901_v23 = vpop.eup %7900  ;;  %v3578_v41 = vpop.permute.xlu0 %3577  ;;  %7650 = vmatprep.subr.msk.mxu0 %vm462_vm0, %v6579_v51  ;;  %v7919_v14 = vld [vmem:[%s8031_s27 + $0x8] sm:$0xff] }
 0xbb5   : > { %7621 = vmatpush3.msra.mxu1 %v6216_v54  ;;  %7622 = vmatprep.mubr.msk.f32.mxu1 %vm7935_vm1, %v9538_v32  ;;  %3600 = vst.msk [vmem:[#allocation2 + $0x10] sm:$0xff] %vm3597_vm3, %v3578_v41  ;;  %v5757_v52 = vmul.f32 %v7901_v23, %v9246_v10 }
 0xbb6   : > { %7628 = vmatmul.mubr.msk.f32.vlgmr.msra.gmra.mxu0 %vm839_vm2, %v5758_v61  ;;  %7630 = vmatprep.subr.msk.mxu1 %vm462_vm0, %v6419_v20 }
 0xbb7   : > { %v4981_v21 = vpop.permute.xlu1 %4980  ;;  %7651 = vmatpush3.xpose.msk.msra.mxu0 %vm462_vm0, %v6579_v51 }
 0xbb8   : > { %7623 = vmatmul.mubr.msk.f32.vlgmr.msra.gmra.mxu1 %vm839_vm2, %v5757_v52  ;;  %5002 = vst.msk [vmem:[#allocation2 + $0x18] sm:$0xff] %vm4998_vm4, %v4981_v21  ;;  %v4979_v27 = vpop.permute.xlu0 %4978  ;;  %7652 = vmatprep.subr.msk.mxu0 %vm462_vm0, %v6578_v42  ;;  %v7920_v52 = vld [vmem:[%s8031_s27 + $0x10] sm:$0xff] }
 0xbb9   : > { %5001 = vst.msk [vmem:[#allocation2 + $0x10] sm:$0xff] %vm4998_vm4, %v4979_v27  ;;  %7631 = vmatpush3.xpose.msk.msra.mxu1 %vm462_vm0, %v6419_v20  ;;  %v7921_v27 = vld [vmem:[%s8031_s27 + $0x18] sm:$0xff]  ;;  %v7923_v20 = vld [vmem:[%s8031_s27 + $0x28] sm:$0xff] }
 0xbba   : > { %7632 = vmatprep.subr.msk.mxu1 %vm462_vm0, %v6418_v4 }
 0xbbb   : > { %v3584_v58 = vpop.permute.xlu1 %3583  ;;  %7653 = vmatpush3.xpose.msk.msra.mxu0 %vm462_vm0, %v6578_v42 }
 0xbbc   : > { %3603 = vst.msk [vmem:[#allocation2 + $0x28] sm:$0xff] %vm3597_vm3, %v3584_v58  ;;  %v3582_v32 = vpop.permute.xlu0 %3581  ;;  %7654 = vmatprep.subr.msk.mxu0 %vm462_vm0, %v6577_v0 }
 0xbbd   : > { %3602 = vst.msk [vmem:[#allocation2 + $0x20] sm:$0xff] %vm3597_vm3, %v3582_v32  ;;  %7633 = vmatpush3.xpose.msk.msra.mxu1 %vm462_vm0, %v6418_v4 }
 0xbbe   : > { %7634 = vmatprep.subr.msk.mxu1 %vm462_vm0, %v6417_v46 }
 0xbbf   : > { %v4985_v60 = vpop.permute.xlu1 %4984  ;;  %7655 = vmatpush3.xpose.msk.msra.mxu0 %vm462_vm0, %v6577_v0 }
 0xbc0   : > { %5004 = vst.msk [vmem:[#allocation2 + $0x28] sm:$0xff] %vm4998_vm4, %v4985_v60  ;;  %v4983_v10 = vpop.permute.xlu0 %4982  ;;  %7656 = vmatprep.subr.msk.mxu0 %vm462_vm0, %v6576_v12 }
 0xbc1   : > { %5003 = vst.msk [vmem:[#allocation2 + $0x20] sm:$0xff] %vm4998_vm4, %v4983_v10  ;;  %7635 = vmatpush3.xpose.msk.msra.mxu1 %vm462_vm0, %v6417_v46 }
 0xbc2   : > { %7636 = vmatprep.subr.msk.mxu1 %vm462_vm0, %v6416_v6 }
 0xbc3   : > { %v3588_v39 = vpop.permute.xlu1 %3587  ;;  %7657 = vmatpush3.xpose.msk.msra.mxu0 %vm462_vm0, %v6576_v12 }
 0xbc4   : > { %3605 = vst.msk [vmem:[#allocation2 + $0x38] sm:$0xff] %vm3597_vm3, %v3588_v39  ;;  %v3586_v7 = vpop.permute.xlu0 %3585 }
 0xbc5   : > { %3604 = vst.msk [vmem:[#allocation2 + $0x30] sm:$0xff] %vm3597_vm3, %v3586_v7  ;;  %7637 = vmatpush3.xpose.msk.msra.mxu1 %vm462_vm0, %v6416_v6  ;;  %v7922_v7 = vld [vmem:[%s8031_s27 + $0x20] sm:$0xff]  ;;  %v7925_v6 = vld [vmem:[%s8031_s27 + $0x38] sm:$0xff] }
 0xbc7   : > { %v4989_v8 = vpop.permute.xlu1 %4988 }
 0xbc8   : > { %5006 = vst.msk [vmem:[#allocation2 + $0x38] sm:$0xff] %vm4998_vm4, %v4989_v8  ;;  %v4987_v34 = vpop.permute.xlu0 %4986 }
 0xbc9   : > { %5005 = vst.msk [vmem:[#allocation2 + $0x30] sm:$0xff] %vm4998_vm4, %v4987_v34 }
 0xc23   : > { %v5831_v50 = vpop.f32.mrf.mxu1 }
 0xc24   : > { %6375 = vrot.lane.b32.xlu0 %v5831_v50, %s7949_s18 }
 0xc25   : > { %v7594_v36 = vpop.f32.mrf.mxu1 }
 0xc27   : > { %v5983_v5 = vpop.f32.mrf.mxu1 }
 0xc28   : > { %6379 = vrot.lane.b32.xlu0 %v5983_v5, %s7949_s18 }
 0xc29   : > { %v7604_v28 = vpop.f32.mrf.mxu1 }
 0xc2a   : > { %v7924_v28 = vld [vmem:[%s8031_s27 + $0x30] sm:$0xff] }
 0xc6a   : > { %v5907_v3 = vpop.f32.mrf.mxu0 }
 0xc6b   : > { %6377 = vrot.lane.b32.xlu1 %v5907_v3, %s7949_s18 }
 0xc6c   : > { %v7599_v44 = vpop.f32.mrf.mxu0 }
 0xc6d   : > { %v7085_v44 = vld [vmem:[%s9517_s9] ss:$0 sm:$0xff] }
 0xc6e   : > { %v6059_v31 = vpop.f32.mrf.mxu0 }
 0xc6f   : > { %6381 = vrot.lane.b32.xlu1 %v6059_v31, %s7949_s18 }
 0xc70   : > { %v7609_v22 = vpop.f32.mrf.mxu0 }
 0xc72   : > { %v6211_v38 = vpop.f32.mrf.mxu0 }
 0xc73   : > { %6385 = vrot.lane.b32.xlu1 %v6211_v38, %s7949_s18 }
 0xc74   : > { %v6135_v63 = vpop.f32.mrf.mxu1  ;;  %v7619_v11 = vpop.f32.mrf.mxu0 }
 0xc75   : > { %6383 = vrot.lane.b32.xlu0 %v6135_v63, %s7949_s18 }
 0xc76   : > { %v7614_v25 = vpop.f32.mrf.mxu1  ;;  %v6363_v2 = vpop.f32.mrf.mxu0 }
 0xc77   : > { %6389 = vrot.lane.b32.xlu1 %v6363_v2, %s7949_s18 }
 0xc78   : > { %v6287_v18 = vpop.f32.mrf.mxu1  ;;  %v7629_v16 = vpop.f32.mrf.mxu0 }
 0xc79   : > { %6387 = vrot.lane.b32.xlu0 %v6287_v18, %s7949_s18 }
 0xc7a   : > { %v7624_v17 = vpop.f32.mrf.mxu1 }
 0xc96   : > { %v6376_v37 = vpop.permute.xlu0 %6375 }
 0xc97   : > { %6400 = vst.msk [vmem:[#allocation2] sm:$0xff] %vm6399_vm5, %v6376_v37 }
 0xc9a   : > { %v6380_v57 = vpop.permute.xlu0 %6379 }
 0xc9b   : > { %6402 = vst.msk [vmem:[#allocation2 + $0x10] sm:$0xff] %vm6399_vm5, %v6380_v57 }
 0xc9e   : > { %v6408_v45 = vld [vmem:[#allocation2] sm:$0xff] }
 0xc9f   : > { %7638 = vmatprep.mubr.msk.f32.mxu1 %vm462_vm0, %v6408_v45 }
 0xca2   : > { %v6410_v43 = vld [vmem:[#allocation2 + $0x10] sm:$0xff] }
 0xcdd   : > { %v6378_v49 = vpop.permute.xlu1 %6377 }
 0xcde   : > { %6401 = vst.msk [vmem:[#allocation2 + $0x8] sm:$0xff] %vm6399_vm5, %v6378_v49 }
 0xce1   : > { %v6382_v62 = vpop.permute.xlu1 %6381 }
 0xce2   : > { %6403 = vst.msk [vmem:[#allocation2 + $0x18] sm:$0xff] %vm6399_vm5, %v6382_v62 }
 0xce5   : > { %v6386_v56 = vpop.permute.xlu1 %6385  ;;  %v6409_v47 = vld [vmem:[#allocation2 + $0x8] sm:$0xff] }
 0xce6   : > { %6405 = vst.msk [vmem:[#allocation2 + $0x28] sm:$0xff] %vm6399_vm5, %v6386_v56  ;;  %7639 = vmatmul.mubr.msk.f32.vlgmr.msra.gmra.mxu1 %vm462_vm0, %v6409_v47 }
 0xce7   : > { %v6384_v48 = vpop.permute.xlu0 %6383  ;;  %7641 = vmatprep.mubr.msk.f32.mxu1 %vm462_vm0, %v6410_v43 }
 0xce8   : > { %6404 = vst.msk [vmem:[#allocation2 + $0x20] sm:$0xff] %vm6399_vm5, %v6384_v48 }
 0xce9   : > { %v6411_v53 = vld [vmem:[#allocation2 + $0x18] sm:$0xff]  ;;  %v6390_v35 = vpop.permute.xlu1 %6389 }
 0xcea   : > { %7642 = vmatmul.mubr.msk.f32.gmra.mxu1 %vm462_vm0, %v6411_v53  ;;  %6407 = vst.msk [vmem:[#allocation2 + $0x38] sm:$0xff] %vm6399_vm5, %v6390_v35 }
 0xceb   : > { %v6388_v33 = vpop.permute.xlu0 %6387 }
 0xcec   : > { %6406 = vst.msk [vmem:[#allocation2 + $0x30] sm:$0xff] %vm6399_vm5, %v6388_v33 }
 0xced   : > { %v6413_v40 = vld [vmem:[#allocation2 + $0x28] sm:$0xff] }
 0xcef   : > { %v6412_v59 = vld [vmem:[#allocation2 + $0x20] sm:$0xff] }
 0xcf0   : > { %7644 = vmatprep.mubr.msk.f32.mxu1 %vm462_vm0, %v6412_v59 }
 0xcf1   : > { %7645 = vmatmul.mubr.msk.f32.gmra.mxu1 %vm462_vm0, %v6413_v40  ;;  %v6415_v26 = vld [vmem:[#allocation2 + $0x38] sm:$0xff] }
 0xcf3   : > { %v6414_v54 = vld [vmem:[#allocation2 + $0x30] sm:$0xff] }
 0xcf4   : > { %7647 = vmatprep.mubr.msk.f32.mxu1 %vm462_vm0, %v6414_v54 }
 0xcf5   : > { %7648 = vmatmul.mubr.msk.f32.gmra.mxu1 %vm462_vm0, %v6415_v26 }
 0xda6   : > { %v7640_v9 = vpop.f32.mrf.mxu1 }
 0xda7   : > { %v6535_v55 = vadd.f32 %v7640_v9, %v7072_v1 }
 0xda8   : > { %v6529_v13 = vpop.f32.mrf.mxu1 }
 0xda9   : > { %v6530_v24 = vadd.f32 %v7072_v1, %v6529_v13  ;;  %v6569_v30 = vadd.f32 %v7919_v14, %v6535_v55 }
 0xdaa   : > { %v7643_v15 = vpop.f32.mrf.mxu1 }
 0xdab   : > { %v6568_v19 = vadd.f32 %v7918_v29, %v6530_v24  ;;  %v6545_v61 = vadd.f32 %v7643_v15, %v7072_v1 }
 0xdac   : > { %v6539_v23 = vpop.f32.mrf.mxu1 }
 0xdad   : > { %v6540_v41 = vadd.f32 %v7072_v1, %v6539_v23  ;;  %7658 = vmatprep.mubr.msk.f32.mxu0 %vm462_vm0, %v6568_v19  ;;  %v6571_v58 = vadd.f32 %v7921_v27, %v6545_v61 }
 0xdae   : > { %7659 = vmatmul.mubr.msk.f32.vlgmr.msra.gmra.mxu0 %vm462_vm0, %v6569_v30 }
 0xdaf   : > { %v6570_v21 = vadd.f32 %v7920_v52, %v6540_v41 }
 0xdb1   : > { %v7646_v32 = vpop.f32.mrf.mxu1  ;;  %7661 = vmatprep.mubr.msk.f32.mxu0 %vm462_vm0, %v6570_v21 }
 0xdb2   : > { %7662 = vmatmul.mubr.msk.f32.gmra.mxu0 %vm462_vm0, %v6571_v58  ;;  %v6555_v60 = vadd.f32 %v7646_v32, %v7072_v1 }
 0xdb3   : > { %v6549_v10 = vpop.f32.mrf.mxu1 }
 0xdb4   : > { %v6550_v39 = vadd.f32 %v7072_v1, %v6549_v10  ;;  %v6573_v4 = vadd.f32 %v7923_v20, %v6555_v60 }
 0xdb5   : > { %v7649_v34 = vpop.f32.mrf.mxu1 }
 0xdb6   : > { %v6572_v8 = vadd.f32 %v7922_v7, %v6550_v39  ;;  %v6565_v50 = vadd.f32 %v7649_v34, %v7072_v1 }
 0xdb7   : > { %v6559_v36 = vpop.f32.mrf.mxu1 }
 0xdb8   : > { %7664 = vmatprep.mubr.msk.f32.mxu0 %vm462_vm0, %v6572_v8  ;;  %v6560_v5 = vadd.f32 %v7072_v1, %v6559_v36  ;;  %v6575_v3 = vadd.f32 %v7925_v6, %v6565_v50 }
 0xdb9   : > { %7665 = vmatmul.mubr.msk.f32.gmra.mxu0 %vm462_vm0, %v6573_v4 }
 0xdba   : > { %v6574_v46 = vadd.f32 %v7924_v28, %v6560_v5 }
 0xdbc   : > { %7667 = vmatprep.mubr.msk.f32.mxu0 %vm462_vm0, %v6574_v46 }
 0xdbd   : > { %7668 = vmatmul.mubr.msk.f32.gmra.mxu0 %vm462_vm0, %v6575_v3 }
 0xe6e   : > { %v7660_v31 = vpop.f32.mrf.mxu0 }
 0xe6f   : > { %v6695_v22 = vadd.f32 %v7660_v31, %v7085_v44 }
 0xe70   : > { %v6689_v38 = vpop.f32.mrf.mxu0 }
 0xe71   : > { %v6729_v63 = vmax.f32 %v6695_v22, 0.0  ;;  %v6690_v11 = vadd.f32 %v7085_v44, %v6689_v38 }
 0xe72   : > { %v7663_v25 = vpop.f32.mrf.mxu0 }
 0xe73   : > { %v6728_v51 = vmax.f32 %v6690_v11, 0.0  ;;  %v6705_v42 = vadd.f32 %v7663_v25, %v7085_v44  ;;  %v6741_v2 = vsel %vm462_vm0, %v6729_v63, 0.0 }
 0xe74   : > { %6742 = vadd.xlane.f32.xlu1 %v6741_v2  ;;  %v6699_v18 = vpop.f32.mrf.mxu0 }
 0xe75   : > { %v6731_v16 = vmax.f32 %v6705_v42, 0.0  ;;  %v6700_v17 = vadd.f32 %v7085_v44, %v6699_v18  ;;  %v6738_v37 = vsel %vm462_vm0, %v6728_v51, 0.0 }
 0xe76   : > { %6739 = vadd.xlane.f32.xlu0 %v6738_v37 }
 0xe77   : > { %v6730_v57 = vmax.f32 %v6700_v17, 0.0  ;;  %v6747_v49 = vsel %vm462_vm0, %v6731_v16, 0.0 }
 0xe79   : > { %v7666_v45 = vpop.f32.mrf.mxu0  ;;  %v6744_v48 = vsel %vm462_vm0, %v6730_v57, 0.0 }
 0xe7a   : > { %v6715_v62 = vadd.f32 %v7666_v45, %v7085_v44  ;;  %6748 = vadd.xlane.f32.xlu0 %v6747_v49 }
 0xe7b   : > { %v6709_v56 = vpop.f32.mrf.mxu0 }
 0xe7c   : > { %v6733_v47 = vmax.f32 %v6715_v62, 0.0  ;;  %v6710_v43 = vadd.f32 %v7085_v44, %v6709_v56 }
 0xe7d   : > { %v7669_v35 = vpop.f32.mrf.mxu0 }
 0xe7e   : > { %v6732_v53 = vmax.f32 %v6710_v43, 0.0  ;;  %v6753_v33 = vsel %vm462_vm0, %v6733_v47, 0.0  ;;  %6745 = vadd.xlane.f32.xlu0 %v6744_v48  ;;  %v6725_v40 = vadd.f32 %v7669_v35, %v7085_v44 }
 0xe7f   : > { %6754 = vadd.xlane.f32.xlu1 %v6753_v33  ;;  %v6719_v59 = vpop.f32.mrf.mxu0 }
 0xe80   : > { %v6735_v26 = vmax.f32 %v6725_v40, 0.0  ;;  %v6720_v54 = vadd.f32 %v7085_v44, %v6719_v59  ;;  %v6750_v0 = vsel %vm462_vm0, %v6732_v53, 0.0 }
 0xe82   : > { %6751 = vadd.xlane.f32.xlu0 %v6750_v0  ;;  %v6734_v12 = vmax.f32 %v6720_v54, 0.0  ;;  %v6759_v1 = vsel %vm462_vm0, %v6735_v26, 0.0 }
 0xe83   : > { %6760 = vadd.xlane.f32.xlu1 %v6759_v1 }
 0xe84   : > { %v6756_v9 = vsel %vm462_vm0, %v6734_v12, 0.0 }
 0xe86   : > { %6757 = vadd.xlane.f32.xlu0 %v6756_v9 }
 0xefd   : > { %v6743_v55 = vpop.xlane.xlu1 %6742 }
 0xefe   : > { %v6763_v13 = vmul.f32 0.03125, %v6743_v55 }
 0xeff   : > { %v6740_v24 = vpop.xlane.xlu0 %6739 }
 0xf00   : > { %v9428_v15 = vsub.f32 %v6729_v63, %v6763_v13  ;;  %v6762_v29 = vmul.f32 0.03125, %v6740_v24 }
 0xf02   : > { %v9430_v19 = vsub.f32 %v6728_v51, %v6762_v29  ;;  %v6779_v14 = vmul.f32 %v9428_v15, %v9428_v15  ;;  %v7099_v29 = vld [vmem:[%s9519_s11] ss:$0 sm:$0xff] }
 0xf03   : > { %v6749_v30 = vpop.xlane.xlu0 %6748 }
 0xf04   : > { %v6765_v61 = vmul.f32 0.03125, %v6749_v30  ;;  %v6789_v23 = vsel %vm462_vm0, %v6779_v14, 0.0  ;;  %v6778_v41 = vmul.f32 %v9430_v19, %v9430_v19 }
 0xf05   : > { %6790 = vadd.xlane.f32.xlu1 %v6789_v23 }
 0xf06   : > { %v9437_v52 = vsub.f32 %v6731_v16, %v6765_v61  ;;  %v6786_v21 = vsel %vm462_vm0, %v6778_v41, 0.0 }
 0xf07   : > { %6787 = vadd.xlane.f32.xlu0 %v6786_v21  ;;  %v6746_v27 = vpop.xlane.xlu0 %6745 }
 0xf08   : > { %v6755_v58 = vpop.xlane.xlu1 %6754  ;;  %v6764_v32 = vmul.f32 0.03125, %v6746_v27  ;;  %v6781_v60 = vmul.f32 %v9437_v52, %v9437_v52 }
 0xf09   : > { %v6767_v10 = vmul.f32 0.03125, %v6755_v58 }
 0xf0a   : > { %v9442_v39 = vsub.f32 %v6730_v57, %v6764_v32  ;;  %v6795_v7 = vsel %vm462_vm0, %v6781_v60, 0.0 }
 0xf0b   : > { %v9445_v8 = vsub.f32 %v6733_v47, %v6767_v10  ;;  %6796 = vadd.xlane.f32.xlu1 %v6795_v7  ;;  %v6752_v34 = vpop.xlane.xlu0 %6751 }
 0xf0c   : > { %v6766_v20 = vmul.f32 0.03125, %v6752_v34  ;;  %v6780_v4 = vmul.f32 %v9442_v39, %v9442_v39  ;;  %v6761_v50 = vpop.xlane.xlu1 %6760 }
 0xf0d   : > { %v6783_v36 = vmul.f32 %v9445_v8, %v9445_v8  ;;  %v6769_v5 = vmul.f32 0.03125, %v6761_v50 }
 0xf0e   : > { %v9451_v28 = vsub.f32 %v6732_v53, %v6766_v20  ;;  %v6792_v46 = vsel %vm462_vm0, %v6780_v4, 0.0 }
 0xf0f   : > { %v6801_v6 = vsel %vm462_vm0, %v6783_v36, 0.0  ;;  %6793 = vadd.xlane.f32.xlu0 %v6792_v46  ;;  %v6758_v3 = vpop.xlane.xlu0 %6757  ;;  %v9455_v44 = vsub.f32 %v6735_v26, %v6769_v5 }
 0xf10   : > { %6802 = vadd.xlane.f32.xlu1 %v6801_v6  ;;  %v6768_v31 = vmul.f32 0.03125, %v6758_v3  ;;  %v6782_v22 = vmul.f32 %v9451_v28, %v9451_v28 }
 0xf11   : > { %v6785_v63 = vmul.f32 %v9455_v44, %v9455_v44 }
 0xf12   : > { %v9459_v38 = vsub.f32 %v6734_v12, %v6768_v31  ;;  %v6798_v11 = vsel %vm462_vm0, %v6782_v22, 0.0  ;;  %v7098_v12 = vld [vmem:[%s9518_s10] ss:$0 sm:$0xff] }
 0xf13   : > { %6799 = vadd.xlane.f32.xlu0 %v6798_v11  ;;  %v6807_v25 = vsel %vm462_vm0, %v6785_v63, 0.0 }
 0xf14   : > { %v6784_v51 = vmul.f32 %v9459_v38, %v9459_v38  ;;  %6808 = vadd.xlane.f32.xlu1 %v6807_v25 }
 0xf16   : > { %v6804_v42 = vsel %vm462_vm0, %v6784_v51, 0.0 }
 0xf17   : > { %6805 = vadd.xlane.f32.xlu0 %v6804_v42 }
 0xf8e   : > { %v6791_v2 = vpop.xlane.xlu1 %6790 }
 0xf8f   : > { %v6811_v18 = vmul.f32 0.03125, %v6791_v2 }
 0xf90   : > { %v6788_v16 = vpop.xlane.xlu0 %6787 }
 0xf91   : > { %v6819_v17 = vadd.f32 1e-05, %v6811_v18  ;;  %v6810_v37 = vmul.f32 0.03125, %v6788_v16 }
 0xf93   : > { %7902 = vrsqrt.f32 %v6819_v17  ;;  %v6818_v57 = vadd.f32 1e-05, %v6810_v37 }
 0xf94   : > { %v6797_v45 = vpop.xlane.xlu1 %6796 }
 0xf95   : > { %7904 = vrsqrt.f32 %v6818_v57  ;;  %v6813_v49 = vmul.f32 0.03125, %v6797_v45 }
 0xf97   : > { %v6821_v62 = vadd.f32 1e-05, %v6813_v49 }
 0xf98   : > { %v6794_v56 = vpop.xlane.xlu0 %6793 }
 0xf99   : > { %7906 = vrsqrt.f32 %v6821_v62  ;;  %v6803_v47 = vpop.xlane.xlu1 %6802  ;;  %v6812_v43 = vmul.f32 0.03125, %v6794_v56 }
 0xf9a   : > { %v6815_v48 = vmul.f32 0.03125, %v6803_v47 }
 0xf9b   : > { %v6820_v53 = vadd.f32 1e-05, %v6812_v43 }
 0xf9c   : > { %v6823_v35 = vadd.f32 1e-05, %v6815_v48  ;;  %v6800_v33 = vpop.xlane.xlu0 %6799 }
 0xf9d   : > { %7908 = vrsqrt.f32 %v6820_v53  ;;  %v6814_v40 = vmul.f32 0.03125, %v6800_v33  ;;  %v6809_v59 = vpop.xlane.xlu1 %6808 }
 0xf9e   : > { %7910 = vrsqrt.f32 %v6823_v35  ;;  %v6817_v26 = vmul.f32 0.03125, %v6809_v59 }
 0xf9f   : > { %v6822_v54 = vadd.f32 1e-05, %v6814_v40 }
 0xfa0   : > { %v7903_v0 = vpop.eup %7902  ;;  %v6806_v1 = vpop.xlane.xlu0 %6805  ;;  %v6825_v55 = vadd.f32 1e-05, %v6817_v26 }
 0xfa1   : > { %v6835_v9 = vmul.f32 %v7903_v0, %v9428_v15  ;;  %7912 = vrsqrt.f32 %v6822_v54  ;;  %v6816_v13 = vmul.f32 0.03125, %v6806_v1 }
 0xfa2   : > { %v7905_v24 = vpop.eup %7904  ;;  %7914 = vrsqrt.f32 %v6825_v55 }
 0xfa3   : > { %v6849_v14 = vmul.f32 %v7098_v12, %v6835_v9  ;;  %v6834_v30 = vmul.f32 %v7905_v24, %v9430_v19  ;;  %v6824_v61 = vadd.f32 1e-05, %v6816_v13 }
 0xfa5   : > { %v6863_v15 = vadd.f32 %v7099_v29, %v6849_v14  ;;  %v6848_v23 = vmul.f32 %v7098_v12, %v6834_v30  ;;  %7916 = vrsqrt.f32 %v6824_v61 }
 0xfa6   : > { %v7907_v41 = vpop.eup %7906 }
 0xfa7   : > { %6871 = vst.msk [vmem:[%s9481_s30 + $0x8] sm:$0xff] %vm462_vm0, %v6863_v15  ;;  %v6862_v21 = vadd.f32 %v7099_v29, %v6848_v23  ;;  %v6837_v19 = vmul.f32 %v7907_v41, %v9437_v52 }
 0xfa9   : > { %6870 = vst.msk [vmem:[%s9481_s30] sm:$0xff] %vm462_vm0, %v6862_v21  ;;  %v6851_v27 = vmul.f32 %v7098_v12, %v6837_v19 }
 0xfaa   : > { %v7909_v58 = vpop.eup %7908 }
 0xfab   : > { %v7911_v32 = vpop.eup %7910  ;;  %v6865_v60 = vadd.f32 %v7099_v29, %v6851_v27  ;;  %v6836_v10 = vmul.f32 %v7909_v58, %v9442_v39 }
 0xfac   : > { %v6839_v7 = vmul.f32 %v7911_v32, %v9445_v8 }
 0xfad   : > { %6873 = vst.msk [vmem:[%s9481_s30 + $0x18] sm:$0xff] %vm462_vm0, %v6865_v60  ;;  %v6850_v34 = vmul.f32 %v7098_v12, %v6836_v10 }
 0xfae   : > { %v7913_v20 = vpop.eup %7912  ;;  %v6853_v4 = vmul.f32 %v7098_v12, %v6839_v7 }
 0xfaf   : > { %v6864_v52 = vadd.f32 %v7099_v29, %v6850_v34  ;;  %v6838_v50 = vmul.f32 %v7913_v20, %v9451_v28  ;;  %v7915_v36 = vpop.eup %7914 }
 0xfb0   : > { %v6867_v5 = vadd.f32 %v7099_v29, %v6853_v4  ;;  %v6841_v46 = vmul.f32 %v7915_v36, %v9455_v44 }
 0xfb1   : > { %6872 = vst.msk [vmem:[%s9481_s30 + $0x10] sm:$0xff] %vm462_vm0, %v6864_v52  ;;  %v6852_v39 = vmul.f32 %v7098_v12, %v6838_v50 }
 0xfb2   : > { %v7917_v6 = vpop.eup %7916  ;;  %6875 = vst.msk [vmem:[%s9481_s30 + $0x28] sm:$0xff] %vm462_vm0, %v6867_v5  ;;  %v6855_v8 = vmul.f32 %v7098_v12, %v6841_v46 }
 0xfb3   : > { %v6866_v3 = vadd.f32 %v7099_v29, %v6852_v39  ;;  %v6840_v31 = vmul.f32 %v7917_v6, %v9459_v38 }
 0xfb4   : > { %v6869_v22 = vadd.f32 %v7099_v29, %v6855_v8 }
 0xfb5   : > { %6874 = vst.msk [vmem:[%s9481_s30 + $0x20] sm:$0xff] %vm462_vm0, %v6866_v3  ;;  %v6854_v63 = vmul.f32 %v7098_v12, %v6840_v31 }
 0xfb6   : > { %6877 = vst.msk [vmem:[%s9481_s30 + $0x38] sm:$0xff] %vm462_vm0, %v6869_v22 }
 0xfb7   : > { %v6868_v28 = vadd.f32 %v7099_v29, %v6854_v63 }
 0xfb9   : > { %6876 = vst.msk [vmem:[%s9481_s30 + $0x30] sm:$0xff] %vm462_vm0, %v6868_v28 }
 0xfba PF: > { %s22_s21 = sadd.s32 1, %s7932_s21  }
 0xfbb   : > { %p19_p4 = scmp.ge.s32.totalorder %s22_s21, 4  }
 0xfbd   :  { %21 = sbr.rel (!%p19_p4) target bundleno = 1 (0x1), region = 101 }

</bundles_post_ra>
